<compile_context>
chip_gen: v5e
topology: v5e:2x2
jax: 0.10.0
libtpu: 0.0.40
codegen_flags: <defaults>
</compile_context>

<pallas_src>
import math
import functools

import jax
import jax.numpy as jnp
from jax import lax
from jax.experimental import pallas as pl
from jax.experimental.pallas import tpu as pltpu

_VMEM_LIMIT = 32 * 1024 * 1024  # explicit scoped-VMEM limit (safe on v5e/v6e/v7x)


# ---------------------------------------------------------------------------
# Kernel 1: LayerNorm + fused [Q-token | K-token | V] projections (whole batch,
#           no grid; outputs already in the layouts K2/K3 consume).
# ---------------------------------------------------------------------------

def _ln_qkv_kernel(x_ref, g_ref, b_ref, wq_ref, bq_ref, wk_ref, bk_ref,
                   wv_ref, bv_ref, tok_ref, v_ref):
    B, N, D = x_ref.shape
    x = x_ref[...].reshape(B * N, D)                       # (B*N, D) f32
    mu = jnp.mean(x, axis=-1, keepdims=True)
    xc = x - mu
    var = jnp.mean(xc * xc, axis=-1, keepdims=True)
    xn = xc * lax.rsqrt(var + 1e-5) * g_ref[...] + b_ref[...]
    xb = xn.astype(jnp.bfloat16)                           # bf16 into the MXU

    def proj(w_ref, bias_ref):
        return jnp.dot(xb, w_ref[...], preferred_element_type=jnp.float32) + bias_ref[...]

    q = proj(wq_ref, bq_ref)
    k = proj(wk_ref, bk_ref)
    v = proj(wv_ref, bv_ref)
    tok_ref[0] = q.reshape(B, N, D).astype(tok_ref.dtype)
    tok_ref[1] = k.reshape(B, N, D).astype(tok_ref.dtype)
    v_ref[...] = v.reshape(B, N, D).astype(v_ref.dtype)


def ln_qkv(x, fp):
    B, N, D = x.shape
    return pl.pallas_call(
        _ln_qkv_kernel,
        out_shape=(jax.ShapeDtypeStruct((2, B, N, D), jnp.bfloat16),
                   jax.ShapeDtypeStruct((B, N, D), jnp.bfloat16)),
    )(x, fp["attn_ln_g"], fp["attn_ln_b"],
      fp["wq"], fp["bq"], fp["wk"], fp["bk"], fp["wv"], fp["bv"])


# ---------------------------------------------------------------------------
# Kernel 2: both MEGNN MLP stacks (Linear -> eval-BN -> Dropout(id) -> ReLU ->
#           Linear), K-tiled over the flattened node axis with a VMEM accumulator.
# ---------------------------------------------------------------------------

def _megnn_mlp_kernel(tok_ref, w0_ref, b0_ref, bnsc_ref, bnsh_ref, w3_ref, b3_ref,
                      o_ref, h_acc):
    kt = pl.program_id(1)

    @pl.when(kt == 0)
    def _init():
        h_acc[...] = jnp.zeros(h_acc.shape, h_acc.dtype)

    h_acc[...] += jnp.dot(tok_ref[0], w0_ref[0],
                          preferred_element_type=jnp.float32)       # (B, H)

    @pl.when(kt == pl.num_programs(1) - 1)
    def _finalize():
        h = h_acc[...] + b0_ref[0]
        h = h * bnsc_ref[0] + bnsh_ref[0]                           # eval BatchNorm1d
        h = jnp.maximum(h, 0.0)                                     # Dropout(id) -> ReLU
        y = jnp.dot(h.astype(w3_ref.dtype), w3_ref[0],
                    preferred_element_type=jnp.float32) + b3_ref[0]
        o_ref[0] = y.astype(o_ref.dtype)


def megnn_mlp_pair(tok, fp, *, tk):
    _, B, ND = tok.shape
    H = fp["mlp0_w"].shape[2]
    return pl.pallas_call(
        _megnn_mlp_kernel,
        out_shape=jax.ShapeDtypeStruct((2, B, ND), jnp.bfloat16),
        grid=(2, ND // tk),
        in_specs=[
            pl.BlockSpec((1, B, tk), lambda g, k: (g, 0, k)),
            pl.BlockSpec((1, tk, H), lambda g, k: (g, k, 0)),
            pl.BlockSpec((1, 1, H), lambda g, k: (g, 0, 0)),
            pl.BlockSpec((1, 1, H), lambda g, k: (g, 0, 0)),
            pl.BlockSpec((1, 1, H), lambda g, k: (g, 0, 0)),
            pl.BlockSpec((1, H, ND), lambda g, k: (g, 0, 0)),
            pl.BlockSpec((1, 1, ND), lambda g, k: (g, 0, 0)),
        ],
        out_specs=pl.BlockSpec((1, B, ND), lambda g, k: (g, 0, 0)),
        scratch_shapes=[pltpu.VMEM((B, H), jnp.float32)],
        compiler_params=pltpu.CompilerParams(
            dimension_semantics=("parallel", "arbitrary"),
            vmem_limit_bytes=_VMEM_LIMIT),
    )(tok, fp["mlp0_w"], fp["mlp0_b"], fp["bn_scale"], fp["bn_shift"],
      fp["mlp3_w"], fp["mlp3_b"])


# ---------------------------------------------------------------------------
# Kernel 3: flash-attention (online softmax over KV tiles, heads = lane slices)
#           + single merged output projection + residual + full FeedForwardBlock.
# ---------------------------------------------------------------------------

def _flash_attn_ffn_kernel(q_ref, k_ref, v_ref, xres_ref,
                           ow_ref, ob_ref, ffg_ref, ffb_ref,
                           w1_ref, b1_ref, w2_ref, b2_ref,
                           o_ref, lse_ref,
                           m_scr, l_scr, ctx_scr, *, n_head):
    kt = pl.program_id(1)

    @pl.when(kt == 0)
    def _init():
        m_scr[...] = jnp.full(m_scr.shape, -jnp.inf, m_scr.dtype)
        l_scr[...] = jnp.zeros(l_scr.shape, l_scr.dtype)
        ctx_scr[...] = jnp.zeros(ctx_scr.shape, ctx_scr.dtype)

    q = q_ref[0]                                   # (N, D)  bf16, resident across kt
    k = k_ref[0]                                   # (tkv, D) bf16
    v = v_ref[0]                                   # (tkv, D) bf16
    N, D = q.shape
    dk = D // n_head

    m_all = m_scr[...]
    l_all = l_scr[...]
    ctx_all = ctx_scr[...]

    m_cols, l_cols, ctx_parts = [], [], []
    # TODO(synk): static loop is fine for n_head=4; for large n_head batch the heads
    #             through one dot_general to bound vreg live ranges.
    for h in range(n_head):
        hs = slice(h * dk, (h + 1) * dk)
        # scale 1/sqrt(d_k) is pre-folded into the Q-path MEGNN mlp3 weights.
        s = lax.dot_general(q[:, hs], k[:, hs],
                            dimension_numbers=(((1,), (1,)), ((), ())),
                            preferred_element_type=jnp.float32)     # (N, tkv)
        m_prev = m_all[:, h:h + 1]
        m_new = jnp.maximum(m_prev, jnp.max(s, axis=-1, keepdims=True))
        a = jnp.exp(m_prev - m_new)
        p = jnp.exp(s - m_new)
        l_cols.append(a * l_all[:, h:h + 1] + jnp.sum(p, axis=-1, keepdims=True))
        ctx_parts.append(a * ctx_all[:, hs]
                         + jnp.dot(p.astype(v.dtype), v[:, hs],
                                   preferred_element_type=jnp.float32))
        m_cols.append(m_new)

    m_scr[...] = jnp.concatenate(m_cols, axis=1)
    l_scr[...] = jnp.concatenate(l_cols, axis=1)
    ctx_scr[...] = jnp.concatenate(ctx_parts, axis=1)

    @pl.when(kt == pl.num_programs(1) - 1)
    def _finalize():
        l_f = l_scr[...]                                          # (N, n_head)
        inv_l = pl.reciprocal(l_f, approx=True)
        ctx = ctx_scr[...]
        parts = [ctx[:, h * dk:(h + 1) * dk] * inv_l[:, h:h + 1]
                 for h in range(n_head)]
        ctx_n = jnp.concatenate(parts, axis=1).astype(ow_ref.dtype)   # (N, D) bf16
        # merged output projection (one (N,D)@(D,D) MXU push) + bias + residual
        xa = (jnp.dot(ctx_n, ow_ref[...], preferred_element_type=jnp.float32)
              + ob_ref[...] + xres_ref[0])
        # FeedForwardBlock: LN -> W1 -> ReLU -> W2 -> + residual (dropout = id)
        mu = jnp.mean(xa, axis=-1, keepdims=True)
        xc = xa - mu
        var = jnp.mean(xc * xc, axis=-1, keepdims=True)
        xn = (xc * lax.rsqrt(var + 1e-5) * ffg_ref[...] + ffb_ref[...]).astype(w1_ref.dtype)
        hdn = jnp.maximum(
            jnp.dot(xn, w1_ref[...], preferred_element_type=jnp.float32) + b1_ref[...],
            0.0).astype(w2_ref.dtype)
        y = (jnp.dot(hdn, w2_ref[...], preferred_element_type=jnp.float32)
             + b2_ref[...] + xa)
        o_ref[0] = y.astype(o_ref.dtype)
        lse_ref[0] = (m_scr[...] + jnp.log(l_f)).astype(lse_ref.dtype)


def attn_ffn(q, k, v, x, fp, n_head, *, tkv):
    B, N, D = x.shape
    d_ff = fp["ff_w1"].shape[1]
    return pl.pallas_call(
        functools.partial(_flash_attn_ffn_kernel, n_head=n_head),
        out_shape=(jax.ShapeDtypeStruct((B, N, D), jnp.float32),
                   jax.ShapeDtypeStruct((B, N, n_head), jnp.float32)),
        grid=(B, N // tkv),
        in_specs=[
            pl.BlockSpec((1, N, D), lambda b, kt: (b, 0, 0)),      # q (resident)
            pl.BlockSpec((1, tkv, D), lambda b, kt: (b, kt, 0)),   # k tile
            pl.BlockSpec((1, tkv, D), lambda b, kt: (b, kt, 0)),   # v tile
            pl.BlockSpec((1, N, D), lambda b, kt: (b, 0, 0)),      # residual x
            pl.BlockSpec((D, D), lambda b, kt: (0, 0)),            # o_w
            pl.BlockSpec((1, D), lambda b, kt: (0, 0)),            # o_b
            pl.BlockSpec((1, D), lambda b, kt: (0, 0)),            # ff ln gamma
            pl.BlockSpec((1, D), lambda b, kt: (0, 0)),            # ff ln beta
            pl.BlockSpec((D, d_ff), lambda b, kt: (0, 0)),         # ff w1
            pl.BlockSpec((1, d_ff), lambda b, kt: (0, 0)),         # ff b1
            pl.BlockSpec((d_ff, D), lambda b, kt: (0, 0)),         # ff w2
            pl.BlockSpec((1, D), lambda b, kt: (0, 0)),            # ff b2
        ],
        out_specs=(pl.BlockSpec((1, N, D), lambda b, kt: (b, 0, 0)),
                   pl.BlockSpec((1, N, n_head), lambda b, kt: (b, 0, 0))),
        scratch_shapes=[pltpu.VMEM((N, n_head), jnp.float32),   # running max
                        pltpu.VMEM((N, n_head), jnp.float32),   # running denom
                        pltpu.VMEM((N, D), jnp.float32)],       # context accumulator
        compiler_params=pltpu.CompilerParams(
            dimension_semantics=("parallel", "arbitrary"),
            vmem_limit_bytes=_VMEM_LIMIT),
    )(q, k, v, x, fp["o_w"], fp["o_b"], fp["ff_ln_g"], fp["ff_ln_b"],
      fp["ff_w1"], fp["ff_b1"], fp["ff_w2"], fp["ff_b2"])


# ---------------------------------------------------------------------------
# Optional kernel: exact attention probabilities, recomputed off the hot path
# from the per-head logsumexp emitted by the flash kernel.
# ---------------------------------------------------------------------------

def _attn_probs_kernel(q_ref, k_ref, lse_ref, attn_ref, *, n_head):
    q = q_ref[0]
    k = k_ref[0]
    lse = lse_ref[0]                                              # (N, n_head)
    N, D = q.shape
    dk = D // n_head
    for h in range(n_head):
        hs = slice(h * dk, (h + 1) * dk)
        s = lax.dot_general(q[:, hs], k[:, hs],
                            dimension_numbers=(((1,), (1,)), ((), ())),
                            preferred_element_type=jnp.float32)
        attn_ref[0, h] = jnp.exp(s - lse[:, h:h + 1]).astype(attn_ref.dtype)


def attn_probs(q, k, lse, n_head):
    B, N, D = q.shape
    return pl.pallas_call(
        functools.partial(_attn_probs_kernel, n_head=n_head),
        out_shape=jax.ShapeDtypeStruct((B, n_head, N, N), jnp.float32),
        grid=(B,),
        in_specs=[
            pl.BlockSpec((1, N, D), lambda b: (b, 0, 0)),
            pl.BlockSpec((1, N, D), lambda b: (b, 0, 0)),
            pl.BlockSpec((1, N, n_head), lambda b: (b, 0, 0)),
        ],
        out_specs=pl.BlockSpec((1, n_head, N, N), lambda b: (b, 0, 0, 0)),
        compiler_params=pltpu.CompilerParams(dimension_semantics=("parallel",)),
    )(q, k, lse)


# ---------------------------------------------------------------------------
# EncoderBlock forward: 3 fused pallas_calls (+ optional probs kernel).
# ---------------------------------------------------------------------------

def encoder_block(x, fp, n_head, *, tk_nd=256, tkv=16, return_attn=True):
    B, N, D = x.shape
    # SelfAttentionBlock: x_ = LN(x); q_tok/k_tok/v projections of x_ (K1)
    tok4, v = ln_qkv(x, fp)                       # (2, B, N, D) bf16, (B, N, D) bf16
    tok = tok4.reshape(2, B, N * D)               # free contiguous metadata reshape

    # Both MEGNN out_mlp stacks (q-path has 1/sqrt(d_k) folded in) — K2
    qk = megnn_mlp_pair(tok, fp, tk=tk_nd)        # (2, B, N*D) bf16
    q = qk[0].reshape(B, N, D)
    k = qk[1].reshape(B, N, D)

    # Flash attention + out-proj + residual + FeedForwardBlock — K3
    x_out, lse = attn_ffn(q, k, v, x, fp, n_head, tkv=tkv)
    attn = attn_probs(q, k, lse, n_head) if return_attn else None
    return x_out, attn


# ---------------------------------------------------------------------------
# Parameter init (nn.Linear default-init family) + one-time fusion to the
# kernel-friendly layout (bf16 weights, folded BN, folded attention scale).
# ---------------------------------------------------------------------------

def init_linear(key, fan_in, fan_out):
    kw, kb = jax.random.split(key)
    bound = 1.0 / math.sqrt(fan_in)
    w = jax.random.uniform(kw, (fan_in, fan_out), jnp.float32, -bound, bound)
    b = jax.random.uniform(kb, (fan_out,), jnp.float32, -bound, bound)
    return w, b


def init_megnn(key, D, hidden_dim, Nnodes):
    k1, k2, k3 = jax.random.split(key, 3)
    lin_w, lin_b = init_linear(k1, D, D)
    mlp0_w, mlp0_b = init_linear(k2, D * Nnodes, hidden_dim)
    mlp3_w, mlp3_b = init_linear(k3, hidden_dim, D * Nnodes)
    return dict(lin_w=lin_w, lin_b=lin_b,
                mlp0_w=mlp0_w, mlp0_b=mlp0_b,
                mlp3_w=mlp3_w, mlp3_b=mlp3_b,
                bn_gamma=jnp.ones((hidden_dim,), jnp.float32),
                bn_beta=jnp.zeros((hidden_dim,), jnp.float32),
                bn_mean=jnp.zeros((hidden_dim,), jnp.float32),
                bn_var=jnp.ones((hidden_dim,), jnp.float32))


def init_encoder_block(key, d_model, d_ff, hidden_dim, Nnodes):
    k0, k1, k2, k3, k4, k5 = jax.random.split(key, 6)
    gnn0 = init_megnn(k0, d_model, hidden_dim, Nnodes)
    gnn1 = init_megnn(k1, d_model, hidden_dim, Nnodes)
    v_w, v_b = init_linear(k2, d_model, d_model)
    o_w, o_b = init_linear(k3, d_model, d_model)
    ff_w1, ff_b1 = init_linear(k4, d_model, d_ff)
    ff_w2, ff_b2 = init_linear(k5, d_ff, d_model)
    return dict(
        attn_ln_g=jnp.ones((d_model,), jnp.float32),
        attn_ln_b=jnp.zeros((d_model,), jnp.float32),
        attn=dict(gnn0=gnn0, gnn1=gnn1, v_w=v_w, v_b=v_b, o_w=o_w, o_b=o_b),
        ff_ln_g=jnp.ones((d_model,), jnp.float32),
        ff_ln_b=jnp.zeros((d_model,), jnp.float32),
        ff_w1=ff_w1, ff_b1=ff_b1, ff_w2=ff_w2, ff_b2=ff_b2,
    )


def fuse_params(raw, n_head):
    """One-time offline rearrangement into the fused kernel layout (bf16 weights)."""
    D = raw["attn"]["v_w"].shape[0]
    scale = 1.0 / math.sqrt(D // n_head)
    g0, g1 = raw["attn"]["gnn0"], raw["attn"]["gnn1"]
    bf = lambda a: a.astype(jnp.bfloat16)

    def bn_fold(g):
        sc = g["bn_gamma"] * lax.rsqrt(g["bn_var"] + 1e-5)
        sh = g["bn_beta"] - g["bn_mean"] * sc
        return sc, sh

    sc0, sh0 = bn_fold(g0)
    sc1, sh1 = bn_fold(g1)

    return dict(
        attn_ln_g=raw["attn_ln_g"].reshape(1, D),
        attn_ln_b=raw["attn_ln_b"].reshape(1, D),
        wq=bf(g0["lin_w"]), bq=g0["lin_b"].reshape(1, D),
        wk=bf(g1["lin_w"]), bk=g1["lin_b"].reshape(1, D),
        wv=bf(raw["attn"]["v_w"]), bv=raw["attn"]["v_b"].reshape(1, D),
        mlp0_w=bf(jnp.stack([g0["mlp0_w"], g1["mlp0_w"]], axis=0)),
        mlp0_b=jnp.stack([g0["mlp0_b"], g1["mlp0_b"]], axis=0)[:, None, :],
        bn_scale=jnp.stack([sc0, sc1], axis=0)[:, None, :],
        bn_shift=jnp.stack([sh0, sh1], axis=0)[:, None, :],
        # attention 1/sqrt(d_k) folded into the q-path mlp3 weights/bias
        mlp3_w=bf(jnp.stack([g0["mlp3_w"] * scale, g1["mlp3_w"]], axis=0)),
        mlp3_b=jnp.stack([g0["mlp3_b"] * scale, g1["mlp3_b"]], axis=0)[:, None, :],
        o_w=bf(raw["attn"]["o_w"]), o_b=raw["attn"]["o_b"].reshape(1, D),
        ff_ln_g=raw["ff_ln_g"].reshape(1, D), ff_ln_b=raw["ff_ln_b"].reshape(1, D),
        ff_w1=bf(raw["ff_w1"]), ff_b1=raw["ff_b1"].reshape(1, -1),
        ff_w2=bf(raw["ff_w2"]), ff_b2=raw["ff_b2"].reshape(1, D),
    )


# ---------------------------------------------------------------------------
# Pure-JAX reference (same fused/bf16 weights) for a correctness cross-check.
# ---------------------------------------------------------------------------

def encoder_block_reference(x, fp, n_head):
    f32 = lambda a: a.astype(jnp.float32)
    B, N, D = x.shape
    dk = D // n_head

    def ln(z, g, b):
        mu = jnp.mean(z, -1, keepdims=True)
        var = jnp.mean((z - mu) ** 2, -1, keepdims=True)
        return (z - mu) * lax.rsqrt(var + 1e-5) * g + b

    x_ = ln(x, fp["attn_ln_g"], fp["attn_ln_b"])
    proj = lambda w, b: jnp.einsum("bnd,de->bne", x_, f32(w)) + b
    q_tok = proj(fp["wq"], fp["bq"]).reshape(B, N * D)
    k_tok = proj(fp["wk"], fp["bk"]).reshape(B, N * D)
    v = proj(fp["wv"], fp["bv"])

    def megnn(t, i):
        h = t @ f32(fp["mlp0_w"][i]) + fp["mlp0_b"][i]
        h = h * fp["bn_scale"][i] + fp["bn_shift"][i]
        h = jnp.maximum(h, 0.0)
        return (h @ f32(fp["mlp3_w"][i]) + fp["mlp3_b"][i]).reshape(B, N, D)

    q = megnn(q_tok, 0)
    k = megnn(k_tok, 1)

    qh = q.reshape(B, N, n_head, dk).transpose(0, 2, 1, 3)
    kh = k.reshape(B, N, n_head, dk).transpose(0, 2, 1, 3)
    vh = v.reshape(B, N, n_head, dk).transpose(0, 2, 1, 3)
    s = jnp.einsum("bhnd,bhmd->bhnm", qh, kh)
    attn = jax.nn.softmax(s, axis=-1)
    ctx = jnp.einsum("bhnm,bhmd->bhnd", attn, vh).transpose(0, 2, 1, 3).reshape(B, N, D)
    xa = ctx @ f32(fp["o_w"]) + fp["o_b"] + x
    xn = ln(xa, fp["ff_ln_g"], fp["ff_ln_b"])
    y = jnp.maximum(xn @ f32(fp["ff_w1"]) + fp["ff_b1"], 0.0) @ f32(fp["ff_w2"]) \
        + fp["ff_b2"] + xa
    return y, attn


# ---------------------------------------------------------------------------
# Example run
# ---------------------------------------------------------------------------

if __name__ == "__main__":
    # Small, module-consistent shapes.
    B, Nnodes, d_model = 2, 32, 32
    n_head, d_ff, hidden_dim = 4, 64, 16

    key = jax.random.PRNGKey(0)
    kx, kp = jax.random.split(key)
    x = jax.random.normal(kx, (B, Nnodes, d_model), jnp.float32)

    raw_params = init_encoder_block(kp, d_model, d_ff, hidden_dim, Nnodes)
    fused = fuse_params(raw_params, n_head)

    fwd = jax.jit(functools.partial(encoder_block, n_head=n_head,
                                    tk_nd=256, tkv=16, return_attn=True))
    y, attn = fwd(x, fused)
    jax.block_until_ready((y, attn))

    y_ref, attn_ref = encoder_block_reference(x, fused, n_head)

    assert y.shape == (B, Nnodes, d_model)
    assert attn.shape == (B, n_head, Nnodes, Nnodes)
    assert bool(jnp.all(jnp.isfinite(y)))
    assert bool(jnp.all(jnp.isfinite(attn)))
    assert float(jnp.max(jnp.abs(attn - attn_ref))) < 5e-2
    assert float(jnp.max(jnp.abs(y - y_ref))) < 1e-1
    print("KERNEL_OK")
</pallas_src>

<mosaic_0001>
module attributes {stable_mosaic.version = 11 : i64} {
  func.func @_ln_qkv_kernel(%arg0: memref<2x32x32xf32, #tpu.memory_space<vmem>>, %arg1: memref<1x32xf32, #tpu.memory_space<vmem>>, %arg2: memref<1x32xf32, #tpu.memory_space<vmem>>, %arg3: memref<32x32xbf16, #tpu.memory_space<vmem>>, %arg4: memref<1x32xf32, #tpu.memory_space<vmem>>, %arg5: memref<32x32xbf16, #tpu.memory_space<vmem>>, %arg6: memref<1x32xf32, #tpu.memory_space<vmem>>, %arg7: memref<32x32xbf16, #tpu.memory_space<vmem>>, %arg8: memref<1x32xf32, #tpu.memory_space<vmem>>, %arg9: memref<2x2x32x32xbf16, #tpu.memory_space<vmem>>, %arg10: memref<2x32x32xbf16, #tpu.memory_space<vmem>>) attributes {dimension_semantics = [], scalar_prefetch = 0 : i64, scratch_operands = 0 : i64, tpu.core_type = #tpu.core_type<tc>} {
    %c0 = arith.constant 0 : index
    %c0_0 = arith.constant 0 : index
    %c0_1 = arith.constant 0 : index
    %0 = vector.load %arg0[%c0, %c0_0, %c0_1] : memref<2x32x32xf32, #tpu.memory_space<vmem>>, vector<2x32x32xf32>
    %1 = vector.shape_cast %0 : vector<2x32x32xf32> to vector<64x32xf32>
    %cst = arith.constant dense<0.000000e+00> : vector<64xf32>
    %2 = vector.multi_reduction <add>, %1, %cst [1] : vector<64x32xf32> to vector<64xf32>
    %3 = vector.shape_cast %2 : vector<64xf32> to vector<64x1xf32>
    %cst_2 = arith.constant 3.200000e+01 : f32
    %4 = vector.broadcast %cst_2 : f32 to vector<64x1xf32>
    %5 = arith.divf %3, %4 : vector<64x1xf32>
    %6 = vector.broadcast %5 : vector<64x1xf32> to vector<64x32xf32>
    %7 = arith.subf %1, %6 : vector<64x32xf32>
    %8 = arith.mulf %7, %7 : vector<64x32xf32>
    %cst_3 = arith.constant dense<0.000000e+00> : vector<64xf32>
    %9 = vector.multi_reduction <add>, %8, %cst_3 [1] : vector<64x32xf32> to vector<64xf32>
    %10 = vector.shape_cast %9 : vector<64xf32> to vector<64x1xf32>
    %cst_4 = arith.constant 3.200000e+01 : f32
    %11 = vector.broadcast %cst_4 : f32 to vector<64x1xf32>
    %12 = arith.divf %10, %11 : vector<64x1xf32>
    %cst_5 = arith.constant 9.99999974E-6 : f32
    %13 = vector.broadcast %cst_5 : f32 to vector<64x1xf32>
    %14 = arith.addf %12, %13 : vector<64x1xf32>
    %15 = math.rsqrt %14 : vector<64x1xf32>
    %16 = vector.broadcast %15 : vector<64x1xf32> to vector<64x32xf32>
    %17 = arith.mulf %7, %16 : vector<64x32xf32>
    %c0_6 = arith.constant 0 : index
    %c0_7 = arith.constant 0 : index
    %18 = vector.load %arg1[%c0_6, %c0_7] : memref<1x32xf32, #tpu.memory_space<vmem>>, vector<1x32xf32>
    %19 = vector.broadcast %18 : vector<1x32xf32> to vector<64x32xf32>
    %20 = arith.mulf %17, %19 : vector<64x32xf32>
    %c0_8 = arith.constant 0 : index
    %c0_9 = arith.constant 0 : index
    %21 = vector.load %arg2[%c0_8, %c0_9] : memref<1x32xf32, #tpu.memory_space<vmem>>, vector<1x32xf32>
    %22 = vector.broadcast %21 : vector<1x32xf32> to vector<64x32xf32>
    %23 = arith.addf %20, %22 : vector<64x32xf32>
    %24 = arith.truncf %23 : vector<64x32xf32> to vector<64x32xbf16>
    %c0_10 = arith.constant 0 : index
    %c0_11 = arith.constant 0 : index
    %25 = vector.load %arg3[%c0_10, %c0_11] : memref<32x32xbf16, #tpu.memory_space<vmem>>, vector<32x32xbf16>
    %cst_12 = arith.constant dense<0.000000e+00> : vector<64x32xf32>
    %26 = tpu.matmul %24, %25, %cst_12 {dimension_numbers = #tpu.dot_dimension_numbers<[1], [0], [0], [1], [0, 0, 1, 1], [], []>} : vector<64x32xbf16>, vector<32x32xbf16>, vector<64x32xf32> -> vector<64x32xf32>
    %c0_13 = arith.constant 0 : index
    %c0_14 = arith.constant 0 : index
    %27 = vector.load %arg4[%c0_13, %c0_14] : memref<1x32xf32, #tpu.memory_space<vmem>>, vector<1x32xf32>
    %28 = vector.broadcast %27 : vector<1x32xf32> to vector<64x32xf32>
    %29 = arith.addf %26, %28 : vector<64x32xf32>
    %c0_15 = arith.constant 0 : index
    %c0_16 = arith.constant 0 : index
    %30 = vector.load %arg5[%c0_15, %c0_16] : memref<32x32xbf16, #tpu.memory_space<vmem>>, vector<32x32xbf16>
    %cst_17 = arith.constant dense<0.000000e+00> : vector<64x32xf32>
    %31 = tpu.matmul %24, %30, %cst_17 {dimension_numbers = #tpu.dot_dimension_numbers<[1], [0], [0], [1], [0, 0, 1, 1], [], []>} : vector<64x32xbf16>, vector<32x32xbf16>, vector<64x32xf32> -> vector<64x32xf32>
    %c0_18 = arith.constant 0 : index
    %c0_19 = arith.constant 0 : index
    %32 = vector.load %arg6[%c0_18, %c0_19] : memref<1x32xf32, #tpu.memory_space<vmem>>, vector<1x32xf32>
    %33 = vector.broadcast %32 : vector<1x32xf32> to vector<64x32xf32>
    %34 = arith.addf %31, %33 : vector<64x32xf32>
    %c0_20 = arith.constant 0 : index
    %c0_21 = arith.constant 0 : index
    %35 = vector.load %arg7[%c0_20, %c0_21] : memref<32x32xbf16, #tpu.memory_space<vmem>>, vector<32x32xbf16>
    %cst_22 = arith.constant dense<0.000000e+00> : vector<64x32xf32>
    %36 = tpu.matmul %24, %35, %cst_22 {dimension_numbers = #tpu.dot_dimension_numbers<[1], [0], [0], [1], [0, 0, 1, 1], [], []>} : vector<64x32xbf16>, vector<32x32xbf16>, vector<64x32xf32> -> vector<64x32xf32>
    %c0_23 = arith.constant 0 : index
    %c0_24 = arith.constant 0 : index
    %37 = vector.load %arg8[%c0_23, %c0_24] : memref<1x32xf32, #tpu.memory_space<vmem>>, vector<1x32xf32>
    %38 = vector.broadcast %37 : vector<1x32xf32> to vector<64x32xf32>
    %39 = arith.addf %36, %38 : vector<64x32xf32>
    %40 = vector.shape_cast %29 : vector<64x32xf32> to vector<2x32x32xf32>
    %41 = arith.truncf %40 : vector<2x32x32xf32> to vector<2x32x32xbf16>
    %c0_25 = arith.constant 0 : index
    %c0_26 = arith.constant 0 : index
    %c0_27 = arith.constant 0 : index
    %c0_28 = arith.constant 0 : index
    %42 = vector.load %arg9[%c0_25, %c0_26, %c0_27, %c0_28] : memref<2x2x32x32xbf16, #tpu.memory_space<vmem>>, vector<1x2x32x32xbf16>
    %43 = vector.shape_cast %42 : vector<1x2x32x32xbf16> to vector<2x32x32xbf16>
    %44 = vector.shape_cast %41 : vector<2x32x32xbf16> to vector<1x2x32x32xbf16>
    tpu.vector_store %arg9[%c0_25, %c0_26, %c0_27, %c0_28], %44 {strides = array<i32>} : memref<2x2x32x32xbf16, #tpu.memory_space<vmem>>, vector<1x2x32x32xbf16>,
    %45 = vector.shape_cast %34 : vector<64x32xf32> to vector<2x32x32xf32>
    %46 = arith.truncf %45 : vector<2x32x32xf32> to vector<2x32x32xbf16>
    %c1 = arith.constant 1 : index
    %c0_29 = arith.constant 0 : index
    %c0_30 = arith.constant 0 : index
    %c0_31 = arith.constant 0 : index
    %47 = vector.load %arg9[%c1, %c0_29, %c0_30, %c0_31] : memref<2x2x32x32xbf16, #tpu.memory_space<vmem>>, vector<1x2x32x32xbf16>
    %48 = vector.shape_cast %47 : vector<1x2x32x32xbf16> to vector<2x32x32xbf16>
    %49 = vector.shape_cast %46 : vector<2x32x32xbf16> to vector<1x2x32x32xbf16>
    tpu.vector_store %arg9[%c1, %c0_29, %c0_30, %c0_31], %49 {strides = array<i32>} : memref<2x2x32x32xbf16, #tpu.memory_space<vmem>>, vector<1x2x32x32xbf16>,
    %50 = vector.shape_cast %39 : vector<64x32xf32> to vector<2x32x32xf32>
    %51 = arith.truncf %50 : vector<2x32x32xf32> to vector<2x32x32xbf16>
    %c0_32 = arith.constant 0 : index
    %c0_33 = arith.constant 0 : index
    %c0_34 = arith.constant 0 : index
    %52 = vector.load %arg10[%c0_32, %c0_33, %c0_34] : memref<2x32x32xbf16, #tpu.memory_space<vmem>>, vector<2x32x32xbf16>
    tpu.vector_store %arg10[%c0_32, %c0_33, %c0_34], %51 {strides = array<i32>} : memref<2x32x32xbf16, #tpu.memory_space<vmem>>, vector<2x32x32xbf16>,
    return
  }
}

module attributes {stable_mosaic.version = 11 : i64} {
  func.func @_megnn_mlp_kernel(%arg0: i32, %arg1: i32, %arg2: memref<1x2x256xbf16, #tpu.memory_space<vmem>>, %arg3: memref<1x256x16xbf16, #tpu.memory_space<vmem>>, %arg4: memref<1x1x16xf32, #tpu.memory_space<vmem>>, %arg5: memref<1x1x16xf32, #tpu.memory_space<vmem>>, %arg6: memref<1x1x16xf32, #tpu.memory_space<vmem>>, %arg7: memref<1x16x1024xbf16, #tpu.memory_space<vmem>>, %arg8: memref<1x1x1024xf32, #tpu.memory_space<vmem>>, %arg9: memref<1x2x1024xbf16, #tpu.memory_space<vmem>>, %arg10: memref<2x16xf32, #tpu.memory_space<vmem>>) attributes {dimension_semantics = [#tpu.dimension_semantics<parallel>, #tpu.dimension_semantics<arbitrary>], iteration_bounds = array<i64: 2, 4>, scalar_prefetch = 0 : i64, scratch_operands = 1 : i64, tpu.core_type = #tpu.core_type<tc>, window_params = [{transform_indices = @transform_0, window_bounds = array<i64: 1, 2, 256>}, {transform_indices = @transform_1, window_bounds = array<i64: 1, 256, 16>}, {transform_indices = @transform_2, window_bounds = array<i64: 1, 1, 16>}, {transform_indices = @transform_3, window_bounds = array<i64: 1, 1, 16>}, {transform_indices = @transform_4, window_bounds = array<i64: 1, 1, 16>}, {transform_indices = @transform_5, window_bounds = array<i64: 1, 16, 1024>}, {transform_indices = @transform_6, window_bounds = array<i64: 1, 1, 1024>}, {transform_indices = @transform_7, window_bounds = array<i64: 1, 2, 1024>}]} {
    %c0_i32 = arith.constant 0 : i32
    %0 = arith.cmpi eq, %arg1, %c0_i32 : i32
    %1 = arith.extui %0 : i1 to i32
    %c0_i32_0 = arith.constant 0 : i32
    %2 = arith.cmpi ne, %1, %c0_i32_0 : i32
    scf.if %2 {
      %cst_11 = arith.constant 0.000000e+00 : f32
      %14 = vector.broadcast %cst_11 : f32 to vector<2x16xf32>
      %c0_12 = arith.constant 0 : index
      %c0_13 = arith.constant 0 : index
      %15 = vector.load %arg10[%c0_12, %c0_13] : memref<2x16xf32, #tpu.memory_space<vmem>>, vector<2x16xf32>
      tpu.vector_store %arg10[%c0_12, %c0_13], %14 {strides = array<i32>} : memref<2x16xf32, #tpu.memory_space<vmem>>, vector<2x16xf32>,
    } else {
    }
    %c0 = arith.constant 0 : index
    %c0_1 = arith.constant 0 : index
    %3 = vector.load %arg10[%c0, %c0_1] : memref<2x16xf32, #tpu.memory_space<vmem>>, vector<2x16xf32>
    %c0_2 = arith.constant 0 : index
    %c0_3 = arith.constant 0 : index
    %c0_4 = arith.constant 0 : index
    %4 = vector.load %arg2[%c0_2, %c0_3, %c0_4] : memref<1x2x256xbf16, #tpu.memory_space<vmem>>, vector<1x2x256xbf16>
    %5 = vector.shape_cast %4 : vector<1x2x256xbf16> to vector<2x256xbf16>
    %c0_5 = arith.constant 0 : index
    %c0_6 = arith.constant 0 : index
    %c0_7 = arith.constant 0 : index
    %6 = vector.load %arg3[%c0_5, %c0_6, %c0_7] : memref<1x256x16xbf16, #tpu.memory_space<vmem>>, vector<1x256x16xbf16>
    %7 = vector.shape_cast %6 : vector<1x256x16xbf16> to vector<256x16xbf16>
    %cst = arith.constant dense<0.000000e+00> : vector<2x16xf32>
    %8 = tpu.matmul %5, %7, %cst {dimension_numbers = #tpu.dot_dimension_numbers<[1], [0], [0], [1], [0, 0, 1, 1], [], []>} : vector<2x256xbf16>, vector<256x16xbf16>, vector<2x16xf32> -> vector<2x16xf32>
    %9 = arith.addf %3, %8 : vector<2x16xf32>
    %c0_8 = arith.constant 0 : index
    %c0_9 = arith.constant 0 : index
    %10 = vector.load %arg10[%c0_8, %c0_9] : memref<2x16xf32, #tpu.memory_space<vmem>>, vector<2x16xf32>
    tpu.vector_store %arg10[%c0_8, %c0_9], %9 {strides = array<i32>} : memref<2x16xf32, #tpu.memory_space<vmem>>, vector<2x16xf32>,
    %c3_i32 = arith.constant 3 : i32
    %11 = arith.cmpi eq, %arg1, %c3_i32 : i32
    %12 = arith.extui %11 : i1 to i32
    %c0_i32_10 = arith.constant 0 : i32
    %13 = arith.cmpi ne, %12, %c0_i32_10 : i32
    scf.if %13 {
      %c0_11 = arith.constant 0 : index
      %c0_12 = arith.constant 0 : index
      %14 = vector.load %arg10[%c0_11, %c0_12] : memref<2x16xf32, #tpu.memory_space<vmem>>, vector<2x16xf32>
      %c0_13 = arith.constant 0 : index
      %c0_14 = arith.constant 0 : index
      %c0_15 = arith.constant 0 : index
      %15 = vector.load %arg4[%c0_13, %c0_14, %c0_15] : memref<1x1x16xf32, #tpu.memory_space<vmem>>, vector<1x1x16xf32>
      %16 = vector.shape_cast %15 : vector<1x1x16xf32> to vector<1x16xf32>
      %17 = vector.broadcast %16 : vector<1x16xf32> to vector<2x16xf32>
      %18 = arith.addf %14, %17 : vector<2x16xf32>
      %c0_16 = arith.constant 0 : index
      %c0_17 = arith.constant 0 : index
      %c0_18 = arith.constant 0 : index
      %19 = vector.load %arg5[%c0_16, %c0_17, %c0_18] : memref<1x1x16xf32, #tpu.memory_space<vmem>>, vector<1x1x16xf32>
      %20 = vector.shape_cast %19 : vector<1x1x16xf32> to vector<1x16xf32>
      %21 = vector.broadcast %20 : vector<1x16xf32> to vector<2x16xf32>
      %22 = arith.mulf %18, %21 : vector<2x16xf32>
      %c0_19 = arith.constant 0 : index
      %c0_20 = arith.constant 0 : index
      %c0_21 = arith.constant 0 : index
      %23 = vector.load %arg6[%c0_19, %c0_20, %c0_21] : memref<1x1x16xf32, #tpu.memory_space<vmem>>, vector<1x1x16xf32>
      %24 = vector.shape_cast %23 : vector<1x1x16xf32> to vector<1x16xf32>
      %25 = vector.broadcast %24 : vector<1x16xf32> to vector<2x16xf32>
      %26 = arith.addf %22, %25 : vector<2x16xf32>
      %cst_22 = arith.constant 0.000000e+00 : f32
      %27 = vector.broadcast %cst_22 : f32 to vector<2x16xf32>
      %28 = arith.maximumf %26, %27 : vector<2x16xf32>
      %29 = arith.truncf %28 : vector<2x16xf32> to vector<2x16xbf16>
      %c0_23 = arith.constant 0 : index
      %c0_24 = arith.constant 0 : index
      %c0_25 = arith.constant 0 : index
      %30 = vector.load %arg7[%c0_23, %c0_24, %c0_25] : memref<1x16x1024xbf16, #tpu.memory_space<vmem>>, vector<1x16x1024xbf16>
      %31 = vector.shape_cast %30 : vector<1x16x1024xbf16> to vector<16x1024xbf16>
      %cst_26 = arith.constant dense<0.000000e+00> : vector<2x1024xf32>
      %32 = tpu.matmul %29, %31, %cst_26 {dimension_numbers = #tpu.dot_dimension_numbers<[1], [0], [0], [1], [0, 0, 1, 1], [], []>} : vector<2x16xbf16>, vector<16x1024xbf16>, vector<2x1024xf32> -> vector<2x1024xf32>
      %c0_27 = arith.constant 0 : index
      %c0_28 = arith.constant 0 : index
      %c0_29 = arith.constant 0 : index
      %33 = vector.load %arg8[%c0_27, %c0_28, %c0_29] : memref<1x1x1024xf32, #tpu.memory_space<vmem>>, vector<1x1x1024xf32>
      %34 = vector.shape_cast %33 : vector<1x1x1024xf32> to vector<1x1024xf32>
      %35 = vector.broadcast %34 : vector<1x1024xf32> to vector<2x1024xf32>
      %36 = arith.addf %32, %35 : vector<2x1024xf32>
      %37 = arith.truncf %36 : vector<2x1024xf32> to vector<2x1024xbf16>
      %c0_30 = arith.constant 0 : index
      %c0_31 = arith.constant 0 : index
      %c0_32 = arith.constant 0 : index
      %38 = vector.load %arg9[%c0_30, %c0_31, %c0_32] : memref<1x2x1024xbf16, #tpu.memory_space<vmem>>, vector<1x2x1024xbf16>
      %39 = vector.shape_cast %38 : vector<1x2x1024xbf16> to vector<2x1024xbf16>
      %40 = vector.shape_cast %37 : vector<2x1024xbf16> to vector<1x2x1024xbf16>
      tpu.vector_store %arg9[%c0_30, %c0_31, %c0_32], %40 {strides = array<i32>} : memref<1x2x1024xbf16, #tpu.memory_space<vmem>>, vector<1x2x1024xbf16>,
    } else {
    }
    return
  }
  func.func @transform_0(%arg0: i32, %arg1: i32) -> (i32, i32, i32) {
    %c0_i32 = arith.constant 0 : i32
    %c0_i32_0 = arith.constant 0 : i32
    return %arg0, %c0_i32, %arg1 : i32, i32, i32
  }
  func.func @transform_1(%arg0: i32, %arg1: i32) -> (i32, i32, i32) {
    %c0_i32 = arith.constant 0 : i32
    %c0_i32_0 = arith.constant 0 : i32
    return %arg0, %arg1, %c0_i32 : i32, i32, i32
  }
  func.func @transform_2(%arg0: i32, %arg1: i32) -> (i32, i32, i32) {
    %c0_i32 = arith.constant 0 : i32
    %c0_i32_0 = arith.constant 0 : i32
    %c0_i32_1 = arith.constant 0 : i32
    return %arg0, %c0_i32, %c0_i32_0 : i32, i32, i32
  }
  func.func @transform_3(%arg0: i32, %arg1: i32) -> (i32, i32, i32) {
    %c0_i32 = arith.constant 0 : i32
    %c0_i32_0 = arith.constant 0 : i32
    %c0_i32_1 = arith.constant 0 : i32
    return %arg0, %c0_i32, %c0_i32_0 : i32, i32, i32
  }
  func.func @transform_4(%arg0: i32, %arg1: i32) -> (i32, i32, i32) {
    %c0_i32 = arith.constant 0 : i32
    %c0_i32_0 = arith.constant 0 : i32
    %c0_i32_1 = arith.constant 0 : i32
    return %arg0, %c0_i32, %c0_i32_0 : i32, i32, i32
  }
  func.func @transform_5(%arg0: i32, %arg1: i32) -> (i32, i32, i32) {
    %c0_i32 = arith.constant 0 : i32
    %c0_i32_0 = arith.constant 0 : i32
    %c0_i32_1 = arith.constant 0 : i32
    return %arg0, %c0_i32, %c0_i32_0 : i32, i32, i32
  }
  func.func @transform_6(%arg0: i32, %arg1: i32) -> (i32, i32, i32) {
    %c0_i32 = arith.constant 0 : i32
    %c0_i32_0 = arith.constant 0 : i32
    %c0_i32_1 = arith.constant 0 : i32
    return %arg0, %c0_i32, %c0_i32_0 : i32, i32, i32
  }
  func.func @transform_7(%arg0: i32, %arg1: i32) -> (i32, i32, i32) {
    %c0_i32 = arith.constant 0 : i32
    %c0_i32_0 = arith.constant 0 : i32
    %c0_i32_1 = arith.constant 0 : i32
    return %arg0, %c0_i32, %c0_i32_0 : i32, i32, i32
  }
}

module attributes {stable_mosaic.version = 11 : i64} {
  func.func @_attn_probs_kernel(%arg0: i32, %arg1: memref<1x32x32xbf16, #tpu.memory_space<vmem>>, %arg2: memref<1x32x32xbf16, #tpu.memory_space<vmem>>, %arg3: memref<1x32x4xf32, #tpu.memory_space<vmem>>, %arg4: memref<1x4x32x32xf32, #tpu.memory_space<vmem>>) attributes {dimension_semantics = [#tpu.dimension_semantics<parallel>], iteration_bounds = array<i64: 2>, scalar_prefetch = 0 : i64, scratch_operands = 0 : i64, tpu.core_type = #tpu.core_type<tc>, window_params = [{transform_indices = @transform_0, window_bounds = array<i64: 1, 32, 32>}, {transform_indices = @transform_1, window_bounds = array<i64: 1, 32, 32>}, {transform_indices = @transform_2, window_bounds = array<i64: 1, 32, 4>}, {transform_indices = @transform_3, window_bounds = array<i64: 1, 4, 32, 32>}]} {
    %c0 = arith.constant 0 : index
    %c0_0 = arith.constant 0 : index
    %c0_1 = arith.constant 0 : index
    %0 = vector.load %arg1[%c0, %c0_0, %c0_1] : memref<1x32x32xbf16, #tpu.memory_space<vmem>>, vector<1x32x32xbf16>
    %1 = vector.shape_cast %0 : vector<1x32x32xbf16> to vector<32x32xbf16>
    %c0_2 = arith.constant 0 : index
    %c0_3 = arith.constant 0 : index
    %c0_4 = arith.constant 0 : index
    %2 = vector.load %arg2[%c0_2, %c0_3, %c0_4] : memref<1x32x32xbf16, #tpu.memory_space<vmem>>, vector<1x32x32xbf16>
    %3 = vector.shape_cast %2 : vector<1x32x32xbf16> to vector<32x32xbf16>
    %c0_5 = arith.constant 0 : index
    %c0_6 = arith.constant 0 : index
    %c0_7 = arith.constant 0 : index
    %4 = vector.load %arg3[%c0_5, %c0_6, %c0_7] : memref<1x32x4xf32, #tpu.memory_space<vmem>>, vector<1x32x4xf32>
    %5 = vector.shape_cast %4 : vector<1x32x4xf32> to vector<32x4xf32>
    %6 = vector.extract_strided_slice %1 {offsets = [0, 0], sizes = [32, 8], strides = [1, 1]} : vector<32x32xbf16> to vector<32x8xbf16>
    %7 = vector.extract_strided_slice %3 {offsets = [0, 0], sizes = [32, 8], strides = [1, 1]} : vector<32x32xbf16> to vector<32x8xbf16>
    %cst = arith.constant dense<0.000000e+00> : vector<32x32xf32>
    %8 = tpu.matmul %6, %7, %cst {dimension_numbers = #tpu.dot_dimension_numbers<[1], [1], [0], [0], [0, 0, 1, 0], [], []>} : vector<32x8xbf16>, vector<32x8xbf16>, vector<32x32xf32> -> vector<32x32xf32>
    %9 = vector.extract_strided_slice %5 {offsets = [0, 0], sizes = [32, 1], strides = [1, 1]} : vector<32x4xf32> to vector<32x1xf32>
    %10 = vector.broadcast %9 : vector<32x1xf32> to vector<32x32xf32>
    %11 = arith.subf %8, %10 : vector<32x32xf32>
    %12 = math.exp %11 : vector<32x32xf32>
    %c0_8 = arith.constant 0 : index
    %c0_9 = arith.constant 0 : index
    %c0_10 = arith.constant 0 : index
    %c0_11 = arith.constant 0 : index
    %13 = vector.load %arg4[%c0_8, %c0_9, %c0_10, %c0_11] : memref<1x4x32x32xf32, #tpu.memory_space<vmem>>, vector<1x1x32x32xf32>
    %14 = vector.shape_cast %13 : vector<1x1x32x32xf32> to vector<32x32xf32>
    %15 = vector.shape_cast %12 : vector<32x32xf32> to vector<1x1x32x32xf32>
    tpu.vector_store %arg4[%c0_8, %c0_9, %c0_10, %c0_11], %15 {strides = array<i32>} : memref<1x4x32x32xf32, #tpu.memory_space<vmem>>, vector<1x1x32x32xf32>,
    %16 = vector.extract_strided_slice %1 {offsets = [0, 8], sizes = [32, 8], strides = [1, 1]} : vector<32x32xbf16> to vector<32x8xbf16>
    %17 = vector.extract_strided_slice %3 {offsets = [0, 8], sizes = [32, 8], strides = [1, 1]} : vector<32x32xbf16> to vector<32x8xbf16>
    %cst_12 = arith.constant dense<0.000000e+00> : vector<32x32xf32>
    %18 = tpu.matmul %16, %17, %cst_12 {dimension_numbers = #tpu.dot_dimension_numbers<[1], [1], [0], [0], [0, 0, 1, 0], [], []>} : vector<32x8xbf16>, vector<32x8xbf16>, vector<32x32xf32> -> vector<32x32xf32>
    %19 = vector.extract_strided_slice %5 {offsets = [0, 1], sizes = [32, 1], strides = [1, 1]} : vector<32x4xf32> to vector<32x1xf32>
    %20 = vector.broadcast %19 : vector<32x1xf32> to vector<32x32xf32>
    %21 = arith.subf %18, %20 : vector<32x32xf32>
    %22 = math.exp %21 : vector<32x32xf32>
    %c0_13 = arith.constant 0 : index
    %c1 = arith.constant 1 : index
    %c0_14 = arith.constant 0 : index
    %c0_15 = arith.constant 0 : index
    %23 = vector.load %arg4[%c0_13, %c1, %c0_14, %c0_15] : memref<1x4x32x32xf32, #tpu.memory_space<vmem>>, vector<1x1x32x32xf32>
    %24 = vector.shape_cast %23 : vector<1x1x32x32xf32> to vector<32x32xf32>
    %25 = vector.shape_cast %22 : vector<32x32xf32> to vector<1x1x32x32xf32>
    tpu.vector_store %arg4[%c0_13, %c1, %c0_14, %c0_15], %25 {strides = array<i32>} : memref<1x4x32x32xf32, #tpu.memory_space<vmem>>, vector<1x1x32x32xf32>,
    %26 = vector.extract_strided_slice %1 {offsets = [0, 16], sizes = [32, 8], strides = [1, 1]} : vector<32x32xbf16> to vector<32x8xbf16>
    %27 = vector.extract_strided_slice %3 {offsets = [0, 16], sizes = [32, 8], strides = [1, 1]} : vector<32x32xbf16> to vector<32x8xbf16>
    %cst_16 = arith.constant dense<0.000000e+00> : vector<32x32xf32>
    %28 = tpu.matmul %26, %27, %cst_16 {dimension_numbers = #tpu.dot_dimension_numbers<[1], [1], [0], [0], [0, 0, 1, 0], [], []>} : vector<32x8xbf16>, vector<32x8xbf16>, vector<32x32xf32> -> vector<32x32xf32>
    %29 = vector.extract_strided_slice %5 {offsets = [0, 2], sizes = [32, 1], strides = [1, 1]} : vector<32x4xf32> to vector<32x1xf32>
    %30 = vector.broadcast %29 : vector<32x1xf32> to vector<32x32xf32>
    %31 = arith.subf %28, %30 : vector<32x32xf32>
    %32 = math.exp %31 : vector<32x32xf32>
    %c0_17 = arith.constant 0 : index
    %c2 = arith.constant 2 : index
    %c0_18 = arith.constant 0 : index
    %c0_19 = arith.constant 0 : index
    %33 = vector.load %arg4[%c0_17, %c2, %c0_18, %c0_19] : memref<1x4x32x32xf32, #tpu.memory_space<vmem>>, vector<1x1x32x32xf32>
    %34 = vector.shape_cast %33 : vector<1x1x32x32xf32> to vector<32x32xf32>
    %35 = vector.shape_cast %32 : vector<32x32xf32> to vector<1x1x32x32xf32>
    tpu.vector_store %arg4[%c0_17, %c2, %c0_18, %c0_19], %35 {strides = array<i32>} : memref<1x4x32x32xf32, #tpu.memory_space<vmem>>, vector<1x1x32x32xf32>,
    %36 = vector.extract_strided_slice %1 {offsets = [0, 24], sizes = [32, 8], strides = [1, 1]} : vector<32x32xbf16> to vector<32x8xbf16>
    %37 = vector.extract_strided_slice %3 {offsets = [0, 24], sizes = [32, 8], strides = [1, 1]} : vector<32x32xbf16> to vector<32x8xbf16>
    %cst_20 = arith.constant dense<0.000000e+00> : vector<32x32xf32>
    %38 = tpu.matmul %36, %37, %cst_20 {dimension_numbers = #tpu.dot_dimension_numbers<[1], [1], [0], [0], [0, 0, 1, 0], [], []>} : vector<32x8xbf16>, vector<32x8xbf16>, vector<32x32xf32> -> vector<32x32xf32>
    %39 = vector.extract_strided_slice %5 {offsets = [0, 3], sizes = [32, 1], strides = [1, 1]} : vector<32x4xf32> to vector<32x1xf32>
    %40 = vector.broadcast %39 : vector<32x1xf32> to vector<32x32xf32>
    %41 = arith.subf %38, %40 : vector<32x32xf32>
    %42 = math.exp %41 : vector<32x32xf32>
    %c0_21 = arith.constant 0 : index
    %c3 = arith.constant 3 : index
    %c0_22 = arith.constant 0 : index
    %c0_23 = arith.constant 0 : index
    %43 = vector.load %arg4[%c0_21, %c3, %c0_22, %c0_23] : memref<1x4x32x32xf32, #tpu.memory_space<vmem>>, vector<1x1x32x32xf32>
    %44 = vector.shape_cast %43 : vector<1x1x32x32xf32> to vector<32x32xf32>
    %45 = vector.shape_cast %42 : vector<32x32xf32> to vector<1x1x32x32xf32>
    tpu.vector_store %arg4[%c0_21, %c3, %c0_22, %c0_23], %45 {strides = array<i32>} : memref<1x4x32x32xf32, #tpu.memory_space<vmem>>, vector<1x1x32x32xf32>,
    return
  }
  func.func @transform_0(%arg0: i32) -> (i32, i32, i32) {
    %c0_i32 = arith.constant 0 : i32
    %c0_i32_0 = arith.constant 0 : i32
    %c0_i32_1 = arith.constant 0 : i32
    return %arg0, %c0_i32, %c0_i32_0 : i32, i32, i32
  }
  func.func @transform_1(%arg0: i32) -> (i32, i32, i32) {
    %c0_i32 = arith.constant 0 : i32
    %c0_i32_0 = arith.constant 0 : i32
    %c0_i32_1 = arith.constant 0 : i32
    return %arg0, %c0_i32, %c0_i32_0 : i32, i32, i32
  }
  func.func @transform_2(%arg0: i32) -> (i32, i32, i32) {
    %c0_i32 = arith.constant 0 : i32
    %c0_i32_0 = arith.constant 0 : i32
    %c0_i32_1 = arith.constant 0 : i32
    return %arg0, %c0_i32, %c0_i32_0 : i32, i32, i32
  }
  func.func @transform_3(%arg0: i32) -> (i32, i32, i32, i32) {
    %c0_i32 = arith.constant 0 : i32
    %c0_i32_0 = arith.constant 0 : i32
    %c0_i32_1 = arith.constant 0 : i32
    %c0_i32_2 = arith.constant 0 : i32
    return %arg0, %c0_i32, %c0_i32_0, %c0_i32_1 : i32, i32, i32, i32
  }
}

module attributes {stable_mosaic.version = 11 : i64} {
  func.func @_flash_attn_ffn_kernel(%arg0: i32, %arg1: i32, %arg2: memref<1x32x32xbf16, #tpu.memory_space<vmem>>, %arg3: memref<1x16x32xbf16, #tpu.memory_space<vmem>>, %arg4: memref<1x16x32xbf16, #tpu.memory_space<vmem>>, %arg5: memref<1x32x32xf32, #tpu.memory_space<vmem>>, %arg6: memref<32x32xbf16, #tpu.memory_space<vmem>>, %arg7: memref<1x32xf32, #tpu.memory_space<vmem>>, %arg8: memref<1x32xf32, #tpu.memory_space<vmem>>, %arg9: memref<1x32xf32, #tpu.memory_space<vmem>>, %arg10: memref<32x64xbf16, #tpu.memory_space<vmem>>, %arg11: memref<1x64xf32, #tpu.memory_space<vmem>>, %arg12: memref<64x32xbf16, #tpu.memory_space<vmem>>, %arg13: memref<1x32xf32, #tpu.memory_space<vmem>>, %arg14: memref<1x32x32xf32, #tpu.memory_space<vmem>>, %arg15: memref<1x32x4xf32, #tpu.memory_space<vmem>>, %arg16: memref<32x4xf32, #tpu.memory_space<vmem>>, %arg17: memref<32x4xf32, #tpu.memory_space<vmem>>, %arg18: memref<32x32xf32, #tpu.memory_space<vmem>>) attributes {dimension_semantics = [#tpu.dimension_semantics<parallel>, #tpu.dimension_semantics<arbitrary>], iteration_bounds = array<i64: 2, 2>, scalar_prefetch = 0 : i64, scratch_operands = 3 : i64, tpu.core_type = #tpu.core_type<tc>, window_params = [{transform_indices = @transform_0, window_bounds = array<i64: 1, 32, 32>}, {transform_indices = @transform_1, window_bounds = array<i64: 1, 16, 32>}, {transform_indices = @transform_2, window_bounds = array<i64: 1, 16, 32>}, {transform_indices = @transform_3, window_bounds = array<i64: 1, 32, 32>}, {pipeline_mode = #tpu.pipeline_mode<synchronous>, transform_indices = @transform_4, window_bounds = array<i64: 32, 32>}, {pipeline_mode = #tpu.pipeline_mode<synchronous>, transform_indices = @transform_5, window_bounds = array<i64: 1, 32>}, {pipeline_mode = #tpu.pipeline_mode<synchronous>, transform_indices = @transform_6, window_bounds = array<i64: 1, 32>}, {pipeline_mode = #tpu.pipeline_mode<synchronous>, transform_indices = @transform_7, window_bounds = array<i64: 1, 32>}, {pipeline_mode = #tpu.pipeline_mode<synchronous>, transform_indices = @transform_8, window_bounds = array<i64: 32, 64>}, {pipeline_mode = #tpu.pipeline_mode<synchronous>, transform_indices = @transform_9, window_bounds = array<i64: 1, 64>}, {pipeline_mode = #tpu.pipeline_mode<synchronous>, transform_indices = @transform_10, window_bounds = array<i64: 64, 32>}, {pipeline_mode = #tpu.pipeline_mode<synchronous>, transform_indices = @transform_11, window_bounds = array<i64: 1, 32>}, {transform_indices = @transform_12, window_bounds = array<i64: 1, 32, 32>}, {transform_indices = @transform_13, window_bounds = array<i64: 1, 32, 4>}]} {
    %c0_i32 = arith.constant 0 : i32
    %0 = arith.cmpi eq, %arg1, %c0_i32 : i32
    %1 = arith.extui %0 : i1 to i32
    %c0_i32_0 = arith.constant 0 : i32
    %2 = arith.cmpi ne, %1, %c0_i32_0 : i32
    scf.if %2 {
      %cst_37 = arith.constant 0xFF800000 : f32
      %117 = vector.broadcast %cst_37 : f32 to vector<32x4xf32>
      %c0_38 = arith.constant 0 : index
      %c0_39 = arith.constant 0 : index
      %118 = vector.load %arg16[%c0_38, %c0_39] : memref<32x4xf32, #tpu.memory_space<vmem>>, vector<32x4xf32>
      tpu.vector_store %arg16[%c0_38, %c0_39], %117 {strides = array<i32>} : memref<32x4xf32, #tpu.memory_space<vmem>>, vector<32x4xf32>,
      %cst_40 = arith.constant 0.000000e+00 : f32
      %119 = vector.broadcast %cst_40 : f32 to vector<32x4xf32>
      %c0_41 = arith.constant 0 : index
      %c0_42 = arith.constant 0 : index
      %120 = vector.load %arg17[%c0_41, %c0_42] : memref<32x4xf32, #tpu.memory_space<vmem>>, vector<32x4xf32>
      tpu.vector_store %arg17[%c0_41, %c0_42], %119 {strides = array<i32>} : memref<32x4xf32, #tpu.memory_space<vmem>>, vector<32x4xf32>,
      %cst_43 = arith.constant 0.000000e+00 : f32
      %121 = vector.broadcast %cst_43 : f32 to vector<32x32xf32>
      %c0_44 = arith.constant 0 : index
      %c0_45 = arith.constant 0 : index
      %122 = vector.load %arg18[%c0_44, %c0_45] : memref<32x32xf32, #tpu.memory_space<vmem>>, vector<32x32xf32>
      tpu.vector_store %arg18[%c0_44, %c0_45], %121 {strides = array<i32>} : memref<32x32xf32, #tpu.memory_space<vmem>>, vector<32x32xf32>,
    } else {
    }
    %c0 = arith.constant 0 : index
    %c0_1 = arith.constant 0 : index
    %c0_2 = arith.constant 0 : index
    %3 = vector.load %arg2[%c0, %c0_1, %c0_2] : memref<1x32x32xbf16, #tpu.memory_space<vmem>>, vector<1x32x32xbf16>
    %4 = vector.shape_cast %3 : vector<1x32x32xbf16> to vector<32x32xbf16>
    %c0_3 = arith.constant 0 : index
    %c0_4 = arith.constant 0 : index
    %c0_5 = arith.constant 0 : index
    %5 = vector.load %arg3[%c0_3, %c0_4, %c0_5] : memref<1x16x32xbf16, #tpu.memory_space<vmem>>, vector<1x16x32xbf16>
    %6 = vector.shape_cast %5 : vector<1x16x32xbf16> to vector<16x32xbf16>
    %c0_6 = arith.constant 0 : index
    %c0_7 = arith.constant 0 : index
    %c0_8 = arith.constant 0 : index
    %7 = vector.load %arg4[%c0_6, %c0_7, %c0_8] : memref<1x16x32xbf16, #tpu.memory_space<vmem>>, vector<1x16x32xbf16>
    %8 = vector.shape_cast %7 : vector<1x16x32xbf16> to vector<16x32xbf16>
    %c0_9 = arith.constant 0 : index
    %c0_10 = arith.constant 0 : index
    %9 = vector.load %arg16[%c0_9, %c0_10] : memref<32x4xf32, #tpu.memory_space<vmem>>, vector<32x4xf32>
    %c0_11 = arith.constant 0 : index
    %c0_12 = arith.constant 0 : index
    %10 = vector.load %arg17[%c0_11, %c0_12] : memref<32x4xf32, #tpu.memory_space<vmem>>, vector<32x4xf32>
    %c0_13 = arith.constant 0 : index
    %c0_14 = arith.constant 0 : index
    %11 = vector.load %arg18[%c0_13, %c0_14] : memref<32x32xf32, #tpu.memory_space<vmem>>, vector<32x32xf32>
    %12 = vector.extract_strided_slice %4 {offsets = [0, 0], sizes = [32, 8], strides = [1, 1]} : vector<32x32xbf16> to vector<32x8xbf16>
    %13 = vector.extract_strided_slice %6 {offsets = [0, 0], sizes = [16, 8], strides = [1, 1]} : vector<16x32xbf16> to vector<16x8xbf16>
    %cst = arith.constant dense<0.000000e+00> : vector<32x16xf32>
    %14 = tpu.matmul %12, %13, %cst {dimension_numbers = #tpu.dot_dimension_numbers<[1], [1], [0], [0], [0, 0, 1, 0], [], []>} : vector<32x8xbf16>, vector<16x8xbf16>, vector<32x16xf32> -> vector<32x16xf32>
    %15 = vector.extract_strided_slice %9 {offsets = [0, 0], sizes = [32, 1], strides = [1, 1]} : vector<32x4xf32> to vector<32x1xf32>
    %cst_15 = arith.constant dense<0xFF800000> : vector<32xf32>
    %16 = vector.multi_reduction <maximumf>, %14, %cst_15 [1] : vector<32x16xf32> to vector<32xf32>
    %17 = vector.shape_cast %16 : vector<32xf32> to vector<32x1xf32>
    %18 = arith.maximumf %15, %17 : vector<32x1xf32>
    %19 = arith.subf %15, %18 : vector<32x1xf32>
    %20 = math.exp %19 : vector<32x1xf32>
    %21 = vector.broadcast %18 : vector<32x1xf32> to vector<32x16xf32>
    %22 = arith.subf %14, %21 : vector<32x16xf32>
    %23 = math.exp %22 : vector<32x16xf32>
    %24 = vector.extract_strided_slice %10 {offsets = [0, 0], sizes = [32, 1], strides = [1, 1]} : vector<32x4xf32> to vector<32x1xf32>
    %25 = arith.mulf %20, %24 : vector<32x1xf32>
    %cst_16 = arith.constant dense<0.000000e+00> : vector<32xf32>
    %26 = vector.multi_reduction <add>, %23, %cst_16 [1] : vector<32x16xf32> to vector<32xf32>
    %27 = vector.shape_cast %26 : vector<32xf32> to vector<32x1xf32>
    %28 = arith.addf %25, %27 : vector<32x1xf32>
    %29 = vector.extract_strided_slice %11 {offsets = [0, 0], sizes = [32, 8], strides = [1, 1]} : vector<32x32xf32> to vector<32x8xf32>
    %30 = vector.broadcast %20 : vector<32x1xf32> to vector<32x8xf32>
    %31 = arith.mulf %30, %29 : vector<32x8xf32>
    %32 = arith.truncf %23 : vector<32x16xf32> to vector<32x16xbf16>
    %33 = vector.extract_strided_slice %8 {offsets = [0, 0], sizes = [16, 8], strides = [1, 1]} : vector<16x32xbf16> to vector<16x8xbf16>
    %cst_17 = arith.constant dense<0.000000e+00> : vector<32x8xf32>
    %34 = tpu.matmul %32, %33, %cst_17 {dimension_numbers = #tpu.dot_dimension_numbers<[1], [0], [0], [1], [0, 0, 1, 1], [], []>} : vector<32x16xbf16>, vector<16x8xbf16>, vector<32x8xf32> -> vector<32x8xf32>
    %35 = arith.addf %31, %34 : vector<32x8xf32>
    %36 = vector.extract_strided_slice %4 {offsets = [0, 8], sizes = [32, 8], strides = [1, 1]} : vector<32x32xbf16> to vector<32x8xbf16>
    %37 = vector.extract_strided_slice %6 {offsets = [0, 8], sizes = [16, 8], strides = [1, 1]} : vector<16x32xbf16> to vector<16x8xbf16>
    %cst_18 = arith.constant dense<0.000000e+00> : vector<32x16xf32>
    %38 = tpu.matmul %36, %37, %cst_18 {dimension_numbers = #tpu.dot_dimension_numbers<[1], [1], [0], [0], [0, 0, 1, 0], [], []>} : vector<32x8xbf16>, vector<16x8xbf16>, vector<32x16xf32> -> vector<32x16xf32>
    %39 = vector.extract_strided_slice %9 {offsets = [0, 1], sizes = [32, 1], strides = [1, 1]} : vector<32x4xf32> to vector<32x1xf32>
    %cst_19 = arith.constant dense<0xFF800000> : vector<32xf32>
    %40 = vector.multi_reduction <maximumf>, %38, %cst_19 [1] : vector<32x16xf32> to vector<32xf32>
    %41 = vector.shape_cast %40 : vector<32xf32> to vector<32x1xf32>
    %42 = arith.maximumf %39, %41 : vector<32x1xf32>
    %43 = arith.subf %39, %42 : vector<32x1xf32>
    %44 = math.exp %43 : vector<32x1xf32>
    %45 = vector.broadcast %42 : vector<32x1xf32> to vector<32x16xf32>
    %46 = arith.subf %38, %45 : vector<32x16xf32>
    %47 = math.exp %46 : vector<32x16xf32>
    %48 = vector.extract_strided_slice %10 {offsets = [0, 1], sizes = [32, 1], strides = [1, 1]} : vector<32x4xf32> to vector<32x1xf32>
    %49 = arith.mulf %44, %48 : vector<32x1xf32>
    %cst_20 = arith.constant dense<0.000000e+00> : vector<32xf32>
    %50 = vector.multi_reduction <add>, %47, %cst_20 [1] : vector<32x16xf32> to vector<32xf32>
    %51 = vector.shape_cast %50 : vector<32xf32> to vector<32x1xf32>
    %52 = arith.addf %49, %51 : vector<32x1xf32>
    %53 = vector.extract_strided_slice %11 {offsets = [0, 8], sizes = [32, 8], strides = [1, 1]} : vector<32x32xf32> to vector<32x8xf32>
    %54 = vector.broadcast %44 : vector<32x1xf32> to vector<32x8xf32>
    %55 = arith.mulf %54, %53 : vector<32x8xf32>
    %56 = arith.truncf %47 : vector<32x16xf32> to vector<32x16xbf16>
    %57 = vector.extract_strided_slice %8 {offsets = [0, 8], sizes = [16, 8], strides = [1, 1]} : vector<16x32xbf16> to vector<16x8xbf16>
    %cst_21 = arith.constant dense<0.000000e+00> : vector<32x8xf32>
    %58 = tpu.matmul %56, %57, %cst_21 {dimension_numbers = #tpu.dot_dimension_numbers<[1], [0], [0], [1], [0, 0, 1, 1], [], []>} : vector<32x16xbf16>, vector<16x8xbf16>, vector<32x8xf32> -> vector<32x8xf32>
    %59 = arith.addf %55, %58 : vector<32x8xf32>
    %60 = vector.extract_strided_slice %4 {offsets = [0, 16], sizes = [32, 8], strides = [1, 1]} : vector<32x32xbf16> to vector<32x8xbf16>
    %61 = vector.extract_strided_slice %6 {offsets = [0, 16], sizes = [16, 8], strides = [1, 1]} : vector<16x32xbf16> to vector<16x8xbf16>
    %cst_22 = arith.constant dense<0.000000e+00> : vector<32x16xf32>
    %62 = tpu.matmul %60, %61, %cst_22 {dimension_numbers = #tpu.dot_dimension_numbers<[1], [1], [0], [0], [0, 0, 1, 0], [], []>} : vector<32x8xbf16>, vector<16x8xbf16>, vector<32x16xf32> -> vector<32x16xf32>
    %63 = vector.extract_strided_slice %9 {offsets = [0, 2], sizes = [32, 1], strides = [1, 1]} : vector<32x4xf32> to vector<32x1xf32>
    %cst_23 = arith.constant dense<0xFF800000> : vector<32xf32>
    %64 = vector.multi_reduction <maximumf>, %62, %cst_23 [1] : vector<32x16xf32> to vector<32xf32>
    %65 = vector.shape_cast %64 : vector<32xf32> to vector<32x1xf32>
    %66 = arith.maximumf %63, %65 : vector<32x1xf32>
    %67 = arith.subf %63, %66 : vector<32x1xf32>
    %68 = math.exp %67 : vector<32x1xf32>
    %69 = vector.broadcast %66 : vector<32x1xf32> to vector<32x16xf32>
    %70 = arith.subf %62, %69 : vector<32x16xf32>
    %71 = math.exp %70 : vector<32x16xf32>
    %72 = vector.extract_strided_slice %10 {offsets = [0, 2], sizes = [32, 1], strides = [1, 1]} : vector<32x4xf32> to vector<32x1xf32>
    %73 = arith.mulf %68, %72 : vector<32x1xf32>
    %cst_24 = arith.constant dense<0.000000e+00> : vector<32xf32>
    %74 = vector.multi_reduction <add>, %71, %cst_24 [1] : vector<32x16xf32> to vector<32xf32>
    %75 = vector.shape_cast %74 : vector<32xf32> to vector<32x1xf32>
    %76 = arith.addf %73, %75 : vector<32x1xf32>
    %77 = vector.extract_strided_slice %11 {offsets = [0, 16], sizes = [32, 8], strides = [1, 1]} : vector<32x32xf32> to vector<32x8xf32>
    %78 = vector.broadcast %68 : vector<32x1xf32> to vector<32x8xf32>
    %79 = arith.mulf %78, %77 : vector<32x8xf32>
    %80 = arith.truncf %71 : vector<32x16xf32> to vector<32x16xbf16>
    %81 = vector.extract_strided_slice %8 {offsets = [0, 16], sizes = [16, 8], strides = [1, 1]} : vector<16x32xbf16> to vector<16x8xbf16>
    %cst_25 = arith.constant dense<0.000000e+00> : vector<32x8xf32>
    %82 = tpu.matmul %80, %81, %cst_25 {dimension_numbers = #tpu.dot_dimension_numbers<[1], [0], [0], [1], [0, 0, 1, 1], [], []>} : vector<32x16xbf16>, vector<16x8xbf16>, vector<32x8xf32> -> vector<32x8xf32>
    %83 = arith.addf %79, %82 : vector<32x8xf32>
    %84 = vector.extract_strided_slice %4 {offsets = [0, 24], sizes = [32, 8], strides = [1, 1]} : vector<32x32xbf16> to vector<32x8xbf16>
    %85 = vector.extract_strided_slice %6 {offsets = [0, 24], sizes = [16, 8], strides = [1, 1]} : vector<16x32xbf16> to vector<16x8xbf16>
    %cst_26 = arith.constant dense<0.000000e+00> : vector<32x16xf32>
    %86 = tpu.matmul %84, %85, %cst_26 {dimension_numbers = #tpu.dot_dimension_numbers<[1], [1], [0], [0], [0, 0, 1, 0], [], []>} : vector<32x8xbf16>, vector<16x8xbf16>, vector<32x16xf32> -> vector<32x16xf32>
    %87 = vector.extract_strided_slice %9 {offsets = [0, 3], sizes = [32, 1], strides = [1, 1]} : vector<32x4xf32> to vector<32x1xf32>
    %cst_27 = arith.constant dense<0xFF800000> : vector<32xf32>
    %88 = vector.multi_reduction <maximumf>, %86, %cst_27 [1] : vector<32x16xf32> to vector<32xf32>
    %89 = vector.shape_cast %88 : vector<32xf32> to vector<32x1xf32>
    %90 = arith.maximumf %87, %89 : vector<32x1xf32>
    %91 = arith.subf %87, %90 : vector<32x1xf32>
    %92 = math.exp %91 : vector<32x1xf32>
    %93 = vector.broadcast %90 : vector<32x1xf32> to vector<32x16xf32>
    %94 = arith.subf %86, %93 : vector<32x16xf32>
    %95 = math.exp %94 : vector<32x16xf32>
    %96 = vector.extract_strided_slice %10 {offsets = [0, 3], sizes = [32, 1], strides = [1, 1]} : vector<32x4xf32> to vector<32x1xf32>
    %97 = arith.mulf %92, %96 : vector<32x1xf32>
    %cst_28 = arith.constant dense<0.000000e+00> : vector<32xf32>
    %98 = vector.multi_reduction <add>, %95, %cst_28 [1] : vector<32x16xf32> to vector<32xf32>
    %99 = vector.shape_cast %98 : vector<32xf32> to vector<32x1xf32>
    %100 = arith.addf %97, %99 : vector<32x1xf32>
    %101 = vector.extract_strided_slice %11 {offsets = [0, 24], sizes = [32, 8], strides = [1, 1]} : vector<32x32xf32> to vector<32x8xf32>
    %102 = vector.broadcast %92 : vector<32x1xf32> to vector<32x8xf32>
    %103 = arith.mulf %102, %101 : vector<32x8xf32>
    %104 = arith.truncf %95 : vector<32x16xf32> to vector<32x16xbf16>
    %105 = vector.extract_strided_slice %8 {offsets = [0, 24], sizes = [16, 8], strides = [1, 1]} : vector<16x32xbf16> to vector<16x8xbf16>
    %cst_29 = arith.constant dense<0.000000e+00> : vector<32x8xf32>
    %106 = tpu.matmul %104, %105, %cst_29 {dimension_numbers = #tpu.dot_dimension_numbers<[1], [0], [0], [1], [0, 0, 1, 1], [], []>} : vector<32x16xbf16>, vector<16x8xbf16>, vector<32x8xf32> -> vector<32x8xf32>
    %107 = arith.addf %103, %106 : vector<32x8xf32>
    %108 = tpu.concatenate %18, %42, %66, %90 in 1 : vector<32x1xf32>, vector<32x1xf32>, vector<32x1xf32>, vector<32x1xf32> -> vector<32x4xf32>
    %c0_30 = arith.constant 0 : index
    %c0_31 = arith.constant 0 : index
    %109 = vector.load %arg16[%c0_30, %c0_31] : memref<32x4xf32, #tpu.memory_space<vmem>>, vector<32x4xf32>
    tpu.vector_store %arg16[%c0_30, %c0_31], %108 {strides = array<i32>} : memref<32x4xf32, #tpu.memory_space<vmem>>, vector<32x4xf32>,
    %110 = tpu.concatenate %28, %52, %76, %100 in 1 : vector<32x1xf32>, vector<32x1xf32>, vector<32x1xf32>, vector<32x1xf32> -> vector<32x4xf32>
    %c0_32 = arith.constant 0 : index
    %c0_33 = arith.constant 0 : index
    %111 = vector.load %arg17[%c0_32, %c0_33] : memref<32x4xf32, #tpu.memory_space<vmem>>, vector<32x4xf32>
    tpu.vector_store %arg17[%c0_32, %c0_33], %110 {strides = array<i32>} : memref<32x4xf32, #tpu.memory_space<vmem>>, vector<32x4xf32>,
    %112 = tpu.concatenate %35, %59, %83, %107 in 1 : vector<32x8xf32>, vector<32x8xf32>, vector<32x8xf32>, vector<32x8xf32> -> vector<32x32xf32>
    %c0_34 = arith.constant 0 : index
    %c0_35 = arith.constant 0 : index
    %113 = vector.load %arg18[%c0_34, %c0_35] : memref<32x32xf32, #tpu.memory_space<vmem>>, vector<32x32xf32>
    tpu.vector_store %arg18[%c0_34, %c0_35], %112 {strides = array<i32>} : memref<32x32xf32, #tpu.memory_space<vmem>>, vector<32x32xf32>,
    %c1_i32 = arith.constant 1 : i32
    %114 = arith.cmpi eq, %arg1, %c1_i32 : i32
    %115 = arith.extui %114 : i1 to i32
    %c0_i32_36 = arith.constant 0 : i32
    %116 = arith.cmpi ne, %115, %c0_i32_36 : i32
    scf.if %116 {
      %c0_37 = arith.constant 0 : index
      %c0_38 = arith.constant 0 : index
      %117 = vector.load %arg17[%c0_37, %c0_38] : memref<32x4xf32, #tpu.memory_space<vmem>>, vector<32x4xf32>
      %118 = tpu.reciprocal %117 {approx = true} : vector<32x4xf32> -> vector<32x4xf32>
      %c0_39 = arith.constant 0 : index
      %c0_40 = arith.constant 0 : index
      %119 = vector.load %arg18[%c0_39, %c0_40] : memref<32x32xf32, #tpu.memory_space<vmem>>, vector<32x32xf32>
      %120 = vector.extract_strided_slice %119 {offsets = [0, 0], sizes = [32, 8], strides = [1, 1]} : vector<32x32xf32> to vector<32x8xf32>
      %121 = vector.extract_strided_slice %118 {offsets = [0, 0], sizes = [32, 1], strides = [1, 1]} : vector<32x4xf32> to vector<32x1xf32>
      %122 = vector.broadcast %121 : vector<32x1xf32> to vector<32x8xf32>
      %123 = arith.mulf %120, %122 : vector<32x8xf32>
      %124 = vector.extract_strided_slice %119 {offsets = [0, 8], sizes = [32, 8], strides = [1, 1]} : vector<32x32xf32> to vector<32x8xf32>
      %125 = vector.extract_strided_slice %118 {offsets = [0, 1], sizes = [32, 1], strides = [1, 1]} : vector<32x4xf32> to vector<32x1xf32>
      %126 = vector.broadcast %125 : vector<32x1xf32> to vector<32x8xf32>
      %127 = arith.mulf %124, %126 : vector<32x8xf32>
      %128 = vector.extract_strided_slice %119 {offsets = [0, 16], sizes = [32, 8], strides = [1, 1]} : vector<32x32xf32> to vector<32x8xf32>
      %129 = vector.extract_strided_slice %118 {offsets = [0, 2], sizes = [32, 1], strides = [1, 1]} : vector<32x4xf32> to vector<32x1xf32>
      %130 = vector.broadcast %129 : vector<32x1xf32> to vector<32x8xf32>
      %131 = arith.mulf %128, %130 : vector<32x8xf32>
      %132 = vector.extract_strided_slice %119 {offsets = [0, 24], sizes = [32, 8], strides = [1, 1]} : vector<32x32xf32> to vector<32x8xf32>
      %133 = vector.extract_strided_slice %118 {offsets = [0, 3], sizes = [32, 1], strides = [1, 1]} : vector<32x4xf32> to vector<32x1xf32>
      %134 = vector.broadcast %133 : vector<32x1xf32> to vector<32x8xf32>
      %135 = arith.mulf %132, %134 : vector<32x8xf32>
      %136 = tpu.concatenate %123, %127, %131, %135 in 1 : vector<32x8xf32>, vector<32x8xf32>, vector<32x8xf32>, vector<32x8xf32> -> vector<32x32xf32>
      %137 = arith.truncf %136 : vector<32x32xf32> to vector<32x32xbf16>
      %c0_41 = arith.constant 0 : index
      %c0_42 = arith.constant 0 : index
      %138 = vector.load %arg6[%c0_41, %c0_42] : memref<32x32xbf16, #tpu.memory_space<vmem>>, vector<32x32xbf16>
      %cst_43 = arith.constant dense<0.000000e+00> : vector<32x32xf32>
      %139 = tpu.matmul %137, %138, %cst_43 {dimension_numbers = #tpu.dot_dimension_numbers<[1], [0], [0], [1], [0, 0, 1, 1], [], []>} : vector<32x32xbf16>, vector<32x32xbf16>, vector<32x32xf32> -> vector<32x32xf32>
      %c0_44 = arith.constant 0 : index
      %c0_45 = arith.constant 0 : index
      %140 = vector.load %arg7[%c0_44, %c0_45] : memref<1x32xf32, #tpu.memory_space<vmem>>, vector<1x32xf32>
      %141 = vector.broadcast %140 : vector<1x32xf32> to vector<32x32xf32>
      %142 = arith.addf %139, %141 : vector<32x32xf32>
      %c0_46 = arith.constant 0 : index
      %c0_47 = arith.constant 0 : index
      %c0_48 = arith.constant 0 : index
      %143 = vector.load %arg5[%c0_46, %c0_47, %c0_48] : memref<1x32x32xf32, #tpu.memory_space<vmem>>, vector<1x32x32xf32>
      %144 = vector.shape_cast %143 : vector<1x32x32xf32> to vector<32x32xf32>
      %145 = arith.addf %142, %144 : vector<32x32xf32>
      %cst_49 = arith.constant dense<0.000000e+00> : vector<32xf32>
      %146 = vector.multi_reduction <add>, %145, %cst_49 [1] : vector<32x32xf32> to vector<32xf32>
      %147 = vector.shape_cast %146 : vector<32xf32> to vector<32x1xf32>
      %cst_50 = arith.constant 3.200000e+01 : f32
      %148 = vector.broadcast %cst_50 : f32 to vector<32x1xf32>
      %149 = arith.divf %147, %148 : vector<32x1xf32>
      %150 = vector.broadcast %149 : vector<32x1xf32> to vector<32x32xf32>
      %151 = arith.subf %145, %150 : vector<32x32xf32>
      %152 = arith.mulf %151, %151 : vector<32x32xf32>
      %cst_51 = arith.constant dense<0.000000e+00> : vector<32xf32>
      %153 = vector.multi_reduction <add>, %152, %cst_51 [1] : vector<32x32xf32> to vector<32xf32>
      %154 = vector.shape_cast %153 : vector<32xf32> to vector<32x1xf32>
      %cst_52 = arith.constant 3.200000e+01 : f32
      %155 = vector.broadcast %cst_52 : f32 to vector<32x1xf32>
      %156 = arith.divf %154, %155 : vector<32x1xf32>
      %cst_53 = arith.constant 9.99999974E-6 : f32
      %157 = vector.broadcast %cst_53 : f32 to vector<32x1xf32>
      %158 = arith.addf %156, %157 : vector<32x1xf32>
      %159 = math.rsqrt %158 : vector<32x1xf32>
      %160 = vector.broadcast %159 : vector<32x1xf32> to vector<32x32xf32>
      %161 = arith.mulf %151, %160 : vector<32x32xf32>
      %c0_54 = arith.constant 0 : index
      %c0_55 = arith.constant 0 : index
      %162 = vector.load %arg8[%c0_54, %c0_55] : memref<1x32xf32, #tpu.memory_space<vmem>>, vector<1x32xf32>
      %163 = vector.broadcast %162 : vector<1x32xf32> to vector<32x32xf32>
      %164 = arith.mulf %161, %163 : vector<32x32xf32>
      %c0_56 = arith.constant 0 : index
      %c0_57 = arith.constant 0 : index
      %165 = vector.load %arg9[%c0_56, %c0_57] : memref<1x32xf32, #tpu.memory_space<vmem>>, vector<1x32xf32>
      %166 = vector.broadcast %165 : vector<1x32xf32> to vector<32x32xf32>
      %167 = arith.addf %164, %166 : vector<32x32xf32>
      %168 = arith.truncf %167 : vector<32x32xf32> to vector<32x32xbf16>
      %c0_58 = arith.constant 0 : index
      %c0_59 = arith.constant 0 : index
      %169 = vector.load %arg10[%c0_58, %c0_59] : memref<32x64xbf16, #tpu.memory_space<vmem>>, vector<32x64xbf16>
      %cst_60 = arith.constant dense<0.000000e+00> : vector<32x64xf32>
      %170 = tpu.matmul %168, %169, %cst_60 {dimension_numbers = #tpu.dot_dimension_numbers<[1], [0], [0], [1], [0, 0, 1, 1], [], []>} : vector<32x32xbf16>, vector<32x64xbf16>, vector<32x64xf32> -> vector<32x64xf32>
      %c0_61 = arith.constant 0 : index
      %c0_62 = arith.constant 0 : index
      %171 = vector.load %arg11[%c0_61, %c0_62] : memref<1x64xf32, #tpu.memory_space<vmem>>, vector<1x64xf32>
      %172 = vector.broadcast %171 : vector<1x64xf32> to vector<32x64xf32>
      %173 = arith.addf %170, %172 : vector<32x64xf32>
      %cst_63 = arith.constant 0.000000e+00 : f32
      %174 = vector.broadcast %cst_63 : f32 to vector<32x64xf32>
      %175 = arith.maximumf %173, %174 : vector<32x64xf32>
      %176 = arith.truncf %175 : vector<32x64xf32> to vector<32x64xbf16>
      %c0_64 = arith.constant 0 : index
      %c0_65 = arith.constant 0 : index
      %177 = vector.load %arg12[%c0_64, %c0_65] : memref<64x32xbf16, #tpu.memory_space<vmem>>, vector<64x32xbf16>
      %cst_66 = arith.constant dense<0.000000e+00> : vector<32x32xf32>
      %178 = tpu.matmul %176, %177, %cst_66 {dimension_numbers = #tpu.dot_dimension_numbers<[1], [0], [0], [1], [0, 0, 1, 1], [], []>} : vector<32x64xbf16>, vector<64x32xbf16>, vector<32x32xf32> -> vector<32x32xf32>
      %c0_67 = arith.constant 0 : index
      %c0_68 = arith.constant 0 : index
      %179 = vector.load %arg13[%c0_67, %c0_68] : memref<1x32xf32, #tpu.memory_space<vmem>>, vector<1x32xf32>
      %180 = vector.broadcast %179 : vector<1x32xf32> to vector<32x32xf32>
      %181 = arith.addf %178, %180 : vector<32x32xf32>
      %182 = arith.addf %181, %145 : vector<32x32xf32>
      %c0_69 = arith.constant 0 : index
      %c0_70 = arith.constant 0 : index
      %c0_71 = arith.constant 0 : index
      %183 = vector.load %arg14[%c0_69, %c0_70, %c0_71] : memref<1x32x32xf32, #tpu.memory_space<vmem>>, vector<1x32x32xf32>
      %184 = vector.shape_cast %183 : vector<1x32x32xf32> to vector<32x32xf32>
      %185 = vector.shape_cast %182 : vector<32x32xf32> to vector<1x32x32xf32>
      tpu.vector_store %arg14[%c0_69, %c0_70, %c0_71], %185 {strides = array<i32>} : memref<1x32x32xf32, #tpu.memory_space<vmem>>, vector<1x32x32xf32>,
      %c0_72 = arith.constant 0 : index
      %c0_73 = arith.constant 0 : index
      %186 = vector.load %arg16[%c0_72, %c0_73] : memref<32x4xf32, #tpu.memory_space<vmem>>, vector<32x4xf32>
      %187 = math.log %117 : vector<32x4xf32>
      %188 = arith.addf %186, %187 : vector<32x4xf32>
      %c0_74 = arith.constant 0 : index
      %c0_75 = arith.constant 0 : index
      %c0_76 = arith.constant 0 : index
      %189 = vector.load %arg15[%c0_74, %c0_75, %c0_76] : memref<1x32x4xf32, #tpu.memory_space<vmem>>, vector<1x32x4xf32>
      %190 = vector.shape_cast %189 : vector<1x32x4xf32> to vector<32x4xf32>
      %191 = vector.shape_cast %188 : vector<32x4xf32> to vector<1x32x4xf32>
      tpu.vector_store %arg15[%c0_74, %c0_75, %c0_76], %191 {strides = array<i32>} : memref<1x32x4xf32, #tpu.memory_space<vmem>>, vector<1x32x4xf32>,
    } else {
    }
    return
  }
  func.func @transform_0(%arg0: i32, %arg1: i32) -> (i32, i32, i32) {
    %c0_i32 = arith.constant 0 : i32
    %c0_i32_0 = arith.constant 0 : i32
    %c0_i32_1 = arith.constant 0 : i32
    return %arg0, %c0_i32, %c0_i32_0 : i32, i32, i32
  }
  func.func @transform_1(%arg0: i32, %arg1: i32) -> (i32, i32, i32) {
    %c0_i32 = arith.constant 0 : i32
    %c0_i32_0 = arith.constant 0 : i32
    return %arg0, %arg1, %c0_i32 : i32, i32, i32
  }
  func.func @transform_2(%arg0: i32, %arg1: i32) -> (i32, i32, i32) {
    %c0_i32 = arith.constant 0 : i32
    %c0_i32_0 = arith.constant 0 : i32
    return %arg0, %arg1, %c0_i32 : i32, i32, i32
  }
  func.func @transform_3(%arg0: i32, %arg1: i32) -> (i32, i32, i32) {
    %c0_i32 = arith.constant 0 : i32
    %c0_i32_0 = arith.constant 0 : i32
    %c0_i32_1 = arith.constant 0 : i32
    return %arg0, %c0_i32, %c0_i32_0 : i32, i32, i32
  }
  func.func @transform_4(%arg0: i32, %arg1: i32) -> (i32, i32) {
    %c0_i32 = arith.constant 0 : i32
    %c0_i32_0 = arith.constant 0 : i32
    %c0_i32_1 = arith.constant 0 : i32
    return %c0_i32, %c0_i32_0 : i32, i32
  }
  func.func @transform_5(%arg0: i32, %arg1: i32) -> (i32, i32) {
    %c0_i32 = arith.constant 0 : i32
    %c0_i32_0 = arith.constant 0 : i32
    %c0_i32_1 = arith.constant 0 : i32
    return %c0_i32, %c0_i32_0 : i32, i32
  }
  func.func @transform_6(%arg0: i32, %arg1: i32) -> (i32, i32) {
    %c0_i32 = arith.constant 0 : i32
    %c0_i32_0 = arith.constant 0 : i32
    %c0_i32_1 = arith.constant 0 : i32
    return %c0_i32, %c0_i32_0 : i32, i32
  }
  func.func @transform_7(%arg0: i32, %arg1: i32) -> (i32, i32) {
    %c0_i32 = arith.constant 0 : i32
    %c0_i32_0 = arith.constant 0 : i32
    %c0_i32_1 = arith.constant 0 : i32
    return %c0_i32, %c0_i32_0 : i32, i32
  }
  func.func @transform_8(%arg0: i32, %arg1: i32) -> (i32, i32) {
    %c0_i32 = arith.constant 0 : i32
    %c0_i32_0 = arith.constant 0 : i32
    %c0_i32_1 = arith.constant 0 : i32
    return %c0_i32, %c0_i32_0 : i32, i32
  }
  func.func @transform_9(%arg0: i32, %arg1: i32) -> (i32, i32) {
    %c0_i32 = arith.constant 0 : i32
    %c0_i32_0 = arith.constant 0 : i32
    %c0_i32_1 = arith.constant 0 : i32
    return %c0_i32, %c0_i32_0 : i32, i32
  }
  func.func @transform_10(%arg0: i32, %arg1: i32) -> (i32, i32) {
    %c0_i32 = arith.constant 0 : i32
    %c0_i32_0 = arith.constant 0 : i32
    %c0_i32_1 = arith.constant 0 : i32
    return %c0_i32, %c0_i32_0 : i32, i32
  }
  func.func @transform_11(%arg0: i32, %arg1: i32) -> (i32, i32) {
    %c0_i32 = arith.constant 0 : i32
    %c0_i32_0 = arith.constant 0 : i32
    %c0_i32_1 = arith.constant 0 : i32
    return %c0_i32, %c0_i32_0 : i32, i32
  }
  func.func @transform_12(%arg0: i32, %arg1: i32) -> (i32, i32, i32) {
    %c0_i32 = arith.constant 0 : i32
    %c0_i32_0 = arith.constant 0 : i32
    %c0_i32_1 = arith.constant 0 : i32
    return %arg0, %c0_i32, %c0_i32_0 : i32, i32, i32
  }
  func.func @transform_13(%arg0: i32, %arg1: i32) -> (i32, i32, i32) {
    %c0_i32 = arith.constant 0 : i32
    %c0_i32_0 = arith.constant 0 : i32
    %c0_i32_1 = arith.constant 0 : i32
    return %arg0, %c0_i32, %c0_i32_0 : i32, i32, i32
  }
}

</mosaic_0001>

<bundles_post_ra>
// kernel: squeeze.2
= control target key start
LH: loop header
LB: loop body
LE: loop exit
PB: predicated region body
PF: predicated region fallthrough
CT: control target
= control target key end

     0   :  { %vm178_vm0 = vcmask 1047556   ;;  %s348_s22 = smov 32   ;;  %s349_s23 = smov 64   ;;  %vm123_vm1 = vcmask 261120   ;;  %s424_s0 = inlined_call_operand.vmem [shape: bf16[1,2,1024], index: 0, kind: input, shape index: {}]   ;;  %s425_s1 = inlined_call_operand.vmem [shape: bf16[2,32,32], index: 1, kind: output, shape index: {}]  }
   0x1   :  { %v292_v0 = vld [vmem:[%s424_s0 + $0x7] sm:$0x1]  ;;  %v293_v1 = vld [vmem:[%s424_s0 + $0x6] sm:$0x1]  ;;  %v294_v2 = vld [vmem:[%s424_s0 + $0x5] sm:$0x1] }
   0x2   :  { %v15_v3 = vunpack.c.l.bf16 %v292_v0  ;;  %v30_v4 = vunpack.c.l.bf16 %v293_v1  ;;  %v45_v5 = vunpack.c.l.bf16 %v294_v2  ;;  %v295_v6 = vld [vmem:[%s424_s0 + $0x4] sm:$0x1]  ;;  %v296_v7 = vld [vmem:[%s424_s0 + $0x3] sm:$0x1]  ;;  %v297_v8 = vld [vmem:[%s424_s0 + $0x2] sm:$0x1] }
   0x3   :  { %v60_v9 = vunpack.c.l.bf16 %v295_v6  ;;  %v298_v10 = vld [vmem:[%s424_s0 + $0x1] sm:$0x1]  ;;  %v75_v11 = vunpack.c.l.bf16 %v296_v7  ;;  %v118_v12 = vld [vmem:[%s424_s0] sm:$0x1]  ;;  %v90_v13 = vunpack.c.l.bf16 %v297_v8  ;;  %s347_s0 = smov 96  }
   0x4   :  { %18 = vst [vmem:[#allocation1 + $0x38] sm:$0x3] %v15_v3  ;;  %v105_v14 = vunpack.c.l.bf16 %v298_v10  ;;  %v119_v15 = vunpack.c.l.bf16 %v118_v12 }
   0x5   :  { %33 = vst [vmem:[#allocation1 + $0x30] sm:$0x3] %v30_v4 }
   0x6   :  { %48 = vst [vmem:[#allocation1 + $0x28] sm:$0x3] %v45_v5 }
   0x7   :  { %63 = vst [vmem:[#allocation1 + $0x20] sm:$0x3] %v60_v9 }
   0x8   :  { %78 = vst [vmem:[#allocation1 + $0x18] sm:$0x3] %v75_v11 }
   0x9   :  { %93 = vst [vmem:[#allocation1 + $0x10] sm:$0x3] %v90_v13 }
   0xa   :  { %108 = vst [vmem:[#allocation1 + $0x8] sm:$0x3] %v105_v14 }
   0xb   :  { %121 = vst [vmem:[#allocation1] sm:$0x3] %v119_v15  ;;  %v170_v44 = vld [vmem:[#allocation1 + $0x38] sm:$0x3]  }
   0xc   :  { %v163_v43 = vld [vmem:[#allocation1 + $0x30] sm:$0x3]   ;;  %175 = vst.msk [vmem:[#allocation0 + $0x3b] sm:$0x2] %vm123_vm1, %v170_v44  }
   0xd   :  { %v156_v42 = vld [vmem:[#allocation1 + $0x28] sm:$0x3]   ;;  %168 = vst.msk [vmem:[#allocation0 + $0x37] sm:$0x2] %vm123_vm1, %v163_v43  }
   0xe   :  { %v177_v16 = vld [vmem:[#allocation1] ss:$8 sm:$0xf0]   ;;  %v188_v17 = vld [vmem:[#allocation1 + $0x1] ss:$8 sm:$0xf0]  }
   0xf   :  { %v217_v18 = vld [vmem:[#allocation1] ss:$8 sm:$0xf0]   ;;  %v228_v19 = vld [vmem:[#allocation1 + $0x1] ss:$8 sm:$0xf0]  }
  0x10   :  { %v197_v22 = vld [vmem:[#allocation1] ss:$8 sm:$0xf0]   ;;  %v208_v23 = vld [vmem:[#allocation1 + $0x1] ss:$8 sm:$0xf0]  }
  0x11   :  { %v128_v38 = vld [vmem:[#allocation1 + $0x8] sm:$0x3]   ;;  %v135_v39 = vld [vmem:[#allocation1 + $0x10] sm:$0x3]   ;;  %v142_v40 = vld [vmem:[#allocation1 + $0x18] sm:$0x3]  }
  0x12   :  { %v176_v20 = vld [vmem:[#allocation1] ss:$8 sm:$0xf]   ;;  %v186_v21 = vld [vmem:[#allocation1 + $0x1] ss:$8 sm:$0xf]  }
  0x13   :  { %v179_v24 = vsel %vm178_vm0, %v177_v16, %v176_v20  ;;  %v190_v25 = vsel %vm178_vm0, %v188_v17, %v186_v21  ;;  %v216_v26 = vld [vmem:[#allocation1] ss:$8 sm:$0xf]   ;;  %v226_v27 = vld [vmem:[#allocation1 + $0x1] ss:$8 sm:$0xf]  }
  0x14   :  { %v332_v28 = vpack.i.bf16 %v190_v25, %v179_v24  ;;  %v219_v29 = vsel %vm178_vm0, %v217_v18, %v216_v26  ;;  %v230_v30 = vsel %vm178_vm0, %v228_v19, %v226_v27  ;;  %v196_v31 = vld [vmem:[#allocation1] ss:$8 sm:$0xf]   ;;  %v206_v32 = vld [vmem:[#allocation1 + $0x1] ss:$8 sm:$0xf]  }
  0x15   :  { %v342_v33 = vpack.i.bf16 %v230_v30, %v219_v29  ;;  %v199_v34 = vsel %vm178_vm0, %v197_v22, %v196_v31  ;;  %v210_v35 = vsel %vm178_vm0, %v208_v23, %v206_v32  ;;  %v122_v37 = vld [vmem:[#allocation1] sm:$0x3]   ;;  %133 = vst.msk [vmem:[#allocation0 + $0x23] sm:$0x2] %vm123_vm1, %v128_v38  }
  0x16   :  { %333 = vrot.lane.b32.xlu0 %v332_v28, %s347_s0  ;;  %v337_v36 = vpack.i.bf16 %v210_v35, %v199_v34  ;;  %126 = vst.msk [vmem:[#allocation0 + $0x1f] sm:$0x2] %vm123_vm1, %v122_v37   ;;  %v149_v41 = vld [vmem:[#allocation1 + $0x20] sm:$0x3]  }
  0x17   :  { %343 = vrot.lane.b32.xlu1 %v342_v33, %s348_s22  ;;  %140 = vst.msk [vmem:[#allocation0 + $0x27] sm:$0x2] %vm123_vm1, %v135_v39  }
  0x18   :  { %147 = vst.msk [vmem:[#allocation0 + $0x2b] sm:$0x2] %vm123_vm1, %v142_v40  }
  0x19   :  { %154 = vst.msk [vmem:[#allocation0 + $0x2f] sm:$0x2] %vm123_vm1, %v149_v41  }
  0x1a   :  { %161 = vst.msk [vmem:[#allocation0 + $0x33] sm:$0x2] %vm123_vm1, %v156_v42  }
  0x1b   :  { %124 = vst.msk [vmem:[#allocation0] sm:$0x1] %vm123_vm1, %v122_v37  }
  0x1c   :  { %131 = vst.msk [vmem:[#allocation0 + $0x4] sm:$0x1] %vm123_vm1, %v128_v38  }
  0x1d   :  { %138 = vst.msk [vmem:[#allocation0 + $0x8] sm:$0x1] %vm123_vm1, %v135_v39  }
  0x1e   :  { %338 = vrot.lane.b32.xlu0 %v337_v36, %s349_s23  ;;  %145 = vst.msk [vmem:[#allocation0 + $0xc] sm:$0x1] %vm123_vm1, %v142_v40  }
  0x1f   :  { %152 = vst.msk [vmem:[#allocation0 + $0x10] sm:$0x1] %vm123_vm1, %v149_v41  }
  0x20   :  { %159 = vst.msk [vmem:[#allocation0 + $0x14] sm:$0x1] %vm123_vm1, %v156_v42  }
  0x21   :  { %166 = vst.msk [vmem:[#allocation0 + $0x18] sm:$0x1] %vm123_vm1, %v163_v43  }
  0x22   :  { %173 = vst.msk [vmem:[#allocation0 + $0x1c] sm:$0x1] %vm123_vm1, %v170_v44  }
  0x88   :  { %v334_v45 = vpop.permute.xlu0 %333 }
  0x89   :  { %v336_v46 = vunpack.i.h.bf16 %v334_v45  ;;  %v335_v47 = vunpack.i.l.bf16 %v334_v45  ;;  %v344_v48 = vpop.permute.xlu1 %343 }
  0x8a   :  { %v346_v49 = vunpack.i.h.bf16 %v344_v48  ;;  %v345_v50 = vunpack.i.l.bf16 %v344_v48 }
  0x8b   :  { %195 = vst.msk [vmem:[#allocation0 + $0x21] ss:$4 sm:$0xff] %vm123_vm1, %v336_v46  }
  0x8c   :  { %184 = vst.msk [vmem:[#allocation0 + $0x1] ss:$4 sm:$0xff] %vm123_vm1, %v335_v47  }
  0x8d   :  { %235 = vst.msk [vmem:[#allocation0 + $0x23] ss:$4 sm:$0xff] %vm123_vm1, %v346_v49  }
  0x8e   :  { %224 = vst.msk [vmem:[#allocation0 + $0x3] ss:$4 sm:$0xff] %vm123_vm1, %v345_v50  }
  0x90   :  { %v339_v51 = vpop.permute.xlu0 %338 }
  0x91   :  { %v341_v52 = vunpack.i.h.bf16 %v339_v51  ;;  %v340_v53 = vunpack.i.l.bf16 %v339_v51 }
  0x93   :  { %215 = vst.msk [vmem:[#allocation0 + $0x22] ss:$4 sm:$0xff] %vm123_vm1, %v341_v52  }
  0x94   :  { %204 = vst.msk [vmem:[#allocation0 + $0x2] ss:$4 sm:$0xff] %vm123_vm1, %v340_v53  }
  0x9a   :  { %v265_v54 = vld [vmem:[#allocation0 + $0x20] sm:$0xff]  ;;  %v272_v55 = vld [vmem:[#allocation0 + $0x28] sm:$0xff]  ;;  %v279_v56 = vld [vmem:[#allocation0 + $0x30] sm:$0xff] }
  0x9b   :  { %v238_v57 = vld [vmem:[#allocation0] sm:$0xff]  ;;  %v244_v58 = vld [vmem:[#allocation0 + $0x8] sm:$0xff]  ;;  %v251_v59 = vld [vmem:[#allocation0 + $0x10] sm:$0xff]  ;;  %v319_v60 = vpack.c.bf16 %v272_v55, %v265_v54 }
  0x9c   :  { %v309_v61 = vpack.c.bf16 %v244_v58, %v238_v57  ;;  %v258_v62 = vld [vmem:[#allocation0 + $0x18] sm:$0xff] }
  0x9d   :  { %v286_v63 = vld [vmem:[#allocation0 + $0x38] sm:$0xff]  ;;  %v314_v0 = vpack.c.bf16 %v258_v62, %v251_v59  ;;  %327 = vst [vmem:[%s425_s1 + $0x10] sm:$0xff] %v319_v60  }
  0x9e   :  { %v324_v1 = vpack.c.bf16 %v286_v63, %v279_v56  ;;  %310 = vst [vmem:[%s425_s1] sm:$0xff] %v309_v61  }
  0x9f   :  { %326 = vst [vmem:[%s425_s1 + $0x8] sm:$0xff] %v314_v0  }
  0xa0   :  { %328 = vst [vmem:[%s425_s1 + $0x18] sm:$0xff] %v324_v1  }

// kernel: encoder_block.4
= control target key start
LH: loop header
LB: loop body
LE: loop exit
PB: predicated region body
PF: predicated region fallthrough
CT: control target
= control target key end

     0   :  { %16 = vsyncpa [#allocation3], 0  ;;  %s1147_s0 = inlined_call_operand.hbm [shape: f32[2,32,32], index: 0, kind: input, shape index: {}]   ;;  %s1148_s1 = inlined_call_operand.vmem [shape: f32[1,32], index: 1, kind: input, shape index: {}]   ;;  %s1149_s2 = inlined_call_operand.vmem [shape: f32[1,32], index: 2, kind: input, shape index: {}]   ;;  %s1150_s3 = inlined_call_operand.hbm [shape: bf16[32,32], index: 3, kind: input, shape index: {}]   ;;  %s1151_s4 = inlined_call_operand.hbm [shape: f32[1,32], index: 4, kind: input, shape index: {}]   ;;  %s1152_s5 = inlined_call_operand.vmem [shape: bf16[32,32], index: 5, kind: input, shape index: {}]   ;;  %s1153_s6 = inlined_call_operand.vmem [shape: f32[1,32], index: 6, kind: input, shape index: {}]   ;;  %s1154_s7 = inlined_call_operand.hbm [shape: bf16[32,32], index: 7, kind: input, shape index: {}]   ;;  %s1155_s8 = inlined_call_operand.hbm [shape: f32[1,32], index: 8, kind: input, shape index: {}]   ;;  %s1156_s9 = inlined_call_operand.vmem [shape: bf16[2,2,32,32], index: 9, kind: output, shape index: {0}]   ;;  %s1157_s10 = inlined_call_operand.vmem [shape: bf16[2,32,32], index: 10, kind: output, shape index: {1}]  }
   0x1   :  { %17 = vsyncpa [#allocation5], 0  ;;  %s40_s15 = sshll.u32 %s1150_s3, 4  ;;  %s41_s15 = int_to_ptr.hbm [resolvable:$true] %s40_s15 }
   0x2   :  { %18 = vsyncpa [#allocation8], 0  ;;  %s764_s16 = smov [#allocation4]   ;;  %s68_s20 = sshll.u32 %s1154_s7, 4  ;;  %s69_s20 = int_to_ptr.hbm [resolvable:$true] %s68_s20 }
   0x3   :  { %s42_s17 = sshll.u32 %s764_s16, 4  ;;  %s765_s21 = smov 64   ;;  %s43_s17 = int_to_ptr.vmem [resolvable:$true] %s42_s17 }
   0x4   :  { %s766_s22 = smov 4   ;;  %s767_s23 = smov [#allocation7]  }
   0x5   :  { %48 = dma.hbm_to_vmem [thread:$0]  %s41_s15, 256, %s43_s17, [#allocation5], %s765_s21, %s765_s21, %s766_s22  }
   0x6   :  { %s70_s24 = sshll.u32 %s767_s23, 4  ;;  %s23_s27 = sshll.u32 %s1147_s0, 4  ;;  %s71_s24 = int_to_ptr.vmem [resolvable:$true] %s70_s24  ;;  %s24_s27 = int_to_ptr.hbm [resolvable:$true] %s23_s27 }
   0x7   :  { %76 = dma.hbm_to_vmem [thread:$0]  %s69_s20, 256, %s71_s24, [#allocation8], %s765_s21, %s765_s21, %s766_s22  }
   0x8   :  { %s768_s3 = smov [#allocation2]   ;;  %s54_s7 = sshll.u32 %s1151_s4, 4  ;;  %s55_s7 = int_to_ptr.hbm [resolvable:$true] %s54_s7 }
   0x9   :  { %s25_s28 = sshll.u32 %s768_s3, 4  ;;  %s769_s11 = smov 128   ;;  %s26_s28 = int_to_ptr.vmem [resolvable:$true] %s25_s28 }
   0xa   :  { %s770_s12 = smov 8   ;;  %s771_s13 = smov [#allocation6]  }
   0xb   :  { %31 = dma.hbm_to_vmem [thread:$0]  %s24_s27, 1024, %s26_s28, [#allocation3], %s769_s11, %s769_s11, %s770_s12  }
   0xc   :  { %s56_s14 = sshll.u32 %s771_s13, 4  ;;  %s82_s0 = sshll.u32 %s1155_s8, 4  ;;  %s57_s14 = int_to_ptr.vmem [resolvable:$true] %s56_s14  ;;  %s83_s0 = int_to_ptr.hbm [resolvable:$true] %s82_s0 }
   0xd   :  { %59 = dma.hbm_to_vmem [thread:$0]  %s55_s7, 16, %s57_s14, [#allocation5]  }
   0xe   :  { %s772_s17 = smov [#allocation9]  }
   0xf   :  { %s84_s18 = sshll.u32 %s772_s17, 4  ;;  %s85_s18 = int_to_ptr.vmem [resolvable:$true] %s84_s18 }
  0x10   :  { %87 = dma.hbm_to_vmem [thread:$0]  %s83_s0, 16, %s85_s18, [#allocation8]  }
  0x11   :  { %758 = dma.done.wait [#allocation3], 1024  }
  0x12   :  { %759 = vsyncadd [#allocation3], 4294966272 }
  0x13   :  { %760 = dma.done.wait [#allocation5], 272  }
  0x14   :  { %761 = vsyncadd [#allocation5], 4294967024 }
  0x15   :  { %762 = dma.done.wait [#allocation8], 272  }
  0x16   :  { %763 = vsyncadd [#allocation8], 4294967024  ;;  %vm117_vm0 = vcmask 261120   ;;  %v113_v0 = vld [vmem:[#allocation2 + $0x20] sm:$0xff]  ;;  %v111_v1 = vld [vmem:[#allocation2 + $0x10] sm:$0xff]  ;;  %v773_v16 = vmov 32.0  }
  0x17   :  { %v109_v2 = vld [vmem:[#allocation2] sm:$0xff]  ;;  %v130_v3 = vsel %vm117_vm0, %v113_v0, 0.0  ;;  %v124_v4 = vsel %vm117_vm0, %v111_v1, 0.0  ;;  %v114_v6 = vld [vmem:[#allocation2 + $0x28] sm:$0xff]  ;;  %v112_v7 = vld [vmem:[#allocation2 + $0x18] sm:$0xff]  ;;  %620 = vrcp.f32 %v773_v16 }
  0x18   :  { %v118_v5 = vsel %vm117_vm0, %v109_v2, 0.0  ;;  %131 = vadd.xlane.f32.xlu2 %v130_v3  ;;  %125 = vadd.xlane.f32.xlu0 %v124_v4  ;;  %v110_v8 = vld [vmem:[#allocation2 + $0x8] sm:$0xff]  ;;  %v133_v9 = vsel %vm117_vm0, %v114_v6, 0.0  ;;  %v127_v10 = vsel %vm117_vm0, %v112_v7, 0.0  ;;  %v115_v12 = vld [vmem:[#allocation2 + $0x30] sm:$0xff]  ;;  %v116_v13 = vld [vmem:[#allocation2 + $0x38] sm:$0xff] }
  0x19   :  { %119 = vadd.xlane.f32.xlu1 %v118_v5  ;;  %v121_v11 = vsel %vm117_vm0, %v110_v8, 0.0  ;;  %v136_v14 = vsel %vm117_vm0, %v115_v12, 0.0  ;;  %v139_v15 = vsel %vm117_vm0, %v116_v13, 0.0  ;;  %v596_v3 = vld [vmem:[%s1152_s5 + $0x8] sm:$0xff]  ;;  %v906_v4 = vld [vmem:[#allocation7 + $0x8] sm:$0xff] }
  0x1a   :  { %601 = vmatpush.bf16.msra.mxu1 %v596_v3  ;;  %603 = vmatpush.bf16.msra.mxu2 %v906_v4 }
  0x1d   :  { %v621_v17 = vpop.eup %620 }
  0x1e   :  { %v143_v18 = vmul.f32 32.0, %v621_v17  ;;  %vm147_vm1 = vweird.f32 %v621_v17 }
  0x20   :  { %134 = vadd.xlane.f32.xlu2 %v133_v9  ;;  %128 = vadd.xlane.f32.xlu0 %v127_v10  ;;  %v144_v19 = vsub.f32 1.0, %v143_v18  ;;  %v595_v9 = vld [vmem:[%s1152_s5] sm:$0xff]  ;;  %v913_v10 = vld [vmem:[#allocation7] sm:$0xff] }
  0x21   :  { %122 = vadd.xlane.f32.xlu1 %v121_v11  ;;  %602 = vmatpush.bf16.msra.mxu1 %v595_v9 }
  0x22   :  { %v145_v20 = vmul.f32 %v621_v17, %v144_v19  ;;  %604 = vmatpush.bf16.msra.mxu2 %v913_v10 }
  0x24   :  { %v146_v21 = vadd.f32 %v621_v17, %v145_v20 }
  0x26   :  { %v852_v22 = vsel %vm147_vm1, %v621_v17, %v146_v21 }
  0x28   :  { %137 = vadd.xlane.f32.xlu0 %v136_v14 }
  0x29   :  { %140 = vadd.xlane.f32.xlu1 %v139_v15 }
  0x8b   :  { %v132_v23 = vpop.xlane.xlu2 %131  ;;  %v126_v24 = vpop.xlane.xlu0 %125 }
  0x8c   :  { %v151_v25 = vmul.f32 %v852_v22, %v126_v24  ;;  %v120_v26 = vpop.xlane.xlu1 %119  ;;  %v153_v36 = vmul.f32 %v852_v22, %v132_v23 }
  0x8d   :  { %v149_v27 = vmul.f32 %v852_v22, %v120_v26 }
  0x8e   :  { %v856_v28 = vsub.f32 %v111_v1, %v151_v25  ;;  %v876_v44 = vsub.f32 %v113_v0, %v153_v36 }
  0x8f   :  { %v858_v29 = vsub.f32 %v109_v2, %v149_v27  ;;  %v594_v2 = vld [vmem:[#allocation4 + $0x8] sm:$0xff] }
  0x90   :  { %v167_v30 = vmul.f32 %v856_v28, %v856_v28  ;;  %v169_v53 = vmul.f32 %v876_v44, %v876_v44  ;;  %367 = vmatpush.bf16.msra.mxu0 %v594_v2  ;;  %599 = vmatpush.bf16.msra.mxu3 %v594_v2  ;;  %v952_v2 = vld [vmem:[%s1148_s1] ss:$0 sm:$0xff] }
  0x91   :  { %v165_v31 = vmul.f32 %v858_v29, %v858_v29 }
  0x92   :  { %v179_v32 = vsel %vm117_vm0, %v167_v30, 0.0  ;;  %v185_v57 = vsel %vm117_vm0, %v169_v53, 0.0 }
  0x93   :  { %v135_v33 = vpop.xlane.xlu2 %134  ;;  %180 = vadd.xlane.f32.xlu2 %v179_v32  ;;  %v129_v34 = vpop.xlane.xlu0 %128  ;;  %v173_v35 = vsel %vm117_vm0, %v165_v31, 0.0 }
  0x94   :  { %v154_v37 = vmul.f32 %v852_v22, %v135_v33  ;;  %v152_v38 = vmul.f32 %v852_v22, %v129_v34  ;;  %174 = vadd.xlane.f32.xlu1 %v173_v35  ;;  %v123_v39 = vpop.xlane.xlu1 %122 }
  0x95   :  { %v150_v40 = vmul.f32 %v852_v22, %v123_v39 }
  0x96   :  { %v870_v41 = vsub.f32 %v114_v6, %v154_v37  ;;  %v872_v42 = vsub.f32 %v112_v7, %v152_v38 }
  0x97   :  { %v874_v43 = vsub.f32 %v110_v8, %v150_v40  ;;  %v593_v8 = vld [vmem:[#allocation4] sm:$0xff] }
  0x98   :  { %v168_v45 = vmul.f32 %v872_v42, %v872_v42  ;;  %v170_v46 = vmul.f32 %v870_v41, %v870_v41  ;;  %368 = vmatpush.bf16.msra.mxu0 %v593_v8  ;;  %600 = vmatpush.bf16.msra.mxu3 %v593_v8 }
  0x99   :  { %v166_v47 = vmul.f32 %v874_v43, %v874_v43 }
  0x9a   :  { %v182_v48 = vsel %vm117_vm0, %v168_v45, 0.0  ;;  %v188_v49 = vsel %vm117_vm0, %v170_v46, 0.0 }
  0x9b   :  { %183 = vadd.xlane.f32.xlu0 %v182_v48  ;;  %v138_v50 = vpop.xlane.xlu0 %137  ;;  %v176_v51 = vsel %vm117_vm0, %v166_v47, 0.0 }
  0x9c   :  { %v155_v52 = vmul.f32 %v852_v22, %v138_v50  ;;  %189 = vadd.xlane.f32.xlu1 %v188_v49  ;;  %177 = vadd.xlane.f32.xlu2 %v176_v51  ;;  %v141_v54 = vpop.xlane.xlu1 %140 }
  0x9d   :  { %v156_v55 = vmul.f32 %v852_v22, %v141_v54  ;;  %416 = vmatpush.bf16.msrb.mxu0 %v596_v3 }
  0x9e   :  { %v891_v56 = vsub.f32 %v115_v12, %v155_v52 }
  0x9f   :  { %v896_v59 = vsub.f32 %v116_v13, %v156_v55 }
  0xa0   :  { %v171_v58 = vmul.f32 %v891_v56, %v891_v56 }
  0xa1   :  { %v172_v61 = vmul.f32 %v896_v59, %v896_v59  ;;  %417 = vmatpush.bf16.msrb.mxu0 %v595_v9 }
  0xa2   :  { %v191_v60 = vsel %vm117_vm0, %v171_v58, 0.0 }
  0xa3   :  { %186 = vadd.xlane.f32.xlu0 %v185_v57  ;;  %v194_v62 = vsel %vm117_vm0, %v172_v61, 0.0 }
  0xa4   :  { %192 = vadd.xlane.f32.xlu2 %v191_v60 }
  0xab   :  { %195 = vadd.xlane.f32.xlu0 %v194_v62 }
 0x106   :  { %v181_v63 = vpop.xlane.xlu2 %180 }
 0x107   :  { %v199_v0 = vmul.f32 %v181_v63, %v852_v22  ;;  %v175_v1 = vpop.xlane.xlu1 %174 }
 0x108   :  { %v197_v5 = vmul.f32 %v175_v1, %v852_v22 }
 0x109   :  { %v207_v6 = vadd.f32 1e-05, %v199_v0 }
 0x10a   :  { %v205_v7 = vadd.f32 1e-05, %v197_v5 }
 0x10b   :  { %622 = vrsqrt.f32 %v207_v6  ;;  %vm239_vm5 = vweird.f32 %v207_v6 }
 0x10c   :  { %624 = vrsqrt.f32 %v205_v7  ;;  %vm219_vm3 = vweird.f32 %v205_v7 }
 0x10e   :  { %v184_v11 = vpop.xlane.xlu0 %183 }
 0x10f   :  { %v200_v12 = vmul.f32 %v184_v11, %v852_v22  ;;  %v178_v13 = vpop.xlane.xlu2 %177  ;;  %v190_v14 = vpop.xlane.xlu1 %189 }
 0x110   :  { %v198_v15 = vmul.f32 %v178_v13, %v852_v22  ;;  %v202_v16 = vmul.f32 %v190_v14, %v852_v22 }
 0x111   :  { %v623_v17 = vpop.eup %622  ;;  %v208_v18 = vadd.f32 1e-05, %v200_v12 }
 0x112   :  { %v625_v19 = vpop.eup %624  ;;  %v234_v20 = vmul.f32 %v623_v17, %v207_v6  ;;  %v919_v21 = vadd.f32 1e-05, %v198_v15  ;;  %v921_v23 = vadd.f32 1e-05, %v202_v16  ;;  %vm240_vm2 = vweird.f32 %v623_v17  ;;  %v968_v16 = vld [vmem:[%s1149_s2] ss:$0 sm:$0xff] }
 0x113   :  { %v214_v24 = vmul.f32 %v625_v19, %v205_v7  ;;  %626 = vrsqrt.f32 %v208_v18  ;;  %vm220_vm4 = vweird.f32 %v625_v19  ;;  %vm931_vm6 = vmor %vm239_vm5, %vm240_vm2  ;;  %vm249_vm11 = vweird.f32 %v208_v18 }
 0x114   :  { %v235_v25 = vmul.f32 %v623_v17, %v234_v20  ;;  %628 = vrsqrt.f32 %v919_v21  ;;  %vm221_vm7 = vmor %vm219_vm3, %vm220_vm4  ;;  %vm229_vm9 = vweird.f32 %v919_v21  ;;  %vm269_vm14 = vweird.f32 %v921_v23 }
 0x115   :  { %v215_v26 = vmul.f32 %v625_v19, %v214_v24  ;;  %630 = vrsqrt.f32 %v921_v23 }
 0x116   :  { %v236_v27 = vmul.f32 0.5, %v235_v25  ;;  %v187_v30 = vpop.xlane.xlu0 %186 }
 0x117   :  { %v216_v31 = vmul.f32 0.5, %v215_v26  ;;  %v201_v32 = vmul.f32 %v187_v30, %v852_v22  ;;  %v193_v33 = vpop.xlane.xlu2 %192 }
 0x118   :  { %v237_v34 = vsub.f32 1.5, %v236_v27  ;;  %v203_v38 = vmul.f32 %v193_v33, %v852_v22 }
 0x119   :  { %v627_v35 = vpop.eup %626  ;;  %v217_v36 = vsub.f32 1.5, %v216_v31  ;;  %v926_v37 = vadd.f32 1e-05, %v201_v32 }
 0x11a   :  { %v629_v39 = vpop.eup %628  ;;  %v238_v40 = vmul.f32 %v623_v17, %v237_v34  ;;  %v244_v45 = vmul.f32 %v627_v35, %v208_v18  ;;  %v942_v55 = vadd.f32 1e-05, %v203_v38  ;;  %vm250_vm8 = vweird.f32 %v627_v35 }
 0x11b   :  { %v929_v46 = vpop.eup %630  ;;  %v218_v48 = vmul.f32 %v625_v19, %v217_v36  ;;  %v224_v49 = vmul.f32 %v629_v39, %v919_v21  ;;  %632 = vrsqrt.f32 %v926_v37  ;;  %vm230_vm10 = vweird.f32 %v629_v39  ;;  %vm251_vm12 = vmor %vm249_vm11, %vm250_vm8 }
 0x11c   :  { %v245_v50 = vmul.f32 %v627_v35, %v244_v45  ;;  %v264_v51 = vmul.f32 %v929_v46, %v921_v23  ;;  %v242_v52 = vsel %vm931_vm6, %v623_v17, %v238_v40  ;;  %634 = vrsqrt.f32 %v942_v55  ;;  %vm231_vm13 = vmor %vm229_vm9, %vm230_vm10 }
 0x11d   :  { %v222_v53 = vsel %vm221_vm7, %v625_v19, %v218_v48  ;;  %v225_v54 = vmul.f32 %v629_v39, %v224_v49  ;;  %v295_v63 = vmul.f32 %v242_v52, %v856_v28  ;;  %vm270_vm15 = vweird.f32 %v929_v46 }
 0x11e   :  { %v246_v57 = vmul.f32 0.5, %v245_v50  ;;  %v265_v58 = vmul.f32 %v929_v46, %v264_v51  ;;  %v196_v60 = vpop.xlane.xlu0 %195  ;;  %v293_v0 = vmul.f32 %v222_v53, %v858_v29  ;;  %vm259_vm1 = vweird.f32 %v926_v37  ;;  %vm980_vm3 = vmor %vm269_vm14, %vm270_vm15 }
 0x11f   :  { %v226_v61 = vmul.f32 0.5, %v225_v54  ;;  %v204_v62 = vmul.f32 %v196_v60, %v852_v22  ;;  %v307_v11 = vmul.f32 %v952_v2, %v295_v63  ;;  %vm279_vm7 = vweird.f32 %v942_v55 }
 0x120   :  { %v247_v1 = vsub.f32 1.5, %v246_v57  ;;  %v266_v6 = vmul.f32 0.5, %v265_v58  ;;  %v305_v15 = vmul.f32 %v952_v2, %v293_v0  ;;  %vm496_vm11 = vcmask 257024  }
 0x121   :  { %v633_v3 = vpop.eup %632  ;;  %v227_v5 = vsub.f32 1.5, %v226_v61  ;;  %v955_v7 = vadd.f32 1e-05, %v204_v62 }
 0x122   :  { %v248_v8 = vmul.f32 %v627_v35, %v247_v1  ;;  %v254_v22 = vmul.f32 %v633_v3, %v926_v37  ;;  %v267_v14 = vsub.f32 1.5, %v266_v6  ;;  %v635_v19 = vpop.eup %634  ;;  %vm260_vm2 = vweird.f32 %v633_v3 }
 0x123   :  { %v228_v28 = vmul.f32 %v629_v39, %v227_v5  ;;  %636 = vrsqrt.f32 %v955_v7  ;;  %v317_v26 = vadd.f32 %v968_v16, %v305_v15  ;;  %v274_v31 = vmul.f32 %v635_v19, %v942_v55  ;;  %vm261_vm4 = vmor %vm259_vm1, %vm260_vm2 }
 0x124   :  { %v252_v29 = vsel %vm251_vm12, %v627_v35, %v248_v8  ;;  %v255_v9 = vmul.f32 %v633_v3, %v254_v22  ;;  %v268_v25 = vmul.f32 %v929_v46, %v267_v14  ;;  %vm289_vm5 = vweird.f32 %v955_v7 }
 0x125   :  { %v296_v12 = vmul.f32 %v252_v29, %v872_v42  ;;  %v232_v13 = vsel %vm231_vm13, %v629_v39, %v228_v28  ;;  %v275_v39 = vmul.f32 %v635_v19, %v274_v31  ;;  %vm280_vm8 = vweird.f32 %v635_v19 }
 0x126   :  { %v294_v17 = vmul.f32 %v232_v13, %v874_v43  ;;  %v256_v18 = vmul.f32 0.5, %v255_v9  ;;  %v319_v43 = vadd.f32 %v968_v16, %v307_v11  ;;  %v272_v38 = vsel %vm980_vm3, %v929_v46, %v268_v25  ;;  %vm281_vm10 = vmor %vm279_vm7, %vm280_vm8 }
 0x127   :  { %v308_v20 = vmul.f32 %v952_v2, %v296_v12  ;;  %v298_v47 = vmul.f32 %v272_v38, %v870_v41  ;;  %v276_v48 = vmul.f32 0.5, %v275_v39 }
 0x128   :  { %v257_v42 = vsub.f32 1.5, %v256_v18  ;;  %v306_v21 = vmul.f32 %v952_v2, %v294_v17 }
 0x129   :  { %v637_v24 = vpop.eup %636  ;;  %v320_v27 = vadd.f32 %v968_v16, %v308_v20  ;;  %v310_v46 = vmul.f32 %v952_v2, %v298_v47  ;;  %v277_v51 = vsub.f32 1.5, %v276_v48 }
 0x12a   :  { %v258_v30 = vmul.f32 %v633_v3, %v257_v42  ;;  %v284_v32 = vmul.f32 %v637_v24, %v955_v7  ;;  %v318_v33 = vadd.f32 %v968_v16, %v306_v21  ;;  %vm290_vm6 = vweird.f32 %v637_v24  ;;  %v1027_v7 = vld [vmem:[#allocation9] ss:$0 sm:$0xff] }
 0x12b   :  { %v326_v34 = vpack.c.bf16 %v320_v27, %v319_v43  ;;  %vm291_vm9 = vmor %vm289_vm5, %vm290_vm6  ;;  %v322_v41 = vadd.f32 %v968_v16, %v310_v46 }
 0x12c   :  { %v262_v35 = vsel %vm261_vm4, %v633_v3, %v258_v30  ;;  %v285_v36 = vmul.f32 %v637_v24, %v284_v32  ;;  %v325_v37 = vpack.c.bf16 %v318_v33, %v317_v26 }
 0x12d   :  { %558 = vmatmul.msk.bf16.vlgmr.msra.gmra.mxu3 %vm117_vm0, %v326_v34  ;;  %570 = vmatmul.msk.bf16.vlgmr.msra.gmra.mxu1 %vm117_vm0, %v326_v34  ;;  %v297_v40 = vmul.f32 %v262_v35, %v876_v44 }
 0x12e   :  { %557 = vmatmul.msk.bf16.vlgmr.msra.gmra.mxu0 %vm117_vm0, %v325_v37  ;;  %582 = vmatmul.msk.bf16.vlgmr.msra.gmra.mxu2 %vm117_vm0, %v326_v34  ;;  %v286_v45 = vmul.f32 0.5, %v285_v36 }
 0x12f   :  { %465 = vmatpush.bf16.msra.mxu0 %v906_v4  ;;  %v309_v49 = vmul.f32 %v952_v2, %v297_v40  ;;  %v278_v4 = vmul.f32 %v635_v19, %v277_v51 }
 0x130   :  { %v287_v50 = vsub.f32 1.5, %v286_v45 }
 0x131   :  { %v321_v52 = vadd.f32 %v968_v16, %v309_v49  ;;  %v282_v54 = vsel %vm281_vm10, %v635_v19, %v278_v4 }
 0x132   :  { %v288_v44 = vmul.f32 %v637_v24, %v287_v50  ;;  %v299_v57 = vmul.f32 %v282_v54, %v891_v56  ;;  %v1021_v56 = vld [vmem:[%s1153_s6] ss:$0 sm:$0xff] }
 0x133   :  { %466 = vmatpush.bf16.msra.mxu0 %v913_v10  ;;  %v327_v53 = vpack.c.bf16 %v322_v41, %v321_v52 }
 0x134   :  { %v292_v10 = vsel %vm291_vm9, %v637_v24, %v288_v44  ;;  %v311_v60 = vmul.f32 %v952_v2, %v299_v57 }
 0x135   :  { %v300_v55 = vmul.f32 %v292_v10, %v896_v59  ;;  %v1023_v59 = vld [vmem:[#allocation6] ss:$0 sm:$0xff] }
 0x136   :  { %v323_v62 = vadd.f32 %v968_v16, %v311_v60 }
 0x137   :  { %v312_v58 = vmul.f32 %v952_v2, %v300_v55 }
 0x139   :  { %v324_v61 = vadd.f32 %v968_v16, %v312_v58 }
 0x13b   :  { %v328_v63 = vpack.c.bf16 %v324_v61, %v323_v62 }
 0x13d   :  { %559 = vmatmul.msk.bf16.gmra.mxu3 %vm117_vm0, %v327_v53  ;;  %571 = vmatmul.msk.bf16.gmra.mxu1 %vm117_vm0, %v327_v53 }
 0x13e   :  { %569 = vmatmul.msk.bf16.vlgmr.msrb.gmra.mxu0 %vm117_vm0, %v325_v37  ;;  %583 = vmatmul.msk.bf16.gmra.mxu2 %vm117_vm0, %v327_v53 }
 0x14d   :  { %560 = vmatmul.msk.bf16.gmra.mxu3 %vm117_vm0, %v328_v63  ;;  %572 = vmatmul.msk.bf16.gmra.mxu1 %vm117_vm0, %v328_v63 }
 0x14e   :  { %581 = vmatmul.msk.bf16.vlgmr.msra.gmra.mxu0 %vm117_vm0, %v325_v37  ;;  %584 = vmatmul.msk.bf16.gmra.mxu2 %vm117_vm0, %v328_v63 }
 0x1aa   :  { %v424_v0 = vpop.f32.mrf.mxu1 }
 0x1ab   :  { %v370_v1 = vpop.f32.mrf.mxu0  ;;  %v425_v2 = vadd.f32 %v1021_v56, %v424_v0 }
 0x1ac   :  { %v371_v3 = vadd.f32 %v1023_v59, %v370_v1 }
 0x1ad   :  { %v507_v5 = vpack.c.bf16 %v425_v2, %v425_v2 }
 0x1ae   :  { %v488_v6 = vpack.c.bf16 %v371_v3, %v371_v3 }
 0x1af   :  { %587 = vst.msk [vmem:[%s1156_s9 + $0x28] sm:$0xf] %vm496_vm11, %v507_v5 }
 0x1b0   :  { %497 = vst.msk [vmem:[%s1156_s9] sm:$0xf] %vm496_vm11, %v488_v6  ;;  %v375_v8 = vpop.f32.mrf.mxu3 }
 0x1b1   :  { %v376_v22 = vadd.f32 %v1023_v59, %v375_v8  ;;  %v473_v28 = vpop.f32.mrf.mxu2 }
 0x1b2   :  { %v474_v29 = vadd.f32 %v1027_v7, %v473_v28  ;;  %v426_v9 = vpop.f32.mrf.mxu1 }
 0x1b3   :  { %v490_v11 = vpack.c.bf16 %v376_v22, %v376_v22  ;;  %v372_v12 = vpop.f32.mrf.mxu0  ;;  %v427_v13 = vadd.f32 %v1021_v56, %v426_v9 }
 0x1b4   :  { %v524_v14 = vpack.c.bf16 %v474_v29, %v474_v29  ;;  %v373_v15 = vadd.f32 %v1023_v59, %v372_v12 }
 0x1b5   :  { %499 = vst.msk [vmem:[%s1156_s9 + $0x8] sm:$0xf] %vm496_vm11, %v490_v11  ;;  %v508_v16 = vpack.c.bf16 %v427_v13, %v427_v13 }
 0x1b6   :  { %532 = vst.msk [vmem:[%s1157_s10 + $0x8] sm:$0xf] %vm496_vm11, %v524_v14  ;;  %v489_v17 = vpack.c.bf16 %v373_v15, %v373_v15 }
 0x1b7   :  { %588 = vst.msk [vmem:[%s1156_s9 + $0x2c] sm:$0xf] %vm496_vm11, %v508_v16 }
 0x1b8   :  { %498 = vst.msk [vmem:[%s1156_s9 + $0x4] sm:$0xf] %vm496_vm11, %v489_v17  ;;  %v377_v18 = vpop.f32.mrf.mxu3 }
 0x1b9   :  { %v378_v19 = vadd.f32 %v1023_v59, %v377_v18  ;;  %v475_v20 = vpop.f32.mrf.mxu2 }
 0x1ba   :  { %v476_v42 = vadd.f32 %v1027_v7, %v475_v20  ;;  %v429_v21 = vpop.f32.mrf.mxu1 }
 0x1bb   :  { %v491_v24 = vpack.c.bf16 %v378_v19, %v378_v19  ;;  %v419_v25 = vpop.f32.mrf.mxu0  ;;  %v430_v26 = vadd.f32 %v1021_v56, %v429_v21 }
 0x1bc   :  { %v525_v43 = vpack.c.bf16 %v476_v42, %v476_v42  ;;  %v420_v27 = vadd.f32 %v1021_v56, %v419_v25 }
 0x1bd   :  { %500 = vst.msk [vmem:[%s1156_s9 + $0xc] sm:$0xf] %vm496_vm11, %v491_v24  ;;  %v509_v23 = vpack.c.bf16 %v430_v26, %v430_v26 }
 0x1be   :  { %533 = vst.msk [vmem:[%s1157_s10 + $0xc] sm:$0xf] %vm496_vm11, %v525_v43  ;;  %v505_v30 = vpack.c.bf16 %v420_v27, %v420_v27 }
 0x1bf   :  { %589 = vst.msk [vmem:[%s1156_s9 + $0x30] sm:$0xf] %vm496_vm11, %v509_v23 }
 0x1c0   :  { %585 = vst.msk [vmem:[%s1156_s9 + $0x20] sm:$0xf] %vm496_vm11, %v505_v30  ;;  %v380_v31 = vpop.f32.mrf.mxu3 }
 0x1c1   :  { %v381_v32 = vadd.f32 %v1023_v59, %v380_v31  ;;  %v478_v33 = vpop.f32.mrf.mxu2 }
 0x1c2   :  { %v479_v34 = vadd.f32 %v1027_v7, %v478_v33  ;;  %v431_v35 = vpop.f32.mrf.mxu1 }
 0x1c3   :  { %v492_v36 = vpack.c.bf16 %v381_v32, %v381_v32  ;;  %v421_v37 = vpop.f32.mrf.mxu0  ;;  %v432_v38 = vadd.f32 %v1021_v56, %v431_v35 }
 0x1c4   :  { %v526_v39 = vpack.c.bf16 %v479_v34, %v479_v34  ;;  %v422_v40 = vadd.f32 %v1021_v56, %v421_v37 }
 0x1c5   :  { %501 = vst.msk [vmem:[%s1156_s9 + $0x10] sm:$0xf] %vm496_vm11, %v492_v36  ;;  %v510_v45 = vpack.c.bf16 %v432_v38, %v432_v38 }
 0x1c6   :  { %534 = vst.msk [vmem:[%s1157_s10 + $0x10] sm:$0xf] %vm496_vm11, %v526_v39  ;;  %v506_v47 = vpack.c.bf16 %v422_v40, %v422_v40 }
 0x1c7   :  { %590 = vst.msk [vmem:[%s1156_s9 + $0x34] sm:$0xf] %vm496_vm11, %v510_v45 }
 0x1c8   :  { %586 = vst.msk [vmem:[%s1156_s9 + $0x24] sm:$0xf] %vm496_vm11, %v506_v47  ;;  %v382_v48 = vpop.f32.mrf.mxu3 }
 0x1c9   :  { %v383_v49 = vadd.f32 %v1023_v59, %v382_v48  ;;  %v480_v50 = vpop.f32.mrf.mxu2 }
 0x1ca   :  { %v481_v46 = vadd.f32 %v1027_v7, %v480_v50  ;;  %v434_v51 = vpop.f32.mrf.mxu1 }
 0x1cb   :  { %v493_v52 = vpack.c.bf16 %v383_v49, %v383_v49  ;;  %v435_v44 = vadd.f32 %v1021_v56, %v434_v51  ;;  %v468_v41 = vpop.f32.mrf.mxu0 }
 0x1cc   :  { %v527_v4 = vpack.c.bf16 %v481_v46, %v481_v46  ;;  %v469_v53 = vadd.f32 %v1027_v7, %v468_v41 }
 0x1cd   :  { %502 = vst.msk [vmem:[%s1156_s9 + $0x14] sm:$0xf] %vm496_vm11, %v493_v52  ;;  %v511_v10 = vpack.c.bf16 %v435_v44, %v435_v44 }
 0x1ce   :  { %535 = vst.msk [vmem:[%s1157_s10 + $0x14] sm:$0xf] %vm496_vm11, %v527_v4  ;;  %v522_v54 = vpack.c.bf16 %v469_v53, %v469_v53 }
 0x1cf   :  { %591 = vst.msk [vmem:[%s1156_s9 + $0x38] sm:$0xf] %vm496_vm11, %v511_v10 }
 0x1d0   :  { %530 = vst.msk [vmem:[%s1157_s10] sm:$0xf] %vm496_vm11, %v522_v54  ;;  %v385_v55 = vpop.f32.mrf.mxu3 }
 0x1d1   :  { %v386_v57 = vadd.f32 %v1023_v59, %v385_v55  ;;  %v483_v58 = vpop.f32.mrf.mxu2 }
 0x1d2   :  { %v484_v60 = vadd.f32 %v1027_v7, %v483_v58  ;;  %v436_v61 = vpop.f32.mrf.mxu1 }
 0x1d3   :  { %v494_v62 = vpack.c.bf16 %v386_v57, %v386_v57  ;;  %v437_v63 = vadd.f32 %v1021_v56, %v436_v61  ;;  %v470_v0 = vpop.f32.mrf.mxu0 }
 0x1d4   :  { %v528_v1 = vpack.c.bf16 %v484_v60, %v484_v60  ;;  %v471_v2 = vadd.f32 %v1027_v7, %v470_v0 }
 0x1d5   :  { %503 = vst.msk [vmem:[%s1156_s9 + $0x18] sm:$0xf] %vm496_vm11, %v494_v62  ;;  %v512_v3 = vpack.c.bf16 %v437_v63, %v437_v63 }
 0x1d6   :  { %536 = vst.msk [vmem:[%s1157_s10 + $0x18] sm:$0xf] %vm496_vm11, %v528_v1  ;;  %v523_v5 = vpack.c.bf16 %v471_v2, %v471_v2 }
 0x1d7   :  { %592 = vst.msk [vmem:[%s1156_s9 + $0x3c] sm:$0xf] %vm496_vm11, %v512_v3 }
 0x1d8   :  { %531 = vst.msk [vmem:[%s1157_s10 + $0x4] sm:$0xf] %vm496_vm11, %v523_v5  ;;  %v387_v56 = vpop.f32.mrf.mxu3 }
 0x1d9   :  { %v388_v6 = vadd.f32 %v1023_v59, %v387_v56  ;;  %v485_v8 = vpop.f32.mrf.mxu2 }
 0x1da   :  { %v486_v22 = vadd.f32 %v1027_v7, %v485_v8 }
 0x1db   :  { %v495_v28 = vpack.c.bf16 %v388_v6, %v388_v6 }
 0x1dc   :  { %v529_v29 = vpack.c.bf16 %v486_v22, %v486_v22 }
 0x1dd   :  { %504 = vst.msk [vmem:[%s1156_s9 + $0x1c] sm:$0xf] %vm496_vm11, %v495_v28 }
 0x1de   :  { %537 = vst.msk [vmem:[%s1157_s10 + $0x1c] sm:$0xf] %vm496_vm11, %v529_v29 }
 0x1df   :  { %546 = vsyncpa [#allocation3], 1 }
 0x1e0   :  { %547 = vsyncpa [#allocation5], 1 }
 0x1e1   :  { %548 = vsyncpa [#allocation8], 1 }

// kernel: encoder_block.5
= control target key start
LH: loop header
LB: loop body
LE: loop exit
PB: predicated region body
PF: predicated region fallthrough
CT: control target
= control target key end

     0   :  { %s1232_s24 = smov 0   ;;  %s1234_s25 = smov 0   ;;  %s1381_s0 = inlined_call_operand.vmem [shape: bf16[2,2,1024], index: 0, kind: input, shape index: {}]   ;;  %s1382_s1 = inlined_call_operand.vmem [shape: bf16[2,1024,16], index: 1, kind: input, shape index: {}]   ;;  %s1383_s2 = inlined_call_operand.vmem [shape: f32[2,1,16], index: 2, kind: input, shape index: {}]   ;;  %s1384_s3 = inlined_call_operand.vmem [shape: f32[2,1,16], index: 3, kind: input, shape index: {}]   ;;  %s1385_s4 = inlined_call_operand.vmem [shape: f32[2,1,16], index: 4, kind: input, shape index: {}]   ;;  %s1386_s5 = inlined_call_operand.vmem [shape: bf16[2,16,1024], index: 5, kind: input, shape index: {}]   ;;  %s1387_s6 = inlined_call_operand.vmem [shape: f32[2,1,1024], index: 6, kind: input, shape index: {}]   ;;  %s1388_s7 = inlined_call_operand.vmem [shape: bf16[2,2,1024], index: 7, kind: output, shape index: {}]  }
   0x1   :  { %s1236_s26 = smov 0   ;;  %s1238_s27 = smov 0  }
   0x2   :  { %s1240_s28 = smov 0  }
   0x3 LB: > { %1392 = sst [smem:[#allocation3_spill]] %s1181_s26  ;;  %s26_s29 = sadd.s32 1, %s1181_s26  ;;  %s1189_s28 = sphi %s1240_s28, %s17_s28   ;;  %s1185_s27 = sphi %s1238_s27, %s1402_s27   ;;  %s1181_s26 = sphi %s1236_s26, %s1401_s26   ;;  %s1177_s25 = sphi %s1234_s25, %s1400_s25   ;;  %s1173_s24 = sphi %s1232_s24, %s1399_s24  }
   0x4   : > { %1393 = sst [smem:[#allocation4_spill]] %s1185_s27  ;;  %s29_s30 = sadd.s32 1, %s1185_s27 }
   0x5   : > { %1394 = sst [smem:[#allocation5_spill]] %s1189_s28  ;;  %p27_p0 = scmp.ge.s32.totalorder %s26_s29, 4 }
   0x6   : > { %p964_p1 = scmp.ge.s32.totalorder %s1189_s28, 1  ;;  %p315_p2 = scmp.lt.s32.totalorder %s1189_s28, 9 }
   0x7   : > { %s1404_s29 = smov (%p27_p0, %s26_s29), 0  ;;  %s1406_s30 = smov (!%p27_p0, %s29_s30), %s1185_s27 }
   0x8   : > { %1395 = sst [smem:[#allocation6_spill]] %s1404_s29  ;;  %p316_p3 = pnand %p964_p1, %p315_p2 }
   0x9   : > { %p31_p4 = scmp.ge.s32.totalorder %s1406_s30, 2  ;;  %s965_s8 = sshll.u32 (!%p316_p3), %s1173_s24, 1 }
   0xa   : > { %319 = sbr.rel (%p316_p3) target bundleno = 370 (0x172), region = 48  ;;  %p377_p5 = scmp.lt.s32.totalorder (!%p316_p3), %s1177_s25, 1 }
   0xb   : > { %s1408_s30 = smov (%p31_p4, %s1406_s30), 0  ;;  %p379_p6 = scmp.lt.s32.totalorder (!%p316_p3), %s965_s8, 7 }
   0xc   : > { %1396 = sst [smem:[#allocation7_spill]] %s1408_s30  ;;  %s967_s9 = sshll.u32 (!%p316_p3), %s1173_s24, 5 }
   0xd   : > { %p388_p7 = scmp.lt.s32.totalorder (!%p316_p3), %s967_s9, 127  ;;  %p974_p8 = scmp.ne.s32.totalorder (!%p316_p3), %s1173_s24, 0 }
   0xf   : > { %s1410_s25 = smov (!%p377_p5, %s1177_s25), 1  ;;  %s1412_s8 = smov (!%p379_p6, %s965_s8), 7 }
  0x10   : > { %s1269_s10 = sshll.u32 %s1410_s25, 3  ;;  %s968_s12 = sshll.u32 %s1410_s25, 7 }
  0x11   : > { %s382_s11 = sadd.s32 %s1269_s10, %s1412_s8  ;;  %s397_s18 = scalar_lea.vmem %s1383_s2, %s1410_s25 }
  0x12   : > { %s383_s15 = scalar_lea.vmem %s1381_s0, %s382_s11  ;;  %s1414_s9 = smov (!%p388_p7, %s967_s9), 127 }
  0x13   : > { %s403_s30 = scalar_lea.vmem %s1385_s4, %s1410_s25  ;;  %s391_s29 = sadd.s32 %s968_s12, %s1414_s9 }
  0x14   : > { %s1082_s8 = sshll.u32 %s1410_s25, 6  ;;  %s969_s27 = sshll.u32 %s391_s29, 2 }
  0x15   : > { %s1292_s11 = scalar_lea.vmem %s1386_s5, %s1082_s8  ;;  %s1297_s16 = scalar_lea.vmem %s1382_s1, %s969_s27 }
  0x16   : > { %s412_s20 = scalar_lea.vmem %s1387_s6, %s1269_s10  ;;  %s416_s9 = scalar_lea.vmem %s1388_s7, %s1269_s10 }
  0x17   : > { %421 = sbr.rel (%p974_p8) target bundleno = 30 (0x1e), region = 52 }
  0x1c   : > { %vm422_vm0 = vcmask 123904   ;;  %v1191_v0 = vmov 0.0  }
  0x1d   : > { %423 = vst.msk [vmem:[#allocation2] sm:$0x3] %vm422_vm0, %v1191_v0 }
  0x1e PF: > { %v1090_v1 = vld [vmem:[%s1297_s16 + $0x38] sm:$0xff]  ;;  %v1089_v3 = vld [vmem:[%s1297_s16 + $0x30] sm:$0xff]  ;;  %v425_v5 = vld [vmem:[%s383_s15] sm:$0x3]  ;;  %vm587_vm1 = vcmask 123904   ;;  %p1039_p9 = scmp.ne.s32.totalorder %s1173_s24, 3 }
  0x1f   : > { %v1098_v2 = vld [vmem:[%s1297_s16 + $0x78] sm:$0xff]  ;;  %560 = vmatpush.bf16.msra.mxu0 %v1090_v1  ;;  %v1097_v4 = vld [vmem:[%s1297_s16 + $0x70] sm:$0xff]  ;;  %v1088_v6 = vld [vmem:[%s1297_s16 + $0x28] sm:$0xff]  ;;  %459 = vst [vmem:[#allocation1] ss:$9 sm:$0xff] %v425_v5  ;;  %s1397_s29 = scalar_lea.vmem (!%p1039_p9), %s1384_s3, %s1410_s25 }
  0x20   : > { %573 = vmatpush.bf16.msra.mxu1 %v1098_v2  ;;  %v1096_v7 = vld [vmem:[%s1297_s16 + $0x68] sm:$0xff]  ;;  %v1087_v8 = vld [vmem:[%s1297_s16 + $0x20] sm:$0xff]  ;;  %v1086_v10 = vld [vmem:[%s1297_s16 + $0x18] sm:$0xff] }
  0x21   : > { %v1095_v9 = vld [vmem:[%s1297_s16 + $0x60] sm:$0xff]  ;;  %v1094_v11 = vld [vmem:[%s1297_s16 + $0x58] sm:$0xff]  ;;  %v1085_v12 = vld [vmem:[%s1297_s16 + $0x10] sm:$0xff] }
  0x22   : > { %v1093_v13 = vld [vmem:[%s1297_s16 + $0x50] sm:$0xff]  ;;  %v1084_v14 = vld [vmem:[%s1297_s16 + $0x8] sm:$0xff]  ;;  %v1083_v16 = vld [vmem:[%s1297_s16] sm:$0xff] }
  0x23   : > { %561 = vmatpush.bf16.msra.mxu0 %v1089_v3  ;;  %v1092_v15 = vld [vmem:[%s1297_s16 + $0x48] sm:$0xff]  ;;  %v1091_v17 = vld [vmem:[%s1297_s16 + $0x40] sm:$0xff] }
  0x24   : > { %574 = vmatpush.bf16.msra.mxu1 %v1097_v4  ;;  %v424_v21 = vld [vmem:[#allocation2] sm:$0x3] }
  0x26   : > { %v460_v18 = vld [vmem:[#allocation1] sm:$0xff]  ;;  %v461_v19 = vld [vmem:[#allocation1 + $0x9] sm:$0xff] }
  0x27   : > { %562 = vmatpush.bf16.msra.mxu0 %v1088_v6 }
  0x28   : > { %575 = vmatpush.bf16.msra.mxu1 %v1096_v7 }
  0x2b   : > { %563 = vmatpush.bf16.msra.mxu0 %v1087_v8 }
  0x2c   : > { %576 = vmatpush.bf16.msra.mxu1 %v1095_v9 }
  0x2f   : > { %564 = vmatpush.bf16.msra.mxu0 %v1086_v10 }
  0x30   : > { %577 = vmatpush.bf16.msra.mxu1 %v1094_v11 }
  0x33   : > { %565 = vmatpush.bf16.msra.mxu0 %v1085_v12 }
  0x34   : > { %578 = vmatpush.bf16.msra.mxu1 %v1093_v13 }
  0x37   : > { %566 = vmatpush.bf16.msra.mxu0 %v1084_v14 }
  0x38   : > { %579 = vmatpush.bf16.msra.mxu1 %v1092_v15 }
  0x3b   : > { %567 = vmatpush.bf16.msra.mxu0 %v1083_v16 }
  0x3c   : > { %580 = vmatpush.bf16.msra.mxu1 %v1091_v17 }
  0x3e   : > { %568 = vmatmul.bf16.vlgmr.msra.gmra.mxu0 %v460_v18 }
  0x3f   : > { %581 = vmatmul.bf16.vlgmr.msra.gmra.mxu1 %v461_v19 }
  0xbb   : > { %v569_v20 = vpop.f32.mrf.mxu0 }
  0xbc   : > { %v582_v22 = vpop.f32.mrf.mxu1 }
  0xbd   : > { %v583_v23 = vadd.f32 %v582_v22, %v569_v20 }
  0xbf   : > { %v586_v24 = vadd.f32 %v583_v23, %v424_v21 }
  0xc0   : > { %592 = sbr.rel (%p1039_p9) target bundleno = 370 (0x172), region = 56 }
  0xc1   : > { %588 = vst.msk [vmem:[#allocation2] sm:$0x3] %vm587_vm1, %v586_v24 }
  0xc3   : > { %v571_v25 = vpop.f32.mrf.mxu0 }
  0xc4   : > { %v584_v26 = vpop.f32.mrf.mxu1 }
  0xc5   : > { %v1042_v27 = vld [vmem:[%s1292_s11] sm:$0xf]  ;;  %v1099_v29 = vld [vmem:[%s1292_s11 + $0x4] sm:$0xf]  ;;  %v1050_v32 = vld [vmem:[%s1292_s11 + $0x8] sm:$0xf] }
  0xc6   : > { %v1103_v28 = vld [vmem:[%s1292_s11 + $0x1c] sm:$0xf0]  ;;  %v1044_v31 = vld [vmem:[%s1292_s11 + $0x20] sm:$0xf0]  ;;  %v1104_v33 = vld [vmem:[%s1292_s11 + $0x24] sm:$0xf0] }
  0xc7   : > { %v1043_v30 = vor.u32 %v1103_v28, %v1042_v27  ;;  %v1047_v34 = vor.u32 %v1099_v29, %v1044_v31  ;;  %v1051_v35 = vor.u32 %v1104_v33, %v1050_v32  ;;  %v1100_v36 = vld [vmem:[%s1292_s11 + $0xc] sm:$0xf]  ;;  %v1148_v40 = vld [vmem:[%s397_s18] ss:$0 sm:$0xff]  ;;  %v1066_v44 = vld [vmem:[%s1292_s11 + $0x18] sm:$0xf] }
  0xc8   : > { %v1052_v37 = vld [vmem:[%s1292_s11 + $0x28] sm:$0xf0]  ;;  %v593_v38 = vld [vmem:[#allocation2] sm:$0x3]  ;;  %v1149_v41 = vld [vmem:[%s1397_s29] ss:$0 sm:$0xff] }
  0xc9   : > { %688 = vmatpush.bf16.msra.mxu0 %v1043_v30  ;;  %v1055_v39 = vor.u32 %v1100_v36, %v1052_v37  ;;  %701 = vmatpush.bf16.msra.mxu1 %v1047_v34  ;;  %v598_v42 = vadd.f32 %v1148_v40, %v593_v38  ;;  %v1150_v43 = vld [vmem:[%s403_s30] ss:$0 sm:$0xff]  ;;  %v1106_v45 = vld [vmem:[%s1292_s11 + $0x34] sm:$0xf0]  ;;  %v1102_v47 = vld [vmem:[%s1292_s11 + $0x1c] sm:$0xf] }
  0xca   : > { %714 = vmatpush.bf16.msra.mxu2 %v1051_v35  ;;  %v1067_v46 = vor.u32 %v1106_v45, %v1066_v44  ;;  %v1068_v48 = vld [vmem:[%s1292_s11 + $0x38] sm:$0xf0]  ;;  %v1058_v49 = vld [vmem:[%s1292_s11 + $0x10] sm:$0xf]  ;;  %v1101_v53 = vld [vmem:[%s1292_s11 + $0x14] sm:$0xf] }
  0xcb   : > { %727 = vmatpush.bf16.msra.mxu3 %v1055_v39  ;;  %v603_v50 = vmul.f32 %v1149_v41, %v598_v42  ;;  %v1071_v51 = vor.u32 %v1102_v47, %v1068_v48  ;;  %v1105_v52 = vld [vmem:[%s1292_s11 + $0x2c] sm:$0xf0]  ;;  %v1060_v54 = vld [vmem:[%s1292_s11 + $0x30] sm:$0xf0]  ;;  %vm677_vm2 = vcmask 130048   ;;  %v619_v2 = vld [vmem:[%s412_s20] sm:$0xff] }
  0xcc   : > { %v1059_v55 = vor.u32 %v1105_v52, %v1058_v49  ;;  %v1063_v56 = vor.u32 %v1101_v53, %v1060_v54  ;;  %v623_v3 = vperm.slane %v619_v2, 2  ;;  %v624_v4 = vperm.slane %v619_v2, 3 }
  0xcd   : > { %v608_v57 = vadd.f32 %v1150_v43, %v603_v50  ;;  %v625_v5 = vperm.slane %v619_v2, 4  ;;  %v626_v6 = vperm.slane %v619_v2, 5  ;;  %v621_v7 = vperm.slane %v619_v2, 0 }
  0xce   : > { %766 = vmatpush.bf16.msrb.mxu2 %v1067_v46  ;;  %740 = vmatpush.bf16.msrb.mxu0 %v1059_v55  ;;  %v622_v8 = vperm.slane %v619_v2, 1  ;;  %v627_v21 = vperm.slane %v619_v2, 6  ;;  %v628_v22 = vperm.slane %v619_v2, 7  ;;  %vm804_vm3 = vcmask 1042434  }
  0xcf   : > { %779 = vmatpush.bf16.msrb.mxu3 %v1071_v51  ;;  %753 = vmatpush.bf16.msrb.mxu1 %v1063_v56  ;;  %v609_v58 = vmax.f32 %v608_v57, 0.0  ;;  %vm810_vm4 = vcmask 1044484   ;;  %vm800_vm5 = vcmask 1040384   ;;  %vm808_vm6 = vcmask 1041408  }
  0xd0   : > { %vm814_vm7 = vcmask 1046534   ;;  %vm818_vm8 = vcmask 1045508   ;;  %vm820_vm9 = vcmask 1043456  }
  0xd1   : > { %v610_v59 = vpack.c.bf16 %v609_v58, %v609_v58 }
  0xd3   : > { %1072 = vmatmul.msk.bf16.vlgmr.msra.gmra.mxu0 %vm677_vm2, %v610_v59  ;;  %1073 = vmatmul.msk.bf16.vlgmr.msra.gmra.mxu1 %vm677_vm2, %v610_v59 }
  0xd4   : > { %1074 = vmatmul.msk.bf16.vlgmr.msra.gmra.mxu2 %vm677_vm2, %v610_v59  ;;  %1075 = vmatmul.msk.bf16.vlgmr.msra.gmra.mxu3 %vm677_vm2, %v610_v59 }
  0xe3   : > { %1076 = vmatmul.msk.bf16.vlgmr.msrb.gmra.mxu0 %vm677_vm2, %v610_v59  ;;  %1077 = vmatmul.msk.bf16.vlgmr.msrb.gmra.mxu1 %vm677_vm2, %v610_v59 }
  0xe4   : > { %1078 = vmatmul.msk.bf16.vlgmr.msrb.gmra.mxu2 %vm677_vm2, %v610_v59  ;;  %1079 = vmatmul.msk.bf16.vlgmr.msrb.gmra.mxu3 %vm677_vm2, %v610_v59 }
 0x150   : > { %v690_v60 = vpop.f32.mrf.mxu0  ;;  %v703_v61 = vpop.f32.mrf.mxu1 }
 0x151   : > { %v691_v17 = vadd.f32 %v690_v60, %v621_v7  ;;  %v704_v18 = vadd.f32 %v703_v61, %v622_v8 }
 0x153   : > { %v785_v23 = vpack.c.bf16 %v704_v18, %v691_v17 }
 0x155   : > { %v793_v34 = vrot.slane %v785_v23, 3 }
 0x157   : > { %v716_v62 = vpop.f32.mrf.mxu2  ;;  %v729_v63 = vpop.f32.mrf.mxu3  ;;  %v803_v40 = vsel %vm800_vm5, %v785_v23, %v793_v34 }
 0x158   : > { %v692_v0 = vpop.f32.mrf.mxu0  ;;  %v705_v1 = vpop.f32.mrf.mxu1  ;;  %v717_v9 = vadd.f32 %v716_v62, %v623_v3  ;;  %v730_v10 = vadd.f32 %v729_v63, %v624_v4 }
 0x15a   : > { %v786_v19 = vpack.c.bf16 %v730_v10, %v717_v9 }
 0x15c   : > { %v794_v24 = vrot.slane %v786_v19, 6  ;;  %v795_v25 = vrot.slane %v786_v19, 1 }
 0x15e   : > { %v807_v36 = vsel %vm804_vm3, %v794_v24, %v795_v25 }
 0x15f   : > { %v718_v11 = vpop.f32.mrf.mxu2  ;;  %v731_v12 = vpop.f32.mrf.mxu3  ;;  %v809_v42 = vsel %vm808_vm6, %v803_v40, %v807_v36 }
 0x160   : > { %v742_v13 = vpop.f32.mrf.mxu0  ;;  %v755_v14 = vpop.f32.mrf.mxu1 }
 0x161   : > { %v743_v15 = vadd.f32 %v742_v13, %v625_v5  ;;  %v756_v16 = vadd.f32 %v755_v14, %v626_v6 }
 0x163   : > { %v787_v20 = vpack.c.bf16 %v756_v16, %v743_v15 }
 0x165   : > { %v796_v28 = vrot.slane %v787_v20, 4  ;;  %v797_v29 = vrot.slane %v787_v20, 7 }
 0x167   : > { %v768_v26 = vpop.f32.mrf.mxu2  ;;  %v781_v27 = vpop.f32.mrf.mxu3  ;;  %v813_v37 = vsel %vm810_vm4, %v796_v28, %v797_v29 }
 0x168   : > { %v769_v30 = vadd.f32 %v768_v26, %v627_v21  ;;  %v782_v31 = vadd.f32 %v781_v27, %v628_v22  ;;  %v744_v32 = vpop.f32.mrf.mxu0  ;;  %v757_v33 = vpop.f32.mrf.mxu1 }
 0x16a   : > { %v788_v35 = vpack.c.bf16 %v782_v31, %v769_v30 }
 0x16c   : > { %v798_v38 = vrot.slane %v788_v35, 2  ;;  %v799_v39 = vrot.slane %v788_v35, 5 }
 0x16e   : > { %v817_v41 = vsel %vm814_vm7, %v798_v38, %v799_v39 }
 0x16f   : > { %v819_v43 = vsel %vm818_vm8, %v813_v37, %v817_v41  ;;  %v770_v44 = vpop.f32.mrf.mxu2  ;;  %v783_v45 = vpop.f32.mrf.mxu3 }
 0x170   : > { %v821_v46 = vsel %vm820_vm9, %v809_v42, %v819_v43 }
 0x171   : > { %823 = vst [vmem:[%s416_s9] sm:$0xff] %v821_v46 }
 0x172 PF: > { %s1398_s23 = sld [smem:[#allocation5_spill]] }
 0x173   : > { %s1399_s24 = sld [smem:[#allocation3_spill]] }
 0x174   : > { %s1400_s25 = sld [smem:[#allocation4_spill]] }
 0x175   : > { %s1401_s26 = sld [smem:[#allocation6_spill]] }
 0x176   : > { %s1402_s27 = sld [smem:[#allocation7_spill]] }
 0x178   : > { %s17_s28 = sadd.s32 1, %s1398_s23  }
 0x179   : > { %p14_p10 = scmp.ge.s32.totalorder %s17_s28, 10  }
 0x17b   :  { %16 = sbr.rel (!%p14_p10) target bundleno = 3 (0x3), region = 104 }

// kernel: encoder_block.7
= control target key start
LH: loop header
LB: loop body
LE: loop exit
PB: predicated region body
PF: predicated region fallthrough
CT: control target
= control target key end

     0   :  { %8 = vsyncpa [#allocation3], 0  ;;  %s1024_s0 = inlined_call_operand.vmem [shape: bf16[2,32,32], index: 0, kind: input, shape index: {}]   ;;  %s1025_s1 = inlined_call_operand.vmem [shape: bf16[2,32,32], index: 1, kind: input, shape index: {}]   ;;  %s1026_s2 = inlined_call_operand.vmem [shape: f32[2,32,4], index: 2, kind: input, shape index: {}]   ;;  %s1027_s3 = inlined_call_operand.hbm [shape: f32[2,4,32,32], index: 3, kind: output, shape index: {}]  }
   0x1   :  { %10 = vsyncpa [#allocation3 + $0x1], 0  ;;  %s874_s12 = smov 0   ;;  %s876_s13 = smov 0  }
   0x2   :  { %s878_s14 = smov 0   ;;  %s880_s15 = smov 0  }
   0x3 LB: > { %s895_s16 = sadd.s32 4294967295, %s843_s15   ;;  %s629_s17 = sadd.s32 4294967294, %s843_s15   ;;  %s843_s15 = sphi %s880_s15, %s1033_s15   ;;  %s839_s14 = sphi %s878_s14, %s1032_s14   ;;  %s835_s13 = sphi %s876_s13, %s1031_s13   ;;  %s831_s12 = sphi %s874_s12, %s1030_s12  }
   0x4   : > { %s899_s18 = sadd.s32 1, %s843_s15   ;;  %s101_s19 = sadd.s32 1, %s839_s14 }
   0x5   : > { %s98_s20 = ssub.s32 %s843_s15, %s899_s18  ;;  %p111_p0 = scmp.ne.s32.totalorder %s839_s14, %s835_s13 }
   0x6   : > { %p99_p1 = scmp.eq.s32.totalorder %s98_s20, 0  ;;  %p112_p2 = scmp.eq.s32.totalorder %s895_s16, 1 }
   0x7   : > { %p117_p3 = scmp.ne.s32.totalorder %s835_s13, %s831_s12  ;;  %p118_p4 = scmp.eq.s32.totalorder %s629_s17, 1 }
   0x8   : > { %s910_s21 = scalar_select %p99_p1, %s839_s14, %s101_s19  }
   0x9   : > { %p912_p5 = por %p112_p2, %p111_p0  ;;  %p916_p6 = por %p118_p4, %p117_p3 }
   0xa   : > { %p632_p7 = scmp.ge.s32.totalorder %s843_s15, 1  ;;  %p160_p8 = scmp.lt.s32.totalorder %s843_s15, 3 }
   0xc   : > { %p161_p9 = pnand %p632_p7, %p160_p8 }
   0xd   : > { %p194_p10 = scmp.lt.s32.totalorder (!%p161_p9), %s895_s16, 1  ;;  %s845_s29 = smov (!%p161_p9), 120  }
   0xe   : > { %164 = sbr.rel (%p161_p9) target bundleno = 335 (0x14f), region = 32  ;;  %s846_s30 = smov (!%p161_p9), 112  }
   0xf   : > { %s847_s4 = smov (!%p161_p9), 104   ;;  %s191_s17 = sand.u32 (!%p161_p9), 1, %s835_s13  }
  0x10   : > { %s633_s19 = sshll.u32 (!%p161_p9), %s191_s17, 7 }
  0x11   : > { %s956_s20 = scalar_lea.vmem (!%p161_p9), [#allocation2], %s633_s19 }
  0x13   : > { %s924_s24 = scalar_select %p194_p10, %s895_s16, 1  ;;  %vm242_vm0 = vcmask 64512   ;;  %v848_v7 = vmov 0   ;;  %v849_v10 = vmov 1   ;;  %v850_v12 = vmov 2  }
  0x14   : > { %738 = vset.pattern.permute.xlu1 %v848_v7  ;;  %739 = vset.pattern.permute.xlu2 %v848_v7  ;;  %v851_v27 = vmov 3   ;;  %vm306_vm1 = vcmask 261120  }
  0x15   : > { %s681_s25 = sshll.u32 %s924_s24, 4  ;;  %s683_s8 = sshll.u32 %s924_s24, 5  ;;  %737 = vset.pattern.permute.xlu0 %v848_v7 }
  0x16   : > { %s203_s28 = scalar_lea.vmem %s1025_s1, %s681_s25  ;;  %s198_s7 = scalar_lea.vmem %s1024_s0, %s681_s25 }
  0x17   : > { %v687_v0 = vld [vmem:[%s203_s28 + $0x8] sm:$0xff]  ;;  %v686_v1 = vld [vmem:[%s203_s28] sm:$0xff]  ;;  %s208_s11 = scalar_lea.vmem %s1026_s2, %s683_s8  ;;  %s688_s24 = sshll.u32 %s895_s16, 7 }
  0x18   : > { %317 = vrot.lane.b32.xlu1 %v687_v0, %s845_s29  ;;  %389 = vrot.lane.b32.xlu0 %v687_v0, %s846_s30  ;;  %v253_v2 = vsel %vm242_vm0, %v687_v0, 0  ;;  %v250_v3 = vsel %vm242_vm0, %v686_v1, 0  ;;  %v684_v4 = vld [vmem:[%s198_s7] sm:$0xff]  ;;  %v685_v5 = vld [vmem:[%s198_s7 + $0x8] sm:$0xff]  ;;  %s539_s27 = scalar_lea.hbm %s1027_s3, %s688_s24  ;;  %s540_s28 = sshll.u32 %s956_s20, 4  ;;  %s541_s28 = int_to_ptr.vmem [resolvable:$true] %s540_s28 }
  0x19   : > { %459 = vrot.lane.b32.xlu2 %v686_v1, %s847_s4  ;;  %261 = vmatpush.bf16.xpose.msra.mxu0 %v253_v2  ;;  %v219_v6 = vld [vmem:[%s208_s11 + $0x8] sm:$0xff]  ;;  %v221_v8 = vld [vmem:[%s208_s11 + $0x18] sm:$0xff]  ;;  %v220_v9 = vld [vmem:[%s208_s11 + $0x10] sm:$0xff]  ;;  %s528_s16 = scalar_lea.sflag [#allocation3], %s191_s17  ;;  %s801_s7 = scalar_lea.hbm %s1027_s3, 256 }
  0x1a   : > { %v218_v17 = vld [vmem:[%s208_s11] sm:$0xff] }
  0x20   : > { %461 = vrot.lane.b32.xlu0 %v687_v0, %s847_s4  ;;  %387 = vrot.lane.b32.xlu1 %v686_v1, %s846_s30 }
  0x21   : > { %315 = vrot.lane.b32.xlu2 %v686_v1, %s845_s29  ;;  %262 = vmatpush.bf16.xpose.msra.mxu0 %v250_v3 }
  0x28   : > { %383 = vrot.lane.b32.xlu0 %v684_v4, %s846_s30  ;;  %455 = vrot.lane.b32.xlu1 %v684_v4, %s847_s4 }
  0x29   : > { %311 = vrot.lane.b32.xlu2 %v684_v4, %s845_s29  ;;  %656 = vmatmul.msk.bf16.vlgmr.msra.gmra.mxu0 %vm242_vm0, %v684_v4 }
  0x30   : > { %385 = vrot.lane.b32.xlu0 %v685_v5, %s846_s30  ;;  %457 = vrot.lane.b32.xlu1 %v685_v5, %s847_s4 }
  0x31   : > { %313 = vrot.lane.b32.xlu2 %v685_v5, %s845_s29  ;;  %s542_s29 = sshll.u32 %s539_s27, 4  ;;  %s543_s29 = int_to_ptr.hbm [resolvable:$true] %s542_s29 }
  0x32   : > { %s795_s30 = sshra.s32 %s543_s29, 4  ;;  %s796_s30 = int_to_ptr.hbm [resolvable:$true] %s795_s30 }
  0x33   : > { %s797_s4 = scalar_lea.hbm %s796_s30, 128  ;;  %p802_p0 = scmp.lt.s32.totalorder %s796_s30, %s1027_s3 }
  0x34   : > { %p798_p11 = scmp.ne.s32.totalorder %s796_s30, %s797_s4  ;;  %p803_p1 = scmp.lt.s32.totalorder %s801_s7, %s797_s4 }
  0x36   : > { %p799_p12 = pnand %p798_p11, %p912_p5  ;;  %p804_p2 = por %p803_p1, %p802_p0 }
  0x38   : > { %281 = vperm.xlu1 %738, %v219_v6   ;;  %276 = vperm.xlu0 %737, %v218_v17   ;;  %p800_p13 = pneg %p799_p12 }
  0x39   : > { %657 = vmatmul.msk.bf16.gmra.mxu0 %vm242_vm0, %v685_v5  ;;  %286 = vperm.xlu2 %739, %v220_v9  }
  0x3a   : > { %p805_p3 = pnand %p804_p2, %p800_p13 }
  0x40   : > { %291 = vperm.xlu1 %738, %v221_v8   ;;  %741 = vset.pattern.permute.xlu0 %v849_v10 }
  0x41   : > { %740 = vset.pattern.permute.xlu2 %v849_v10  ;;  %355 = vperm.xlu0 %741, %v219_v6  }
  0x42   : > { %351 = vperm.xlu2 %740, %v218_v17  }
  0x48   : > { %742 = vset.pattern.permute.xlu1 %v849_v10 }
  0x49   : > { %359 = vperm.xlu1 %742, %v220_v9   ;;  %745 = vset.pattern.permute.xlu0 %v850_v12 }
  0x4a   : > { %363 = vperm.xlu2 %740, %v221_v8   ;;  %431 = vperm.xlu0 %745, %v220_v9  }
  0x51   : > { %743 = vset.pattern.permute.xlu1 %v850_v12 }
  0x52   : > { %423 = vperm.xlu1 %743, %v218_v17   ;;  %744 = vset.pattern.permute.xlu2 %v850_v12 }
  0x53   : > { %427 = vperm.xlu2 %744, %v219_v6   ;;  %748 = vset.pattern.permute.xlu0 %v851_v27 }
  0x54   : > { %507 = vperm.xlu0 %748, %v221_v8  }
  0x5a   : > { %435 = vperm.xlu1 %743, %v221_v8  }
  0x5b   : > { %746 = vset.pattern.permute.xlu2 %v851_v27 }
  0x5c   : > { %495 = vperm.xlu2 %746, %v218_v17  }
  0x62   : > { %747 = vset.pattern.permute.xlu1 %v851_v27 }
  0x63   : > { %499 = vperm.xlu1 %747, %v219_v6  }
  0x64   : > { %503 = vperm.xlu2 %746, %v220_v9  }
  0x73   : > { %v460_v11 = vpop.permute.xlu2 %459 }
  0x74   : > { %v470_v26 = vsel %vm242_vm0, %v460_v11, 0 }
  0x7b   : > { %v316_v18 = vpop.permute.xlu2 %315 }
  0x7c   : > { %v326_v19 = vsel %vm242_vm0, %v316_v18, 0 }
  0x83   : > { %v312_v24 = vpop.permute.xlu2 %311 }
  0x8a   : > { %v318_v13 = vpop.permute.xlu1 %317  ;;  %v390_v14 = vpop.permute.xlu0 %389 }
  0x8b   : > { %v329_v15 = vsel %vm242_vm0, %v318_v13, 0  ;;  %v401_v16 = vsel %vm242_vm0, %v390_v14, 0  ;;  %v314_v29 = vpop.permute.xlu2 %313 }
  0x8c   : > { %337 = vmatpush.bf16.xpose.msra.mxu1 %v329_v15  ;;  %409 = vmatpush.bf16.xpose.msra.mxu2 %v401_v16 }
  0x92   : > { %v462_v20 = vpop.permute.xlu0 %461  ;;  %v388_v21 = vpop.permute.xlu1 %387 }
  0x93   : > { %v398_v22 = vsel %vm242_vm0, %v388_v21, 0  ;;  %v473_v23 = vsel %vm242_vm0, %v462_v20, 0  ;;  %v287_v34 = vpop.permute.xlu2 %286 }
  0x94   : > { %338 = vmatpush.bf16.xpose.msra.mxu1 %v326_v19  ;;  %410 = vmatpush.bf16.xpose.msra.mxu2 %v398_v22 }
  0x95   : > { %481 = vmatpush.bf16.xpose.msra.mxu3 %v473_v23 }
  0x9a   : > { %v384_v25 = vpop.permute.xlu0 %383  ;;  %v456_v28 = vpop.permute.xlu1 %455 }
  0x9b   : > { %658 = vmatmul.msk.bf16.vlgmr.msra.gmra.mxu1 %vm242_vm0, %v312_v24  ;;  %664 = vmatmul.msk.bf16.vlgmr.msra.gmra.mxu2 %vm242_vm0, %v384_v25 }
  0x9c   : > { %v352_v50 = vpop.permute.xlu2 %351 }
  0x9d   : > { %482 = vmatpush.bf16.xpose.msra.mxu3 %v470_v26 }
  0xa2   : > { %v386_v30 = vpop.permute.xlu0 %385  ;;  %v458_v31 = vpop.permute.xlu1 %457 }
  0xa4   : > { %670 = vmatmul.msk.bf16.vlgmr.msra.gmra.mxu3 %vm242_vm0, %v456_v28  ;;  %v364_v54 = vpop.permute.xlu2 %363 }
  0xa6   : > { %v264_v32 = vpop.f32.mrf.mxu0 }
  0xaa   : > { %v282_v38 = vpop.permute.xlu1 %281  ;;  %v277_v48 = vpop.permute.xlu0 %276 }
  0xab   : > { %659 = vmatmul.msk.bf16.gmra.mxu1 %vm242_vm0, %v314_v29  ;;  %665 = vmatmul.msk.bf16.gmra.mxu2 %vm242_vm0, %v386_v30  ;;  %v294_v49 = vsub.f32 %v264_v32, %v277_v48 }
  0xad   : > { %v298_v51 = vmul.f32 1.442695, %v294_v49  ;;  %v428_v59 = vpop.permute.xlu2 %427 }
  0xae   : > { %v266_v33 = vpop.f32.mrf.mxu0 }
  0xaf   : > { %v295_v39 = vsub.f32 %v266_v33, %v282_v38 }
  0xb1   : > { %v300_v41 = vmul.f32 1.442695, %v295_v39 }
  0xb2   : > { %v292_v43 = vpop.permute.xlu1 %291 }
  0xb3   : > { %v356_v61 = vpop.permute.xlu0 %355 }
  0xb4   : > { %671 = vmatmul.msk.bf16.gmra.mxu3 %vm242_vm0, %v458_v31 }
  0xb6   : > { %v269_v35 = vpop.f32.mrf.mxu0  ;;  %v496_v5 = vpop.permute.xlu2 %495 }
  0xb7   : > { %v296_v36 = vsub.f32 %v269_v35, %v287_v34 }
  0xb9   : > { %v302_v37 = vmul.f32 1.442695, %v296_v36 }
  0xbb   : > { %749 = vpow2.f32 %v302_v37  ;;  %v360_v53 = vpop.permute.xlu1 %359 }
  0xbc   : > { %751 = vpow2.f32 %v300_v41  ;;  %v432_v17 = vpop.permute.xlu0 %431 }
  0xbe   : > { %v271_v42 = vpop.f32.mrf.mxu0  ;;  %v504_v31 = vpop.permute.xlu2 %503 }
  0xbf   : > { %v297_v44 = vsub.f32 %v271_v42, %v292_v43 }
  0xc1   : > { %v750_v40 = vpop.eup %749  ;;  %v304_v46 = vmul.f32 1.442695, %v297_v44 }
  0xc2   : > { %309 = vst.msk [vmem:[%s956_s20 + $0x10] sm:$0xff] %vm306_vm1, %v750_v40  ;;  %v752_v45 = vpop.eup %751 }
  0xc3   : > { %308 = vst.msk [vmem:[%s956_s20 + $0x8] sm:$0xff] %vm306_vm1, %v752_v45  ;;  %753 = vpow2.f32 %v304_v46 }
  0xc4   : > { %755 = vpow2.f32 %v298_v51  ;;  %v424_v57 = vpop.permute.xlu1 %423 }
  0xc6   : > { %v508_v41 = vpop.permute.xlu0 %507 }
  0xc9   : > { %v754_v47 = vpop.eup %753 }
  0xca   : > { %310 = vst.msk [vmem:[%s956_s20 + $0x18] sm:$0xff] %vm306_vm1, %v754_v47  ;;  %v756_v52 = vpop.eup %755 }
  0xcb   : > { %307 = vst.msk [vmem:[%s956_s20] sm:$0xff] %vm306_vm1, %v756_v52 }
  0xcc   : > { %v436_v3 = vpop.permute.xlu1 %435 }
  0xd5   : > { %v500_v18 = vpop.permute.xlu1 %499 }
 0x118   : > { %v340_v55 = vpop.f32.mrf.mxu1 }
 0x119   : > { %v366_v56 = vsub.f32 %v340_v55, %v352_v50 }
 0x11b   : > { %v370_v58 = vmul.f32 1.442695, %v366_v56 }
 0x11d   : > { %757 = vpow2.f32 %v370_v58 }
 0x11e   : > { %v412_v60 = vpop.f32.mrf.mxu2 }
 0x11f   : > { %v438_v62 = vsub.f32 %v412_v60, %v424_v57 }
 0x120   : > { %v342_v63 = vpop.f32.mrf.mxu1 }
 0x121   : > { %v442_v0 = vmul.f32 1.442695, %v438_v62  ;;  %v367_v1 = vsub.f32 %v342_v63, %v356_v61 }
 0x123   : > { %v758_v2 = vpop.eup %757  ;;  %759 = vpow2.f32 %v442_v0  ;;  %v372_v4 = vmul.f32 1.442695, %v367_v1 }
 0x124   : > { %660 = vst.msk [vmem:[%s956_s20 + $0x20] sm:$0xff] %vm306_vm1, %v758_v2 }
 0x125   : > { %761 = vpow2.f32 %v372_v4 }
 0x126   : > { %v414_v6 = vpop.f32.mrf.mxu2 }
 0x127   : > { %v484_v7 = vpop.f32.mrf.mxu3  ;;  %v439_v8 = vsub.f32 %v414_v6, %v428_v59 }
 0x128   : > { %v510_v9 = vsub.f32 %v484_v7, %v496_v5  ;;  %v345_v10 = vpop.f32.mrf.mxu1 }
 0x129   : > { %v760_v11 = vpop.eup %759  ;;  %v444_v12 = vmul.f32 1.442695, %v439_v8  ;;  %v368_v13 = vsub.f32 %v345_v10, %v360_v53 }
 0x12a   : > { %666 = vst.msk [vmem:[%s956_s20 + $0x40] sm:$0xff] %vm306_vm1, %v760_v11  ;;  %v514_v14 = vmul.f32 1.442695, %v510_v9 }
 0x12b   : > { %v762_v15 = vpop.eup %761  ;;  %763 = vpow2.f32 %v444_v12  ;;  %v374_v16 = vmul.f32 1.442695, %v368_v13 }
 0x12c   : > { %765 = vpow2.f32 %v514_v14  ;;  %661 = vst.msk [vmem:[%s956_s20 + $0x28] sm:$0xff] %vm306_vm1, %v762_v15 }
 0x12d   : > { %767 = vpow2.f32 %v374_v16 }
 0x12e   : > { %v417_v19 = vpop.f32.mrf.mxu2 }
 0x12f   : > { %v486_v20 = vpop.f32.mrf.mxu3  ;;  %v440_v21 = vsub.f32 %v417_v19, %v432_v17 }
 0x130   : > { %v511_v22 = vsub.f32 %v486_v20, %v500_v18  ;;  %v347_v23 = vpop.f32.mrf.mxu1 }
 0x131   : > { %v764_v24 = vpop.eup %763  ;;  %v369_v25 = vsub.f32 %v347_v23, %v364_v54  ;;  %v446_v26 = vmul.f32 1.442695, %v440_v21 }
 0x132   : > { %v766_v27 = vpop.eup %765  ;;  %667 = vst.msk [vmem:[%s956_s20 + $0x48] sm:$0xff] %vm306_vm1, %v764_v24  ;;  %v516_v28 = vmul.f32 1.442695, %v511_v22 }
 0x133   : > { %v768_v29 = vpop.eup %767  ;;  %672 = vst.msk [vmem:[%s956_s20 + $0x60] sm:$0xff] %vm306_vm1, %v766_v27  ;;  %v376_v30 = vmul.f32 1.442695, %v369_v25  ;;  %769 = vpow2.f32 %v446_v26 }
 0x134   : > { %662 = vst.msk [vmem:[%s956_s20 + $0x30] sm:$0xff] %vm306_vm1, %v768_v29  ;;  %771 = vpow2.f32 %v516_v28 }
 0x135   : > { %773 = vpow2.f32 %v376_v30 }
 0x136   : > { %v419_v32 = vpop.f32.mrf.mxu2 }
 0x137   : > { %v441_v33 = vsub.f32 %v419_v32, %v436_v3  ;;  %v489_v34 = vpop.f32.mrf.mxu3 }
 0x138   : > { %v512_v35 = vsub.f32 %v489_v34, %v504_v31 }
 0x139   : > { %v770_v36 = vpop.eup %769  ;;  %v448_v37 = vmul.f32 1.442695, %v441_v33 }
 0x13a   : > { %v772_v38 = vpop.eup %771  ;;  %668 = vst.msk [vmem:[%s956_s20 + $0x50] sm:$0xff] %vm306_vm1, %v770_v36  ;;  %v518_v39 = vmul.f32 1.442695, %v512_v35 }
 0x13b   : > { %v774_v40 = vpop.eup %773  ;;  %673 = vst.msk [vmem:[%s956_s20 + $0x68] sm:$0xff] %vm306_vm1, %v772_v38  ;;  %775 = vpow2.f32 %v448_v37 }
 0x13c   : > { %663 = vst.msk [vmem:[%s956_s20 + $0x38] sm:$0xff] %vm306_vm1, %v774_v40  ;;  %777 = vpow2.f32 %v518_v39 }
 0x13f   : > { %v491_v42 = vpop.f32.mrf.mxu3 }
 0x140   : > { %v513_v43 = vsub.f32 %v491_v42, %v508_v41 }
 0x141   : > { %v776_v44 = vpop.eup %775 }
 0x142   : > { %v778_v45 = vpop.eup %777  ;;  %669 = vst.msk [vmem:[%s956_s20 + $0x58] sm:$0xff] %vm306_vm1, %v776_v44  ;;  %v520_v46 = vmul.f32 1.442695, %v513_v43 }
 0x143   : > { %674 = vst.msk [vmem:[%s956_s20 + $0x70] sm:$0xff] %vm306_vm1, %v778_v45 }
 0x144   : > { %779 = vpow2.f32 %v520_v46 }
 0x14a   : > { %v780_v47 = vpop.eup %779 }
 0x14b   : > { %675 = vst.msk [vmem:[%s956_s20 + $0x78] sm:$0xff] %vm306_vm1, %v780_v47 }
 0x14c   : > { %808 = shalt.err (!%p805_p3)
}
 0x14d   : > { %s852_s10 = smov 128   ;;  %s853_s11 = smov 8  }
 0x14e   : > { %689 = dma.vmem_to_hbm [thread:$0]  (%p912_p5), %s541_s28, 2048, %s543_s29, %s528_s16, %s852_s10, %s852_s10, %s853_s11  }
 0x14f PF: > { %p695_p4 = scmp.ge.s32.totalorder %s843_s15, 2  ;;  %s557_s17 = sand.u32 1, %s831_s12  }
 0x150   : > { %s558_s19 = scalar_lea.sflag [#allocation3], %s557_s17 }
 0x151   : > { %p692_p7 = pnand %p695_p4, %p916_p6 }
 0x153   : > { %p693_p8 = pneg %p692_p7 }
 0x155   : > { %826 = dma.done.wait (%p693_p8), %s558_s19, 2048  }
 0x156   : > { %828 = vsyncadd (%p693_p8), %s558_s19, 4294965248  ;;  %p13_p9 = scmp.ge.s32.totalorder %s899_s18, 4   ;;  %s1030_s12 = smov %s835_s13 }
 0x157   : > { %s1031_s13 = smov %s839_s14  ;;  %s1032_s14 = smov %s910_s21 }
 0x158   : > { %s1033_s15 = smov %s899_s18  ;;  %15 = sbr.rel (!%p13_p9) target bundleno = 3 (0x3), region = 76 }
 0x15d   :  { %564 = vsyncpa [#allocation3], 1 }
 0x15e   :  { %566 = vsyncpa [#allocation3 + $0x1], 1 }

// kernel: encoder_block.6
= control target key start
LH: loop header
LB: loop body
LE: loop exit
PB: predicated region body
PF: predicated region fallthrough
CT: control target
= control target key end

     0   :  { %s3295_s0 = inlined_call_operand.vmem [shape: bf16[2,32,32], index: 0, kind: input, shape index: {}]   ;;  %s3296_s1 = inlined_call_operand.vmem [shape: bf16[2,32,32], index: 1, kind: input, shape index: {}]   ;;  %s3297_s2 = inlined_call_operand.vmem [shape: bf16[2,32,32], index: 2, kind: input, shape index: {}]   ;;  %s3298_s3 = inlined_call_operand.vmem [shape: f32[2,32,32], index: 3, kind: input, shape index: {}]   ;;  %s3299_s4 = inlined_call_operand.vmem [shape: bf16[32,32], index: 4, kind: input, shape index: {}]   ;;  %s3300_s5 = inlined_call_operand.vmem [shape: f32[1,32], index: 5, kind: input, shape index: {}]   ;;  %s3301_s6 = inlined_call_operand.vmem [shape: f32[1,32], index: 6, kind: input, shape index: {}]   ;;  %s3302_s7 = inlined_call_operand.vmem [shape: f32[1,32], index: 7, kind: input, shape index: {}]   ;;  %s3303_s8 = inlined_call_operand.vmem [shape: bf16[32,64], index: 8, kind: input, shape index: {}]   ;;  %s3304_s9 = inlined_call_operand.vmem [shape: f32[1,64], index: 9, kind: input, shape index: {}]   ;;  %s3305_s10 = inlined_call_operand.vmem [shape: bf16[64,32], index: 10, kind: input, shape index: {}]   ;;  %s3306_s11 = inlined_call_operand.vmem [shape: f32[1,32], index: 11, kind: input, shape index: {}]   ;;  %s3307_s12 = inlined_call_operand.hbm [shape: f32[2,32,32], index: 12, kind: output, shape index: {0}]   ;;  %s3308_s13 = inlined_call_operand.vmem [shape: f32[2,32,4], index: 13, kind: output, shape index: {1}]  }
   0x1   :  { %3324 = sst [smem:[#allocation20_spill]] %s3304_s9 }
   0x2   :  { %3325 = sst [smem:[#allocation21_spill]] %s3305_s10 }
   0x3   :  { %3326 = sst [smem:[#allocation22_spill]] %s3306_s11 }
   0x4   :  { %3327 = sst [smem:[#allocation23_spill]] %s3307_s12 }
   0x5   :  { %19 = vsyncpa [#allocation6], 0 }
   0x6   :  { %21 = vsyncpa [#allocation6 + $0x1], 0  ;;  %s2507_s25 = smov 0   ;;  %s2509_s26 = smov 0  }
   0x7   :  { %s2511_s27 = smov 0   ;;  %s2513_s28 = smov 0  }
   0x8   :  { %s2515_s29 = smov 0   ;;  %s2517_s30 = smov 0  }
   0x9   :  { %s2519_s14 = smov 0   ;;  %s2521_s15 = smov 0  }
   0xa LB: > { %3328 = sst [smem:[#allocation8_spill]] %s2389_s25  ;;  %s1990_s16 = sadd.s32 4294967295, %s2417_s15   ;;  %s2417_s15 = sphi %s2521_s15, %s27_s15   ;;  %s2413_s14 = sphi %s2519_s14, %s3361_s14   ;;  %s2409_s30 = sphi %s2517_s30, %s3360_s30   ;;  %s2405_s29 = sphi %s2515_s29, %s3359_s29   ;;  %s2401_s28 = sphi %s2513_s28, %s3358_s28   ;;  %s2397_s27 = sphi %s2511_s27, %s3357_s27   ;;  %s2393_s26 = sphi %s2509_s26, %s3356_s26   ;;  %s2389_s25 = sphi %s2507_s25, %s3355_s25  }
   0xb   : > { %3329 = sst [smem:[#allocation9_spill]] %s2393_s26  ;;  %s1991_s17 = sadd.s32 4294967294, %s2417_s15  }
   0xc   : > { %3330 = sst [smem:[#allocation10_spill]] %s2397_s27  ;;  %s36_s18 = sadd.s32 1, %s2409_s30 }
   0xd   : > { %3331 = sst [smem:[#allocation11_spill]] %s2405_s29  ;;  %p37_p0 = scmp.ge.s32.totalorder %s36_s18, 2 }
   0xe   : > { %3332 = sst [smem:[#allocation12_spill]] %s2409_s30  ;;  %s39_s19 = sadd.s32 1, %s2413_s14 }
   0xf   : > { %3333 = sst [smem:[#allocation13_spill]] %s2413_s14  ;;  %p332_p1 = scmp.ne.s32.totalorder %s2397_s27, %s2393_s26 }
  0x10   : > { %3334 = sst [smem:[#allocation14_spill]] %s2417_s15  ;;  %p333_p2 = scmp.eq.s32.totalorder %s1990_s16, 3 }
  0x11   : > { %s3363_s18 = smov (%p37_p0, %s36_s18), 0  ;;  %s3365_s19 = smov (!%p37_p0, %s39_s19), %s2413_s14 }
  0x12   : > { %3335 = sst [smem:[#allocation15_spill]] %s3363_s18  ;;  %p2556_p3 = por %p333_p2, %p332_p1 }
  0x13   : > { %p338_p4 = scmp.ne.s32.totalorder %s2393_s26, %s2389_s25  ;;  %p41_p5 = scmp.ge.s32.totalorder %s3365_s19, 2 }
  0x14   : > { %s3336_s20 = scalar_select %p2556_p3, 1, 0 }
  0x15   : > { %p339_p6 = scmp.eq.s32.totalorder %s1991_s17, 3  ;;  %p1994_p7 = scmp.ge.s32.totalorder %s2417_s15, 1 }
  0x16   : > { %3337 = sst [smem:[#allocation16_spill]] %s3336_s20  ;;  %p449_p8 = scmp.lt.s32.totalorder %s2417_s15, 5 }
  0x17   : > { %s3367_s19 = smov (%p41_p5, %s3365_s19), 0  ;;  %p2566_p9 = por %p339_p6, %p338_p4 }
  0x18   : > { %3338 = sst [smem:[#allocation17_spill]] %s3367_s19  ;;  %p450_p10 = pnand %p1994_p7, %p449_p8 }
  0x19   : > { %s3339_s21 = scalar_select %p2566_p9, 1, 0 }
  0x1a   : > { %s319_s22 = ssub.s32 %s2413_s14, %s3367_s19  ;;  %s322_s23 = sadd.s32 1, %s2397_s27 }
  0x1b   : > { %3340 = sst [smem:[#allocation18_spill]] %s3339_s21  ;;  %p320_p11 = scmp.eq.s32.totalorder %s319_s22, 0 }
  0x1c   : > { %453 = sbr.rel (%p450_p10) target bundleno = 2242 (0x8c2), region = 68  ;;  %s3321_s16 = sand.u32 (!%p450_p10), 1, %s2393_s26  }
  0x1d   : > { %s2574_s24 = scalar_select %p320_p11, %s2397_s27, %s322_s23  }
  0x1e   : > { %p521_p12 = scmp.lt.s32.totalorder (!%p450_p10), %s2405_s29, 1  ;;  %s1995_s17 = sshll.u32 (!%p450_p10), %s3321_s16, 5 }
  0x1f   : > { %3341 = sst [smem:[#allocation19_spill]] %s2574_s24  ;;  %s1998_s18 = sshll.u32 (!%p450_p10), %s2401_s28, 1 }
  0x20   : > { %p529_p13 = scmp.lt.s32.totalorder (!%p450_p10), %s1998_s18, 3  ;;  %p2008_p0 = scmp.ne.s32.totalorder (!%p450_p10), %s2401_s28, 0 }
  0x21   : > { %s522_s30 = scalar_select %p521_p12, %s2405_s29, 1 }
  0x22   : > { %s3369_s18 = smov (!%p529_p13, %s1998_s18), 3 }
  0x23   : > { %s2085_s21 = sshll.u32 %s522_s30, 4  ;;  %s1999_s19 = sshll.u32 %s522_s30, 2 }
  0x24   : > { %s2585_s23 = scalar_lea.vmem %s3295_s0, %s2085_s21  ;;  %s532_s24 = sadd.s32 %s1999_s19, %s3369_s18 }
  0x25   : > { %s2000_s27 = sshll.u32 %s532_s24, 2  ;;  %s2086_s25 = sshll.u32 %s522_s30, 5 }
  0x26   : > { %s534_s20 = scalar_lea.vmem %s3296_s1, %s2000_s27  ;;  %s2593_s11 = scalar_lea.vmem %s3297_s2, %s2000_s27 }
  0x27   : > { %s2598_s10 = scalar_lea.vmem %s3298_s3, %s2086_s25  ;;  %s2603_s18 = scalar_lea.vmem %s3308_s13, %s2086_s25 }
  0x28   : > { %s2605_s30 = scalar_lea.vmem [#allocation5], %s1995_s17  ;;  %560 = sbr.rel (%p2008_p0) target bundleno = 58 (0x3a), region = 72 }
  0x2d   : > { %vm561_vm0 = vcmask 31744   ;;  %v2419_v0 = vmov -inf   ;;  %v2420_v1 = vmov 0.0   ;;  %vm570_vm1 = vcmask 261120  }
  0x2e   : > { %562 = vst.msk [vmem:[#allocation2] sm:$0xff] %vm561_vm0, %v2419_v0 }
  0x2f   : > { %563 = vst.msk [vmem:[#allocation2 + $0x8] sm:$0xff] %vm561_vm0, %v2419_v0 }
  0x30   : > { %564 = vst.msk [vmem:[#allocation2 + $0x10] sm:$0xff] %vm561_vm0, %v2419_v0 }
  0x31   : > { %565 = vst.msk [vmem:[#allocation2 + $0x18] sm:$0xff] %vm561_vm0, %v2419_v0 }
  0x32   : > { %566 = vst.msk [vmem:[#allocation3] sm:$0xff] %vm561_vm0, %v2420_v1 }
  0x33   : > { %567 = vst.msk [vmem:[#allocation3 + $0x8] sm:$0xff] %vm561_vm0, %v2420_v1 }
  0x34   : > { %568 = vst.msk [vmem:[#allocation3 + $0x10] sm:$0xff] %vm561_vm0, %v2420_v1 }
  0x35   : > { %569 = vst.msk [vmem:[#allocation3 + $0x18] sm:$0xff] %vm561_vm0, %v2420_v1 }
  0x36   : > { %571 = vst.msk [vmem:[#allocation4] sm:$0xff] %vm570_vm1, %v2420_v1 }
  0x37   : > { %572 = vst.msk [vmem:[#allocation4 + $0x8] sm:$0xff] %vm570_vm1, %v2420_v1 }
  0x38   : > { %573 = vst.msk [vmem:[#allocation4 + $0x10] sm:$0xff] %vm570_vm1, %v2420_v1 }
  0x39   : > { %574 = vst.msk [vmem:[#allocation4 + $0x18] sm:$0xff] %vm570_vm1, %v2420_v1 }
  0x3a PF: > { %v2090_v2 = vld [vmem:[%s534_s20] sm:$0xff]  ;;  %vm610_vm2 = vcmask 64512   ;;  %v2089_v5 = vld [vmem:[%s2585_s23 + $0x8] sm:$0xff]  ;;  %s2421_s9 = smov 120   ;;  %vm639_vm3 = vcmask 130048   ;;  %s2422_s12 = smov 104  }
  0x3b   : > { %v618_v3 = vsel %vm610_vm2, %v2090_v2, 0  ;;  %v2088_v4 = vld [vmem:[%s2585_s23] sm:$0xff]  ;;  %785 = vrot.lane.b32.xlu2 %v2090_v2, %s2421_s9  ;;  %v2423_v14 = vmov 0   ;;  %v2640_v20 = vld [vmem:[#allocation2 + $0x8] sm:$0xff]  ;;  %v2646_v23 = vld [vmem:[#allocation2 + $0x10] sm:$0xff]  ;;  %s2424_s25 = smov 112  }
  0x3c   : > { %627 = vmatpush.bf16.xpose.msra.mxu0 %v618_v3  ;;  %2194 = vset.pattern.permute.xlu2 %v2423_v14  ;;  %v2633_v15 = vld [vmem:[#allocation2] sm:$0xff]  ;;  %v2653_v26 = vld [vmem:[#allocation2 + $0x18] sm:$0xff]  ;;  %vm1345_vm4 = vcmask 7168   ;;  %vm1350_vm5 = vcmask 15360   ;;  %vm1355_vm6 = vcmask 23552   ;;  %vm1360_vm7 = vcmask 31744  }
  0x3d   : > { %2195 = vset.pattern.permute.xlu0 %v2423_v14  ;;  %2196 = vset.pattern.permute.xlu1 %v2423_v14  ;;  %v2672_v36 = vld [vmem:[%s2593_s11] sm:$0xff]  ;;  %s2427_s11 = smov 8   ;;  %s2429_s26 = smov 24   ;;  %vm1389_vm8 = vcmask 195584   ;;  %vm1394_vm9 = vcmask 261120  }
  0x3e   : > { %765 = vmatpush.bf16.msra.mxu1 %v2672_v36  ;;  %s2430_s27 = smov 16   ;;  %p2041_p1 = scmp.ne.s32.totalorder %s2401_s28, 1 }
  0x3f   : > { %s3344_s16 = sld [smem:[#allocation20_spill]] (!%p2041_p1) }
  0x40   : > { %s3345_s23 = sld [smem:[#allocation22_spill]] (!%p2041_p1) }
  0x43   : > { %2021 = vmatmul.msk.bf16.vlgmr.msra.gmra.mxu0 %vm610_vm2, %v2088_v4 }
  0x53   : > { %2022 = vmatmul.msk.bf16.gmra.mxu0 %vm610_vm2, %v2089_v5 }
  0x95   : > { %v786_v18 = vpop.permute.xlu2 %785 }
  0x96   : > { %v794_v19 = vsel %vm610_vm2, %v786_v18, 0 }
  0x97   : > { %803 = vmatpush.bf16.xpose.msra.mxu2 %v794_v19 }
  0xc0   : > { %v2614_v6 = vpop.f32.mrf.mxu0 }
  0xc1   : > { %v640_v7 = vsel %vm639_vm3, %v2614_v6, -inf }
  0xc2   : > { %641 = vmax.xlane.f32.xlu0 %v640_v7 }
  0xc8   : > { %v2618_v8 = vpop.f32.mrf.mxu0 }
  0xc9   : > { %v643_v9 = vsel %vm639_vm3, %v2618_v8, -inf }
  0xca   : > { %644 = vmax.xlane.f32.xlu0 %v643_v9 }
  0xd0   : > { %v2622_v10 = vpop.f32.mrf.mxu0 }
  0xd1   : > { %v646_v11 = vsel %vm639_vm3, %v2622_v10, -inf }
  0xd2   : > { %647 = vmax.xlane.f32.xlu1 %v646_v11 }
  0xd8   : > { %v2626_v12 = vpop.f32.mrf.mxu0 }
  0xd9   : > { %v649_v13 = vsel %vm639_vm3, %v2626_v12, -inf }
  0xda   : > { %650 = vmax.xlane.f32.xlu1 %v649_v13 }
  0xf3   : > { %781 = vrot.lane.b32.xlu1 %v2088_v4, %s2421_s9 }
  0xfb   : > { %1161 = vrot.lane.b32.xlu1 %v2090_v2, %s2422_s12 }
 0x103   : > { %1157 = vrot.lane.b32.xlu1 %v2088_v4, %s2422_s12 }
 0x135   : > { %v642_v16 = vpop.xlane.xlu0 %641 }
 0x136   : > { %v2636_v17 = vmax.f32 %v2633_v15, %v642_v16  ;;  %v2425_v16 = vmov 3  }
 0x138   : > { %670 = vperm.xlu2 %2194, %v2636_v17   ;;  %v656_v30 = vsub.f32 %v2633_v15, %v2636_v17 }
 0x13a   : > { %v660_v31 = vmul.f32 1.442695, %v656_v30 }
 0x13c   : > { %2214 = vpow2.f32 %v660_v31 }
 0x13d   : > { %v645_v21 = vpop.xlane.xlu0 %644 }
 0x13e   : > { %v2643_v22 = vmax.f32 %v2640_v20, %v645_v21 }
 0x140   : > { %675 = vperm.xlu0 %2195, %v2643_v22  }
 0x142   : > { %v2668_v35 = vpop.eup %2214 }
 0x145   : > { %v648_v24 = vpop.xlane.xlu1 %647 }
 0x146   : > { %v2649_v25 = vmax.f32 %v2646_v23, %v648_v24 }
 0x148   : > { %680 = vperm.xlu2 %2194, %v2649_v25   ;;  %971 = vrot.lane.b32.xlu0 %v2089_v5, %s2424_s25  ;;  %v658_v21 = vsub.f32 %v2646_v23, %v2649_v25 }
 0x14d   : > { %v651_v27 = vpop.xlane.xlu1 %650 }
 0x14e   : > { %v2656_v28 = vmax.f32 %v2653_v26, %v651_v27  ;;  %v664_v27 = vmul.f32 1.442695, %v658_v21 }
 0x150   : > { %685 = vperm.xlu2 %2194, %v2656_v28   ;;  %v659_v24 = vsub.f32 %v2653_v26, %v2656_v28 }
 0x158   : > { %783 = vrot.lane.b32.xlu2 %v2089_v5, %s2421_s9 }
 0x160   : > { %973 = vrot.lane.b32.xlu2 %v2090_v2, %s2424_s25 }
 0x165   : > { %v782_v29 = vpop.permute.xlu1 %781 }
 0x166   : > { %2029 = vmatmul.msk.bf16.vlgmr.msra.gmra.mxu2 %vm610_vm2, %v782_v29  ;;  %v666_v29 = vmul.f32 1.442695, %v659_v24 }
 0x168   : > { %969 = vrot.lane.b32.xlu2 %v2088_v4, %s2424_s25 }
 0x16d   : > { %v1162_v32 = vpop.permute.xlu1 %1161 }
 0x16e   : > { %v1170_v33 = vsel %vm610_vm2, %v1162_v32, 0 }
 0x16f   : > { %1179 = vmatpush.bf16.xpose.msrb.mxu0 %v1170_v33 }
 0x170   : > { %1159 = vrot.lane.b32.xlu2 %v2089_v5, %s2422_s12 }
 0x175   : > { %v1158_v34 = vpop.permute.xlu1 %1157 }
 0x176   : > { %2037 = vmatmul.msk.bf16.vlgmr.msrb.gmra.mxu0 %vm610_vm2, %v1158_v34 }
 0x178   : > { %722 = vperm.xlu2 %2194, %v2668_v35  }
 0x180   : > { %2197 = vset.pattern.permute.xlu2 %v2425_v16 }
 0x192   : > { %v671_v37 = vpop.permute.xlu2 %670 }
 0x193   : > { %v688_v40 = vsub.f32 %v2614_v6, %v671_v37  ;;  %v657_v6 = vsub.f32 %v2640_v20, %v2643_v22 }
 0x195   : > { %v692_v41 = vmul.f32 1.442695, %v688_v40 }
 0x197   : > { %2216 = vpow2.f32 %v692_v41 }
 0x19d   : > { %v2679_v48 = vpop.eup %2216 }
 0x19e   : > { %v704_v40 = vsel %vm639_vm3, %v2679_v48, 0.0 }
 0x1a2   : > { %v681_v38 = vpop.permute.xlu2 %680 }
 0x1a3   : > { %v690_v52 = vsub.f32 %v2622_v10, %v681_v38 }
 0x1a5   : > { %v696_v55 = vmul.f32 1.442695, %v690_v52 }
 0x1aa   : > { %v686_v39 = vpop.permute.xlu2 %685 }
 0x1ab   : > { %v691_v50 = vsub.f32 %v2626_v12, %v686_v39  ;;  %v2426_v39 = vmov 1  }
 0x1ad   : > { %v698_v53 = vmul.f32 1.442695, %v691_v50 }
 0x1b2   : > { %v676_v42 = vpop.permute.xlu0 %675  ;;  %v784_v43 = vpop.permute.xlu2 %783 }
 0x1b3   : > { %v689_v44 = vsub.f32 %v2618_v8, %v676_v42  ;;  %2030 = vmatmul.msk.bf16.gmra.mxu2 %vm610_vm2, %v784_v43  ;;  %v662_v8 = vmul.f32 1.442695, %v657_v6 }
 0x1b5   : > { %v694_v45 = vmul.f32 1.442695, %v689_v44 }
 0x1b7   : > { %2218 = vpow2.f32 %v694_v45 }
 0x1b8   : > { %2220 = vpow2.f32 %v698_v53 }
 0x1b9   : > { %2222 = vpow2.f32 %v696_v55 }
 0x1ba   : > { %v974_v46 = vpop.permute.xlu2 %973  ;;  %2224 = vpow2.f32 %v662_v8  ;;  %v972_v13 = vpop.permute.xlu0 %971 }
 0x1bb   : > { %v982_v47 = vsel %vm610_vm2, %v974_v46, 0  ;;  %2226 = vpow2.f32 %v664_v27 }
 0x1bc   : > { %991 = vmatpush.bf16.xpose.msrb.mxu1 %v982_v47  ;;  %2228 = vpow2.f32 %v666_v29 }
 0x1bd   : > { %v2681_v49 = vpop.eup %2218 }
 0x1be   : > { %v744_v51 = vpack.c.bf16 %v2681_v49, %v2679_v48  ;;  %v2688_v57 = vpop.eup %2220  ;;  %v707_v41 = vsel %vm639_vm3, %v2681_v49, 0.0 }
 0x1bf   : > { %v2691_v58 = vpop.eup %2222 }
 0x1c0   : > { %2027 = vmatmul.msk.bf16.vlgmr.msra.gmra.mxu1 %vm639_vm3, %v744_v51  ;;  %v745_v59 = vpack.c.bf16 %v2688_v57, %v2691_v58  ;;  %v2727_v12 = vpop.eup %2224 }
 0x1c1   : > { %v2748_v31 = vpop.eup %2226 }
 0x1c2   : > { %v970_v54 = vpop.permute.xlu2 %969  ;;  %v2750_v32 = vpop.eup %2228 }
 0x1ca   : > { %v1160_v56 = vpop.permute.xlu2 %1159 }
 0x1cb   : > { %2038 = vmatmul.msk.bf16.gmra.mxu0 %vm610_vm2, %v1160_v56 }
 0x1d0   : > { %2028 = vmatmul.msk.bf16.gmra.mxu1 %vm639_vm3, %v745_v59 }
 0x1d2   : > { %v2736_v19 = vpop.permute.xlu2 %722 }
 0x1e0   : > { %2033 = vmatmul.msk.bf16.vlgmr.msrb.gmra.mxu1 %vm610_vm2, %v970_v54 }
 0x1e9   : > { %v2697_v60 = vpop.f32.mrf.mxu2 }
 0x1ea   : > { %v815_v61 = vsel %vm639_vm3, %v2697_v60, -inf }
 0x1eb   : > { %816 = vmax.xlane.f32.xlu2 %v815_v61 }
 0x1f0   : > { %2034 = vmatmul.msk.bf16.gmra.mxu1 %vm610_vm2, %v972_v13 }
 0x1f1   : > { %v2701_v62 = vpop.f32.mrf.mxu2 }
 0x1f2   : > { %v818_v63 = vsel %vm639_vm3, %v2701_v62, -inf }
 0x1f3   : > { %819 = vmax.xlane.f32.xlu1 %v818_v63  ;;  %v2705_v0 = vpop.f32.mrf.mxu0 }
 0x1f4   : > { %v1191_v1 = vsel %vm639_vm3, %v2705_v0, -inf }
 0x1f5   : > { %1192 = vmax.xlane.f32.xlu2 %v1191_v1 }
 0x1fb   : > { %v2713_v4 = vpop.f32.mrf.mxu0 }
 0x1fc   : > { %v1194_v5 = vsel %vm639_vm3, %v2713_v4, -inf }
 0x236   : > { %v2709_v2 = vpop.f32.mrf.mxu2 }
 0x237   : > { %v821_v3 = vsel %vm639_vm3, %v2709_v2, -inf }
 0x238   : > { %822 = vmax.xlane.f32.xlu0 %v821_v3 }
 0x23e   : > { %v2730_v14 = vpop.f32.mrf.mxu2 }
 0x23f   : > { %v824_v18 = vsel %vm639_vm3, %v2730_v14, -inf }
 0x240   : > { %1195 = vmax.xlane.f32.xlu0 %v1194_v5  ;;  %v710_v5 = vsel %vm639_vm3, %v2691_v58, 0.0  ;;  %v713_v58 = vsel %vm639_vm3, %v2688_v57, 0.0 }
 0x248   : > { %v2719_v7 = vpop.f32.mrf.mxu0 }
 0x249   : > { %v1197_v9 = vsel %vm639_vm3, %v2719_v7, -inf }
 0x24a   : > { %1198 = vmax.xlane.f32.xlu1 %v1197_v9 }
 0x250   : > { %v2723_v10 = vpop.f32.mrf.mxu0 }
 0x251   : > { %v1200_v11 = vsel %vm639_vm3, %v2723_v10, -inf }
 0x252   : > { %1201 = vmax.xlane.f32.xlu2 %v1200_v11  ;;  %v2804_v11 = vpop.f32.mrf.mxu1 }
 0x254   : > { %727 = vperm.xlu0 %2195, %v2727_v12  }
 0x25a   : > { %825 = vmax.xlane.f32.xlu2 %v824_v18 }
 0x25c   : > { %921 = vrot.lane.b32.xlu0 %v2672_v36, %s2421_s9 }
 0x25e   : > { %v817_v30 = vpop.xlane.xlu2 %816 }
 0x25f   : > { %v2758_v38 = vmax.f32 %v2633_v15, %v817_v30 }
 0x261   : > { %v831_v42 = vsub.f32 %v2633_v15, %v2758_v38 }
 0x263   : > { %1109 = vrot.lane.b32.xlu1 %v2672_v36, %s2424_s25  ;;  %v835_v44 = vmul.f32 1.442695, %v831_v42  ;;  %s3342_s25 = sld [smem:[#allocation21_spill]] (!%p2041_p1) }
 0x264   : > { %1297 = vrot.lane.b32.xlu0 %v2672_v36, %s2422_s12 }
 0x265   : > { %2230 = vpow2.f32 %v835_v44 }
 0x266   : > { %v820_v37 = vpop.xlane.xlu1 %819 }
 0x267   : > { %v2762_v36 = vmax.f32 %v2640_v20, %v820_v37 }
 0x268   : > { %v1193_v33 = vpop.xlane.xlu2 %1192 }
 0x269   : > { %v2755_v34 = vmax.f32 %v2633_v15, %v1193_v33  ;;  %s3343_s19 = smov (!%p2041_p1), %s3342_s25 }
 0x26b   : > { %732 = vperm.xlu1 %2196, %v2748_v31   ;;  %v2777_v47 = vpop.eup %2230 }
 0x26c   : > { %737 = vperm.xlu0 %2195, %v2750_v32  }
 0x272   : > { %1221 = vperm.xlu2 %2197, %v2755_v34  }
 0x273   : > { %2198 = vset.pattern.permute.xlu1 %v2426_v39 }
 0x274   : > { %2199 = vset.pattern.permute.xlu0 %v2426_v39  ;;  %845 = vperm.xlu1 %2198, %v2758_v38  }
 0x275   : > { %850 = vperm.xlu0 %2199, %v2762_v36  }
 0x29e   : > { %705 = vadd.xlane.f32.xlu1 %v704_v40  ;;  %v2820_v40 = vld [vmem:[#allocation3] sm:$0xff] }
 0x29f   : > { %708 = vadd.xlane.f32.xlu0 %v707_v41  ;;  %v700_v57 = vmul.f32 %v2668_v35, %v2820_v40 }
 0x2ab   : > { %v823_v43 = vpop.xlane.xlu0 %822 }
 0x2ac   : > { %v2782_v48 = vmax.f32 %v2646_v23, %v823_v43 }
 0x2ae   : > { %v833_v30 = vsub.f32 %v2646_v23, %v2782_v48 }
 0x2b0   : > { %v839_v41 = vmul.f32 1.442695, %v833_v30 }
 0x2b3   : > { %v1196_v45 = vpop.xlane.xlu0 %1195 }
 0x2b4   : > { %v2775_v46 = vmax.f32 %v2640_v20, %v1196_v45 }
 0x2b6   : > { %1226 = vperm.xlu2 %2197, %v2775_v46  }
 0x2b7   : > { %897 = vperm.xlu1 %2198, %v2777_v47  }
 0x2bd   : > { %v2790_v51 = vpop.xlane.xlu1 %1198 }
 0x2be   : > { %2200 = vset.pattern.permute.xlu2 %v2426_v39 }
 0x2bf   : > { %855 = vperm.xlu2 %2200, %v2782_v48  }
 0x2c5   : > { %v2786_v49 = vpop.xlane.xlu2 %1201 }
 0x2c6   : > { %v2788_v50 = vpop.permute.xlu0 %727 }
 0x2cd   : > { %v826_v52 = vpop.xlane.xlu2 %825 }
 0x2ce   : > { %v2793_v53 = vmax.f32 %v2653_v26, %v826_v52  ;;  %v922_v54 = vpop.permute.xlu0 %921 }
 0x2cf   : > { %937 = vmatpush.bf16.msra.mxu3 %v922_v54 }
 0x2d0   : > { %860 = vperm.xlu1 %2198, %v2793_v53  }
 0x2d5   : > { %v1110_v55 = vpop.permute.xlu1 %1109  ;;  %v1222_v29 = vpop.permute.xlu2 %1221 }
 0x2d6   : > { %v1298_v56 = vpop.permute.xlu0 %1297  ;;  %1125 = vmatpush.bf16.msrb.mxu3 %v1110_v55  ;;  %v1239_v37 = vsub.f32 %v2705_v0, %v1222_v29 }
 0x2d7   : > { %1313 = vmatpush.bf16.msrb.mxu2 %v1298_v56 }
 0x2d8   : > { %v1243_v42 = vmul.f32 1.442695, %v1239_v37 }
 0x2dd   : > { %v2796_v59 = vpop.permute.xlu1 %732 }
 0x2de   : > { %v2798_v61 = vpop.permute.xlu0 %737 }
 0x2e6   : > { %v846_v63 = vpop.permute.xlu1 %845 }
 0x2e7   : > { %v863_v1 = vsub.f32 %v2697_v60, %v846_v63  ;;  %v851_v3 = vpop.permute.xlu0 %850  ;;  %v2808_v60 = vpop.f32.mrf.mxu1 }
 0x2e8   : > { %v864_v6 = vsub.f32 %v2701_v62, %v851_v3  ;;  %711 = vadd.xlane.f32.xlu2 %v710_v5 }
 0x2e9   : > { %v867_v8 = vmul.f32 1.442695, %v863_v1 }
 0x2ea   : > { %v869_v9 = vmul.f32 1.442695, %v864_v6 }
 0x2eb   : > { %2232 = vpow2.f32 %v867_v8 }
 0x2ec   : > { %2234 = vpow2.f32 %v869_v9 }
 0x2ed   : > { %2236 = vpow2.f32 %v839_v41 }
 0x2ee   : > { %2238 = vpow2.f32 %v1243_v42 }
 0x2ef   : > { %v2813_v27 = vpop.f32.mrf.mxu1 }
 0x2f1   : > { %v2233_v13 = vpop.eup %2232 }
 0x2f2   : > { %v2235_v18 = vpop.eup %2234  ;;  %v879_v21 = vsel %vm639_vm3, %v2233_v13, 0.0 }
 0x2f3   : > { %880 = vadd.xlane.f32.xlu2 %v879_v21  ;;  %v919_v24 = vpack.c.bf16 %v2235_v18, %v2233_v13  ;;  %v882_v62 = vsel %vm639_vm3, %v2235_v18, 0.0  ;;  %v2237_v0 = vpop.eup %2236 }
 0x2f4   : > { %v2829_v63 = vpop.eup %2238 }
 0x2f5   : > { %2031 = vmatmul.msk.bf16.vlgmr.msra.gmra.mxu3 %vm639_vm3, %v919_v24 }
 0x2f7   : > { %v2817_v33 = vpop.f32.mrf.mxu1 }
 0x2fa   : > { %714 = vadd.xlane.f32.xlu1 %v713_v58 }
 0x2ff   : > { %v2827_v55 = vpop.f32.mrf.mxu1 }
 0x300   : > { %v1003_v41 = vsel %vm639_vm3, %v2827_v55, -inf }
 0x302   : > { %883 = vadd.xlane.f32.xlu1 %v882_v62 }
 0x307   : > { %v2837_v5 = vpop.f32.mrf.mxu1 }
 0x30f   : > { %v2840_v9 = vpop.f32.mrf.mxu1 }
 0x310   : > { %v1227_v43 = vpop.permute.xlu2 %1226  ;;  %v1009_v42 = vsel %vm639_vm3, %v2840_v9, -inf }
 0x311   : > { %v1240_v44 = vsub.f32 %v2713_v4, %v1227_v43  ;;  %v706_v45 = vpop.xlane.xlu1 %705 }
 0x312   : > { %v2825_v52 = vadd.f32 %v706_v45, %v700_v57  ;;  %v2861_v57 = vpop.xlane.xlu0 %708 }
 0x313   : > { %v1245_v54 = vmul.f32 1.442695, %v1240_v44  ;;  %v2863_v44 = vld [vmem:[#allocation3 + $0x10] sm:$0xff] }
 0x315   : > { %2240 = vpow2.f32 %v1245_v54  ;;  %v702_v54 = vmul.f32 %v2748_v31, %v2863_v44 }
 0x317   : > { %v2844_v13 = vpop.f32.mrf.mxu1 }
 0x318   : > { %v1012_v18 = vsel %vm639_vm3, %v2844_v13, -inf }
 0x319   : > { %v856_v56 = vpop.permute.xlu2 %855 }
 0x31a   : > { %v865_v1 = vsub.f32 %v2709_v2, %v856_v56  ;;  %v1006_v2 = vsel %vm639_vm3, %v2837_v5, -inf  ;;  %v877_v56 = vmul.f32 %v2237_v0, %v2863_v44 }
 0x31b   : > { %v2832_v3 = vpop.eup %2240  ;;  %907 = vperm.xlu1 %2198, %v2237_v0  }
 0x31c   : > { %v871_v35 = vmul.f32 1.442695, %v865_v1  ;;  %v1295_v4 = vpack.c.bf16 %v2832_v3, %v2829_v63 }
 0x31e   : > { %2242 = vpow2.f32 %v871_v35  ;;  %2039 = vmatmul.msk.bf16.vlgmr.msrb.gmra.mxu2 %vm639_vm3, %v1295_v4 }
 0x324   : > { %v2243_v6 = vpop.eup %2242 }
 0x325   : > { %v885_v8 = vsel %vm639_vm3, %v2243_v6, 0.0 }
 0x326   : > { %886 = vadd.xlane.f32.xlu0 %v885_v8 }
 0x329   : > { %v2848_v21 = vpop.permute.xlu1 %897 }
 0x32e   : > { %1007 = vmax.xlane.f32.xlu0 %v1006_v2 }
 0x336   : > { %1013 = vmax.xlane.f32.xlu0 %v1012_v18  ;;  %v1347_v18 = vsel %vm1345_vm4, %v2643_v22, %v2762_v36  ;;  %v1349_v22 = vsel %vm1345_vm4, %v2656_v28, %v2793_v53 }
 0x342   : > { %v861_v24 = vpop.permute.xlu1 %860 }
 0x343   : > { %v866_v58 = vsub.f32 %v2730_v14, %v861_v24  ;;  %v2428_v14 = vmov 2  }
 0x344   : > { %2203 = vset.pattern.permute.xlu0 %v2428_v14  ;;  %2201 = vset.pattern.permute.xlu2 %v2428_v14 }
 0x345   : > { %v873_v62 = vmul.f32 1.442695, %v866_v58  ;;  %2208 = vset.pattern.permute.xlu1 %v2428_v14 }
 0x347   : > { %2244 = vpow2.f32 %v873_v62  ;;  %v2884_v62 = vmax.f32 %v2653_v26, %v2786_v49 }
 0x34d   : > { %v2245_v29 = vpop.eup %2244 }
 0x34e   : > { %v888_v30 = vsel %vm639_vm3, %v2245_v29, 0.0  ;;  %v920_v37 = vpack.c.bf16 %v2245_v29, %v2243_v6 }
 0x34f   : > { %889 = vadd.xlane.f32.xlu2 %v888_v30 }
 0x350   : > { %2032 = vmatmul.msk.bf16.gmra.mxu3 %vm639_vm3, %v920_v37  ;;  %v834_v37 = vsub.f32 %v2653_v26, %v2793_v53 }
 0x357   : > { %1004 = vmax.xlane.f32.xlu2 %v1003_v41  ;;  %v841_v41 = vmul.f32 1.442695, %v834_v37 }
 0x359   : > { %2246 = vpow2.f32 %v841_v41 }
 0x35b   : > { %v712_v45 = vpop.xlane.xlu2 %711 }
 0x35c   : > { %v718_v35 = vadd.f32 %v712_v45, %v702_v54 }
 0x35f   : > { %1010 = vmax.xlane.f32.xlu2 %v1009_v42  ;;  %v2247_v42 = vpop.eup %2246 }
 0x366   : > { %v2899_v28 = vpop.xlane.xlu2 %880 }
 0x36d   : > { %v715_v45 = vpop.xlane.xlu1 %714 }
 0x378   : > { %v939_v43 = vpop.f32.mrf.mxu3 }
 0x379   : > { %953 = vrot.lane.b32.xlu1 %v939_v43, %s2427_s11  ;;  %v2902_v43 = vld [vmem:[#allocation3 + $0x18] sm:$0xff] }
 0x37a   : > { %v703_v53 = vmul.f32 %v2750_v32, %v2902_v43  ;;  %v878_v54 = vmul.f32 %v2247_v42, %v2902_v43 }
 0x380   : > { %v941_v49 = vpop.f32.mrf.mxu3 }
 0x399   : > { %v887_v1 = vpop.xlane.xlu0 %886 }
 0x39a   : > { %v893_v4 = vadd.f32 %v887_v1, %v877_v56  ;;  %v719_v1 = vadd.f32 %v715_v45, %v703_v53 }
 0x39c   : > { %v2869_v6 = vsel %vm1345_vm4, %v718_v35, %v893_v4 }
 0x3a1   : > { %v1008_v8 = vpop.xlane.xlu0 %1007 }
 0x3a2   : > { %v1016_v2 = vmax.f32 %v2640_v20, %v1008_v8 }
 0x3a4   : > { %v1352_v31 = vsel %vm1350_vm5, %v1347_v18, %v1016_v2  ;;  %1038 = vperm.xlu0 %2203, %v1016_v2  }
 0x3a5   : > { %v1357_v0 = vsel %vm1355_vm6, %v1352_v31, %v2775_v46  ;;  %v1346_v31 = vsel %vm1345_vm4, %v2636_v17, %v2758_v38  ;;  %v2927_v17 = vmax.f32 %v2646_v23, %v2790_v51  ;;  %v1020_v38 = vsub.f32 %v2640_v20, %v1016_v2  ;;  %v2939_v51 = vpop.xlane.xlu1 %883 }
 0x3a6   : > { %1362 = vst.msk [vmem:[#allocation2 + $0x8] sm:$0xff] %vm1360_vm7, %v1357_v0 }
 0x3a9   : > { %v1014_v24 = vpop.xlane.xlu0 %1013 }
 0x3aa   : > { %v2880_v58 = vmax.f32 %v2653_v26, %v1014_v24 }
 0x3ac   : > { %v1354_v29 = vsel %vm1350_vm5, %v1349_v22, %v2880_v58  ;;  %1048 = vperm.xlu0 %2203, %v2880_v58  }
 0x3ad   : > { %v1359_v30 = vsel %vm1355_vm6, %v1354_v29, %v2884_v62  ;;  %v2946_v53 = vpop.permute.xlu1 %907 }
 0x3ae   : > { %1364 = vst.msk [vmem:[#allocation2 + $0x18] sm:$0xff] %vm1360_vm7, %v1359_v30  ;;  %v1348_v30 = vsel %vm1345_vm4, %v2649_v25, %v2782_v48  ;;  %v832_v25 = vsub.f32 %v2640_v20, %v2762_v36  ;;  %v1025_v48 = vmul.f32 1.442695, %v1020_v38  ;;  %v1255_v36 = vsel %vm639_vm3, %v2829_v63, 0.0 }
 0x3b0   : > { %v837_v2 = vmul.f32 1.442695, %v832_v25  ;;  %2248 = vpow2.f32 %v1025_v48 }
 0x3b2   : > { %2250 = vpow2.f32 %v837_v2 }
 0x3b4   : > { %2205 = vset.pattern.permute.xlu0 %v2425_v16 }
 0x3b5   : > { %1236 = vperm.xlu0 %2205, %v2884_v62  }
 0x3b6   : > { %v2944_v45 = vpop.eup %2248 }
 0x3bd   : > { %955 = vrot.lane.b32.xlu0 %v941_v49, %s2427_s11 }
 0x3be   : > { %2211 = vset.pattern.permute.xlu0 %v2428_v14 }
 0x3c2   : > { %v890_v56 = vpop.xlane.xlu2 %889 }
 0x3c3   : > { %v894_v35 = vadd.f32 %v890_v56, %v878_v54  ;;  %v2951_v54 = vpop.eup %2250  ;;  %v2953_v56 = vld [vmem:[#allocation4] sm:$0xff] }
 0x3c5   : > { %v2909_v4 = vsel %vm1345_vm4, %v719_v1, %v894_v35  ;;  %v740_v1 = vmul.f32 %v2736_v19, %v2953_v56  ;;  %v915_v35 = vmul.f32 %v2848_v21, %v2953_v56 }
 0x3ca   : > { %v1005_v8 = vpop.xlane.xlu2 %1004 }
 0x3cb   : > { %v1015_v18 = vmax.f32 %v2633_v15, %v1005_v8 }
 0x3cd   : > { %v1351_v0 = vsel %vm1350_vm5, %v1346_v31, %v1015_v18  ;;  %1033 = vperm.xlu2 %2201, %v1015_v18   ;;  %v777_v31 = vadd.f32 %v2804_v11, %v740_v1  ;;  %v1258_v11 = vsel %vm639_vm3, %v2832_v3, 0.0 }
 0x3ce   : > { %v1356_v32 = vsel %vm1355_vm6, %v1351_v0, %v2755_v34 }
 0x3cf   : > { %1361 = vst.msk [vmem:[#allocation2] sm:$0xff] %vm1360_vm7, %v1356_v32 }
 0x3d2   : > { %v1011_v24 = vpop.xlane.xlu2 %1010 }
 0x3d3   : > { %v2920_v22 = vmax.f32 %v2646_v23, %v1011_v24  ;;  %v944_v29 = vpop.f32.mrf.mxu3 }
 0x3d5   : > { %v1353_v37 = vsel %vm1350_vm5, %v1348_v30, %v2920_v22  ;;  %2202 = vset.pattern.permute.xlu2 %v2425_v16 }
 0x3d6   : > { %v1358_v41 = vsel %vm1355_vm6, %v1353_v37, %v2927_v17  ;;  %1231 = vperm.xlu2 %2202, %v2927_v17  }
 0x3d7   : > { %1363 = vst.msk [vmem:[#allocation2 + $0x10] sm:$0xff] %vm1360_vm7, %v1358_v41 }
 0x3db   : > { %v946_v49 = vpop.f32.mrf.mxu3 }
 0x3dc   : > { %959 = vrot.lane.b32.xlu1 %v946_v49, %s2427_s11 }
 0x3de   : > { %2204 = vset.pattern.permute.xlu2 %v2428_v14 }
 0x3df   : > { %1043 = vperm.xlu2 %2204, %v2920_v22  }
 0x3e4   : > { %1090 = vperm.xlu1 %2208, %v2944_v45  }
 0x3e7   : > { %1256 = vadd.xlane.f32.xlu0 %v1255_v36  ;;  %2206 = vset.pattern.permute.xlu2 %v2426_v39  ;;  %v1019_v39 = vsub.f32 %v2633_v15, %v1015_v18 }
 0x3e8   : > { %902 = vperm.xlu2 %2206, %v2951_v54  }
 0x3e9   : > { %v1023_v32 = vmul.f32 1.442695, %v1019_v39 }
 0x3eb   : > { %v954_v8 = vpop.permute.xlu1 %953  ;;  %2252 = vpow2.f32 %v1023_v32 }
 0x3ec   : > { %v965_v0 = vadd.f32 %v954_v8, %v915_v35  ;;  %2209 = vset.pattern.permute.xlu1 %v2425_v16  ;;  %v1021_v8 = vsub.f32 %v2646_v23, %v2920_v22 }
 0x3ee   : > { %v2964_v63 = vsel %vm610_vm2, %v777_v31, %v965_v0 }
 0x3f0   : > { %912 = vperm.xlu2 %2206, %v2247_v42   ;;  %v1207_v42 = vsub.f32 %v2633_v15, %v2755_v34 }
 0x3f1   : > { %v2969_v19 = vpop.eup %2252 }
 0x3f2   : > { %v1211_v18 = vmul.f32 1.442695, %v1207_v42  ;;  %v1027_v42 = vmul.f32 1.442695, %v1021_v8 }
 0x3f4   : > { %2254 = vpow2.f32 %v1211_v18  ;;  %v2997_v18 = vld [vmem:[#allocation4 + $0x8] sm:$0xff] }
 0x3f8   : > { %957 = vrot.lane.b32.xlu2 %v944_v29, %s2427_s11 }
 0x3f9   : > { %2207 = vset.pattern.permute.xlu2 %v2428_v14 }
 0x3fa   : > { %v2978_v30 = vpop.eup %2254 }
 0x400   : > { %1085 = vperm.xlu2 %2207, %v2969_v19  }
 0x408   : > { %2210 = vset.pattern.permute.xlu2 %v2425_v16 }
 0x40e   : > { %1259 = vadd.xlane.f32.xlu1 %v1258_v11 }
 0x416   : > { %v1039_v21 = vpop.permute.xlu0 %1038 }
 0x417   : > { %v1052_v29 = vsub.f32 %v2837_v5, %v1039_v21 }
 0x419   : > { %v1057_v38 = vmul.f32 1.442695, %v1052_v29 }
 0x41b   : > { %2256 = vpow2.f32 %v1057_v38 }
 0x41e   : > { %v1049_v24 = vpop.permute.xlu0 %1048 }
 0x421   : > { %v2983_v34 = vpop.eup %2256 }
 0x427   : > { %v1237_v37 = vpop.permute.xlu0 %1236  ;;  %1273 = vperm.xlu1 %2209, %v2978_v30   ;;  %v1034_v41 = vpop.permute.xlu2 %1033 }
 0x428   : > { %v1242_v25 = vsub.f32 %v2723_v10, %v1237_v37  ;;  %v1051_v3 = vsub.f32 %v2827_v55, %v1034_v41  ;;  %v1054_v55 = vsub.f32 %v2844_v13, %v1049_v24  ;;  %v741_v13 = vmul.f32 %v2788_v50, %v2997_v18  ;;  %v3012_v50 = vld [vmem:[#allocation4 + $0x18] sm:$0xff] }
 0x42a   : > { %v1249_v48 = vmul.f32 1.442695, %v1242_v25  ;;  %v1055_v49 = vmul.f32 1.442695, %v1051_v3  ;;  %v1061_v31 = vmul.f32 1.442695, %v1054_v55  ;;  %v778_v37 = vadd.f32 %v2808_v60, %v741_v13 }
 0x42b   : > { %v1208_v3 = vsub.f32 %v2640_v20, %v2775_v46  ;;  %v743_v60 = vmul.f32 %v2798_v61, %v3012_v50  ;;  %v1070_v13 = vsel %vm639_vm3, %v2983_v34, 0.0 }
 0x42c   : > { %2258 = vpow2.f32 %v1249_v48 }
 0x42d   : > { %2260 = vpow2.f32 %v1055_v49 }
 0x42f   : > { %v956_v38 = vpop.permute.xlu0 %955 }
 0x430   : > { %v1232_v15 = vpop.permute.xlu2 %1231 }
 0x431   : > { %v1241_v5 = vsub.f32 %v2719_v7, %v1232_v15  ;;  %v1213_v15 = vmul.f32 1.442695, %v1208_v3 }
 0x432   : > { %v2259_v2 = vpop.eup %2258 }
 0x433   : > { %v2986_v36 = vpop.eup %2260  ;;  %v1247_v1 = vmul.f32 1.442695, %v1241_v5  ;;  %v1264_v35 = vsel %vm639_vm3, %v2259_v2, 0.0 }
 0x434   : > { %1265 = vadd.xlane.f32.xlu0 %v1264_v35  ;;  %v1107_v10 = vpack.c.bf16 %v2983_v34, %v2986_v36  ;;  %v780_v35 = vadd.f32 %v2817_v33, %v743_v60 }
 0x435   : > { %2262 = vpow2.f32 %v1247_v1 }
 0x436   : > { %2035 = vmatmul.msk.bf16.vlgmr.msrb.gmra.mxu3 %vm639_vm3, %v1107_v10  ;;  %2264 = vpow2.f32 %v1061_v31  ;;  %v1022_v10 = vsub.f32 %v2653_v26, %v2880_v58 }
 0x439   : > { %v1044_v7 = vpop.permute.xlu2 %1043 }
 0x43a   : > { %v1053_v0 = vsub.f32 %v2840_v9, %v1044_v7 }
 0x43b   : > { %v2263_v39 = vpop.eup %2262 }
 0x43c   : > { %v1059_v32 = vmul.f32 1.442695, %v1053_v0  ;;  %v1261_v11 = vsel %vm639_vm3, %v2263_v39, 0.0  ;;  %v1296_v21 = vpack.c.bf16 %v2259_v2, %v2263_v39  ;;  %v2265_v24 = vpop.eup %2264  ;;  %v3017_v2 = vld [vmem:[#allocation4 + $0x10] sm:$0xff]  ;;  %v1029_v0 = vmul.f32 1.442695, %v1022_v10 }
 0x43d   : > { %1262 = vadd.xlane.f32.xlu2 %v1261_v11  ;;  %v742_v1 = vmul.f32 %v2796_v59, %v3017_v2  ;;  %v917_v61 = vmul.f32 %v2946_v53, %v3017_v2 }
 0x43e   : > { %2266 = vpow2.f32 %v1059_v32  ;;  %2040 = vmatmul.msk.bf16.gmra.mxu2 %vm639_vm3, %v1296_v21  ;;  %v1315_v32 = vpop.f32.mrf.mxu2 }
 0x43f   : > { %2268 = vpow2.f32 %v1027_v42  ;;  %v779_v59 = vadd.f32 %v2813_v27, %v742_v1  ;;  %v1067_v42 = vsel %vm639_vm3, %v2986_v36, 0.0 }
 0x440   : > { %2270 = vpow2.f32 %v1213_v15 }
 0x441   : > { %2272 = vpow2.f32 %v1029_v0 }
 0x442   : > { %v903_v22 = vpop.permute.xlu2 %902 }
 0x443   : > { %v916_v9 = vmul.f32 %v903_v22, %v2997_v18 }
 0x444   : > { %v2267_v29 = vpop.eup %2266 }
 0x445   : > { %v966_v41 = vadd.f32 %v956_v38, %v916_v9  ;;  %v1108_v25 = vpack.c.bf16 %v2265_v24, %v2267_v29  ;;  %v3006_v48 = vpop.eup %2268  ;;  %v1073_v8 = vsel %vm639_vm3, %v2267_v29, 0.0 }
 0x446   : > { %v3033_v39 = vpop.eup %2270  ;;  %v1317_v21 = vpop.f32.mrf.mxu2  ;;  %v1065_v34 = vmul.f32 %v3006_v48, %v2863_v44 }
 0x447   : > { %v3009_v49 = vsel %vm610_vm2, %v778_v37, %v966_v41  ;;  %2036 = vmatmul.msk.bf16.gmra.mxu3 %vm639_vm3, %v1108_v25  ;;  %v3041_v53 = vpop.eup %2272 }
 0x448   : > { %1095 = vperm.xlu0 %2211, %v3006_v48  }
 0x44a   : > { %v913_v5 = vpop.permute.xlu2 %912 }
 0x44b   : > { %v918_v20 = vmul.f32 %v913_v5, %v3012_v50 }
 0x44e   : > { %v960_v46 = vpop.permute.xlu1 %959 }
 0x44f   : > { %v968_v55 = vadd.f32 %v960_v46, %v918_v20 }
 0x450   : > { %2213 = vset.pattern.permute.xlu0 %v2425_v16  ;;  %v1210_v16 = vsub.f32 %v2653_v26, %v2884_v62  ;;  %v1076_v26 = vsel %vm639_vm3, %v2265_v24, 0.0 }
 0x451   : > { %v3030_v31 = vsel %vm610_vm2, %v780_v35, %v968_v55  ;;  %1074 = vadd.xlane.f32.xlu1 %v1073_v8  ;;  %v1063_v55 = vmul.f32 %v2969_v19, %v2820_v40  ;;  %v1251_v8 = vmul.f32 %v2978_v30, %v2820_v40 }
 0x452   : > { %v958_v7 = vpop.permute.xlu2 %957  ;;  %v1217_v27 = vmul.f32 1.442695, %v1210_v16 }
 0x453   : > { %v967_v33 = vadd.f32 %v958_v7, %v917_v61 }
 0x454   : > { %2274 = vpow2.f32 %v1217_v27 }
 0x455   : > { %v3036_v58 = vsel %vm610_vm2, %v779_v59, %v967_v33  ;;  %1278 = vperm.xlu2 %2210, %v3033_v39  }
 0x456   : > { %v3054_v36 = vpop.permute.xlu1 %1090 }
 0x45a   : > { %v2275_v11 = vpop.eup %2274  ;;  %v3056_v24 = vpop.permute.xlu2 %1085 }
 0x45b   : > { %v1257_v46 = vpop.xlane.xlu0 %1256 }
 0x45c   : > { %v1267_v0 = vadd.f32 %v1257_v46, %v1251_v8 }
 0x45d   : > { %2212 = vset.pattern.permute.xlu2 %v2428_v14  ;;  %v1209_v14 = vsub.f32 %v2646_v23, %v2927_v17 }
 0x45e   : > { %1100 = vperm.xlu2 %2212, %v3041_v53  }
 0x45f   : > { %v1215_v62 = vmul.f32 1.442695, %v1209_v14 }
 0x461   : > { %2276 = vpow2.f32 %v1215_v62 }
 0x467   : > { %v2277_v22 = vpop.eup %2276 }
 0x468   : > { %v1253_v37 = vmul.f32 %v2277_v22, %v2863_v44 }
 0x46a   : > { %1288 = vperm.xlu1 %2209, %v2275_v11  }
 0x472   : > { %1068 = vadd.xlane.f32.xlu0 %v1067_v42  ;;  %1331 = vrot.lane.b32.xlu1 %v1317_v21, %s2429_s26  ;;  %v588_v42 = vld [vmem:[#allocation3 + $0x8] sm:$0xff] }
 0x473   : > { %v701_v14 = vmul.f32 %v2727_v12, %v588_v42  ;;  %v1252_v62 = vmul.f32 %v3033_v39, %v588_v42 }
 0x47a   : > { %1077 = vadd.xlane.f32.xlu0 %v1076_v26  ;;  %v876_v26 = vmul.f32 %v2951_v54, %v588_v42 }
 0x481   : > { %v1260_v9 = vpop.xlane.xlu1 %1259 }
 0x487   : > { %1071 = vadd.xlane.f32.xlu2 %v1070_v13 }
 0x48e   : > { %1283 = vperm.xlu0 %2213, %v2277_v22  }
 0x499   : > { %v3058_v38 = vpop.permute.xlu1 %1273 }
 0x49f   : > { %1329 = vrot.lane.b32.xlu2 %v1315_v32, %s2429_s26 }
 0x4a7   : > { %v1266_v44 = vpop.xlane.xlu0 %1265 }
 0x4b0   : > { %v1263_v17 = vpop.xlane.xlu2 %1262 }
 0x4b1   : > { %v1269_v3 = vadd.f32 %v1263_v17, %v1253_v37 }
 0x4b8   : > { %v1279_v33 = vpop.permute.xlu2 %1278 }
 0x4b9   : > { %v1127_v29 = vpop.f32.mrf.mxu3 }
 0x4ba   : > { %1141 = vrot.lane.b32.xlu1 %v1127_v29, %s2430_s27  ;;  %v1096_v48 = vpop.permute.xlu0 %1095  ;;  %v1268_v29 = vadd.f32 %v1260_v9, %v1252_v62 }
 0x4c0   : > { %v1101_v21 = vpop.permute.xlu2 %1100 }
 0x4c1   : > { %v1129_v23 = vpop.f32.mrf.mxu3  ;;  %v1320_v5 = vpop.f32.mrf.mxu2 }
 0x4c2   : > { %1143 = vrot.lane.b32.xlu2 %v1129_v23, %s2430_s27 }
 0x4c4   : > { %v1075_v41 = vpop.xlane.xlu1 %1074 }
 0x4c5   : > { %v1081_v25 = vadd.f32 %v1075_v41, %v1065_v34 }
 0x4c7   : > { %v1371_v15 = vsel %vm1350_vm5, %v2869_v6, %v1081_v25  ;;  %v875_v6 = vmul.f32 %v2777_v47, %v2820_v40  ;;  %v1066_v47 = vmul.f32 %v3041_v53, %v2902_v43  ;;  %v892_v53 = vadd.f32 %v2939_v51, %v876_v26 }
 0x4c8   : > { %v1375_v60 = vsel %vm1355_vm6, %v1371_v15, %v1269_v3  ;;  %v1104_v51 = vmul.f32 %v3054_v36, %v2997_v18  ;;  %v1103_v25 = vmul.f32 %v3056_v24, %v2953_v56  ;;  %v1291_v36 = vmul.f32 %v3058_v38, %v2953_v56 }
 0x4c9   : > { %1379 = vst.msk [vmem:[#allocation3 + $0x10] sm:$0xff] %vm1360_vm7, %v1375_v60  ;;  %v1322_v1 = vpop.f32.mrf.mxu2  ;;  %v891_v10 = vadd.f32 %v2899_v28, %v875_v6  ;;  %v1254_v28 = vmul.f32 %v2275_v11, %v2902_v43  ;;  %v1064_v43 = vmul.f32 %v2944_v45, %v588_v42  ;;  %v717_v11 = vadd.f32 %v2861_v57, %v701_v14 }
 0x4ca   : > { %v1132_v20 = vpop.f32.mrf.mxu3  ;;  %v1292_v57 = vmul.f32 %v1279_v33, %v2997_v18  ;;  %v1106_v18 = vmul.f32 %v1101_v21, %v3012_v50  ;;  %v1105_v56 = vmul.f32 %v1096_v48, %v3017_v2 }
 0x4cb   : > { %1145 = vrot.lane.b32.xlu1 %v1132_v20, %s2430_s27  ;;  %v1365_v59 = vsel %vm1345_vm4, %v2825_v52, %v891_v10  ;;  %v1270_v30 = vadd.f32 %v1266_v44, %v1254_v28  ;;  %v1366_v22 = vsel %vm1345_vm4, %v717_v11, %v892_v53 }
 0x4d2   : > { %v1134_v35 = vpop.f32.mrf.mxu3 }
 0x4d3   : > { %1147 = vrot.lane.b32.xlu2 %v1134_v35, %s2430_s27  ;;  %1335 = vrot.lane.b32.xlu1 %v1322_v1, %s2429_s26 }
 0x4db   : > { %1333 = vrot.lane.b32.xlu2 %v1320_v5, %s2429_s26 }
 0x4dc   : > { %v1289_v12 = vpop.permute.xlu1 %1288 }
 0x4e4   : > { %v1332_v45 = vpop.permute.xlu1 %1331 }
 0x4e5   : > { %v1069_v61 = vpop.xlane.xlu0 %1068  ;;  %v1342_v37 = vadd.f32 %v1332_v45, %v1292_v57 }
 0x4e6   : > { %v1079_v7 = vadd.f32 %v1069_v61, %v1063_v55 }
 0x4e8   : > { %v1369_v16 = vsel %vm1350_vm5, %v1365_v59, %v1079_v7 }
 0x4e9   : > { %v1373_v27 = vsel %vm1355_vm6, %v1369_v16, %v1267_v0 }
 0x4ea   : > { %1377 = vst.msk [vmem:[#allocation3] sm:$0xff] %vm1360_vm7, %v1373_v27 }
 0x4ed   : > { %v1078_v19 = vpop.xlane.xlu0 %1077 }
 0x4ee   : > { %v1082_v40 = vadd.f32 %v1078_v19, %v1066_v47 }
 0x4f0   : > { %v1372_v32 = vsel %vm1350_vm5, %v2909_v4, %v1082_v40 }
 0x4f1   : > { %v1376_v52 = vsel %vm1355_vm6, %v1372_v32, %v1270_v30 }
 0x4f2   : > { %1380 = vst.msk [vmem:[#allocation3 + $0x18] sm:$0xff] %vm1360_vm7, %v1376_v52 }
 0x4fa   : > { %v1072_v13 = vpop.xlane.xlu2 %1071 }
 0x4fb   : > { %v1080_v4 = vadd.f32 %v1072_v13, %v1064_v43 }
 0x4fd   : > { %v1370_v23 = vsel %vm1350_vm5, %v1366_v22, %v1080_v4 }
 0x4fe   : > { %v1374_v17 = vsel %vm1355_vm6, %v1370_v23, %v1268_v29 }
 0x4ff   : > { %1378 = vst.msk [vmem:[#allocation3 + $0x8] sm:$0xff] %vm1360_vm7, %v1374_v17 }
 0x500   : > { %v1284_v24 = vpop.permute.xlu0 %1283 }
 0x501   : > { %v1293_v35 = vmul.f32 %v1284_v24, %v3017_v2 }
 0x502   : > { %v1330_v54 = vpop.permute.xlu2 %1329 }
 0x503   : > { %v1341_v60 = vadd.f32 %v1330_v54, %v1291_v36 }
 0x51c   : > { %v1144_v39 = vpop.permute.xlu2 %1143 }
 0x51d   : > { %v1154_v34 = vadd.f32 %v1144_v39, %v1104_v51 }
 0x51f   : > { %v1386_v9 = vsel %vm639_vm3, %v3009_v49, %v1154_v34 }
 0x520   : > { %v1391_v41 = vsel %vm1389_vm8, %v1386_v9, %v1342_v37 }
 0x521   : > { %1396 = vst.msk [vmem:[#allocation4 + $0x8] sm:$0xff] %vm1394_vm9, %v1391_v41 }
 0x52c   : > { %v1142_v3 = vpop.permute.xlu1 %1141 }
 0x52d   : > { %v1153_v15 = vadd.f32 %v1142_v3, %v1103_v25  ;;  %v1148_v5 = vpop.permute.xlu2 %1147 }
 0x52e   : > { %v1156_v20 = vadd.f32 %v1148_v5, %v1106_v18 }
 0x52f   : > { %v1385_v49 = vsel %vm639_vm3, %v2964_v63, %v1153_v15 }
 0x530   : > { %v1390_v46 = vsel %vm1389_vm8, %v1385_v49, %v1341_v60  ;;  %v1388_v1 = vsel %vm639_vm3, %v3030_v31, %v1156_v20  ;;  %v1294_v31 = vmul.f32 %v1289_v12, %v3012_v50 }
 0x531   : > { %1395 = vst.msk [vmem:[#allocation4] sm:$0xff] %vm1394_vm9, %v1390_v46 }
 0x535   : > { %v1334_v38 = vpop.permute.xlu2 %1333 }
 0x536   : > { %v1343_v10 = vadd.f32 %v1334_v38, %v1293_v35 }
 0x53d   : > { %v1146_v44 = vpop.permute.xlu1 %1145 }
 0x53e   : > { %v1155_v6 = vadd.f32 %v1146_v44, %v1105_v56 }
 0x540   : > { %v1387_v55 = vsel %vm639_vm3, %v3036_v58, %v1155_v6 }
 0x541   : > { %v1392_v63 = vsel %vm1389_vm8, %v1387_v55, %v1343_v10 }
 0x542   : > { %1397 = vst.msk [vmem:[#allocation4 + $0x10] sm:$0xff] %vm1394_vm9, %v1392_v63 }
 0x545   : > { %v1336_v8 = vpop.permute.xlu1 %1335  ;;  %1402 = sbr.rel (%p2041_p1) target bundleno = 2219 (0x8ab), region = 76 }
 0x546   : > { %v1344_v61 = vadd.f32 %v1336_v8, %v1294_v31 }
 0x548   : > { %v1393_v7 = vsel %vm1389_vm8, %v1388_v1, %v1344_v61 }
 0x549   : > { %1398 = vst.msk [vmem:[#allocation4 + $0x18] sm:$0xff] %vm1394_vm9, %v1393_v7 }
 0x54a   : > { %v1403_v2 = vld [vmem:[#allocation3] sm:$0xff]  ;;  %v2431_v48 = vmov 1   ;;  %v2432_v59 = vmov 0   ;;  %v2433_v58 = vmov 2   ;;  %v1404_v0 = vld [vmem:[#allocation3 + $0x8] sm:$0xff]  ;;  %v1405_v50 = vld [vmem:[#allocation3 + $0x10] sm:$0xff] }
 0x54b   : > { %2279 = vset.pattern.permute.xlu1 %v2431_v48  ;;  %2278 = vset.pattern.permute.xlu0 %v2432_v59  ;;  %2297 = vrcp.f32 %v1403_v2  ;;  %v1406_v16 = vld [vmem:[#allocation3 + $0x18] sm:$0xff]  ;;  %v1800_v47 = vld [vmem:[#allocation2] sm:$0xff]  ;;  %v1801_v40 = vld [vmem:[#allocation2 + $0x8] sm:$0xff]  ;;  %v2434_v22 = vmov 3  }
 0x54c   : > { %2299 = vlog2.f32 %v1403_v2  ;;  %2280 = vset.pattern.permute.xlu2 %v2433_v58  ;;  %v1802_v21 = vld [vmem:[#allocation2 + $0x10] sm:$0xff]  ;;  %v1803_v43 = vld [vmem:[#allocation2 + $0x18] sm:$0xff]  ;;  %v2093_v23 = vld [vmem:[%s3299_s4 + $0x8] sm:$0xff] }
 0x54d   : > { %2301 = vlog2.f32 %v1404_v0  ;;  %1545 = vmatpush.bf16.msra.mxu0 %v2093_v23  ;;  %v2092_v17 = vld [vmem:[%s3299_s4] sm:$0xff]  ;;  %v1412_v9 = vld [vmem:[#allocation4 + $0x8] sm:$0xff]  ;;  %v1413_v2 = vld [vmem:[#allocation4 + $0x10] sm:$0xff] }
 0x54e   : > { %2303 = vlog2.f32 %v1405_v50  ;;  %v1411_v34 = vld [vmem:[#allocation4] sm:$0xff]  ;;  %v1560_v23 = vld [vmem:[%s2598_s10 + $0x10] sm:$0xff] }
 0x54f   : > { %2305 = vrcp.f32 %v1404_v0 }
 0x550   : > { %2307 = vlog2.f32 %v1406_v16  ;;  %v1414_v63 = vld [vmem:[#allocation4 + $0x18] sm:$0xff] }
 0x551   : > { %v2298_v33 = vpop.eup %2297  ;;  %2309 = vrcp.f32 %v1405_v50  ;;  %1546 = vmatpush.bf16.msra.mxu0 %v2092_v17 }
 0x552   : > { %v2300_v27 = vpop.eup %2299  ;;  %1440 = vperm.xlu1 %2279, %v2298_v33   ;;  %1417 = vperm.xlu0 %2278, %v2298_v33   ;;  %2311 = vrcp.f32 %v1406_v16 }
 0x553   : > { %v1805_v28 = vmul.f32 0.6931472, %v2300_v27  ;;  %1460 = vperm.xlu2 %2280, %v2298_v33   ;;  %v2302_v19 = vpop.eup %2301 }
 0x554   : > { %v1807_v32 = vmul.f32 0.6931472, %v2302_v19  ;;  %v2304_v52 = vpop.eup %2303 }
 0x555   : > { %v1812_v30 = vadd.f32 %v1805_v28, %v1800_v47  ;;  %v2306_v42 = vpop.eup %2305  ;;  %v1809_v14 = vmul.f32 0.6931472, %v2304_v52 }
 0x556   : > { %v1813_v26 = vadd.f32 %v1807_v32, %v1801_v40  ;;  %v2308_v53 = vpop.eup %2307 }
 0x557   : > { %1816 = vst.msk [vmem:[%s2603_s18] sm:$0xff] %vm1360_vm7, %v1812_v30  ;;  %v1814_v11 = vadd.f32 %v1809_v14, %v1802_v21  ;;  %v1811_v62 = vmul.f32 0.6931472, %v2308_v53  ;;  %v2310_v4 = vpop.eup %2309  ;;  %v2292_v21 = vld [vmem:[%s3300_s5] ss:$0 sm:$0xff] }
 0x558   : > { %1817 = vst.msk [vmem:[%s2603_s18 + $0x8] sm:$0xff] %vm1360_vm7, %v1813_v26  ;;  %v2312_v29 = vpop.eup %2311  ;;  %v1558_v26 = vld [vmem:[%s2598_s10] sm:$0xff] }
 0x559   : > { %1818 = vst.msk [vmem:[%s2603_s18 + $0x10] sm:$0xff] %vm1360_vm7, %v1814_v11  ;;  %v1815_v13 = vadd.f32 %v1811_v62, %v1803_v43  ;;  %v1559_v62 = vld [vmem:[%s2598_s10 + $0x8] sm:$0xff] }
 0x55a   : > { %1444 = vperm.xlu1 %2279, %v2306_v42   ;;  %1422 = vperm.xlu0 %2278, %v2306_v42  }
 0x55b   : > { %1464 = vperm.xlu2 %2280, %v2306_v42   ;;  %1819 = vst.msk [vmem:[%s2603_s18 + $0x18] sm:$0xff] %vm1360_vm7, %v1815_v13  ;;  %vm1766_vm7 = vcmask 523264  }
 0x562   : > { %2282 = vset.pattern.permute.xlu1 %v2434_v22  ;;  %2281 = vset.pattern.permute.xlu0 %v2434_v22 }
 0x563   : > { %1484 = vperm.xlu1 %2282, %v2306_v42   ;;  %1480 = vperm.xlu0 %2281, %v2298_v33  }
 0x564   : > { %2283 = vset.pattern.permute.xlu2 %v2432_v59 }
 0x565   : > { %1427 = vperm.xlu2 %2283, %v2310_v4  }
 0x56b   : > { %2284 = vset.pattern.permute.xlu1 %v2432_v59  ;;  %2286 = vset.pattern.permute.xlu0 %v2431_v48 }
 0x56c   : > { %1432 = vperm.xlu1 %2284, %v2312_v29   ;;  %1452 = vperm.xlu0 %2286, %v2312_v29  }
 0x56d   : > { %2285 = vset.pattern.permute.xlu2 %v2431_v48 }
 0x56e   : > { %1448 = vperm.xlu2 %2285, %v2310_v4  }
 0x574   : > { %2287 = vset.pattern.permute.xlu1 %v2433_v58  ;;  %2291 = vset.pattern.permute.xlu0 %v2434_v22 }
 0x575   : > { %1468 = vperm.xlu1 %2287, %v2310_v4  }
 0x576   : > { %2288 = vset.pattern.permute.xlu2 %v2433_v58 }
 0x577   : > { %1472 = vperm.xlu2 %2288, %v2312_v29  }
 0x57d   : > { %2289 = vset.pattern.permute.xlu1 %v2434_v22 }
 0x57e   : > { %1488 = vperm.xlu1 %2289, %v2310_v4  }
 0x57f   : > { %2290 = vset.pattern.permute.xlu2 %v2434_v22 }
 0x580   : > { %1492 = vperm.xlu2 %2290, %v2312_v29  }
 0x5ad   : > { %v1461_v12 = vpop.permute.xlu2 %1460 }
 0x5ae   : > { %v1475_v3 = vmul.f32 %v1461_v12, %v1411_v34 }
 0x5b5   : > { %v1465_v54 = vpop.permute.xlu2 %1464 }
 0x5b6   : > { %v1476_v60 = vmul.f32 %v1465_v54, %v1412_v9 }
 0x5bf   : > { %v1428_v37 = vpop.permute.xlu2 %1427 }
 0x5c0   : > { %v1437_v58 = vmul.f32 %v1428_v37, %v1413_v2  ;;  %v2435_v37 = vmov 32.0  }
 0x5c1   : > { %2313 = vrcp.f32 %v2435_v37 }
 0x5c4   : > { %v1441_v51 = vpop.permute.xlu1 %1440  ;;  %v1418_v45 = vpop.permute.xlu0 %1417 }
 0x5c5   : > { %v1455_v41 = vmul.f32 %v1441_v51, %v1411_v34  ;;  %v1435_v25 = vmul.f32 %v1418_v45, %v1411_v34  ;;  %v1561_v45 = vld [vmem:[%s2598_s10 + $0x18] sm:$0xff] }
 0x5c7   : > { %v1499_v15 = vsel %vm610_vm2, %v1435_v25, %v1455_v41 }
 0x5c8   : > { %v1503_v24 = vsel %vm639_vm3, %v1499_v15, %v1475_v3  ;;  %v1449_v38 = vpop.permute.xlu2 %1448 }
 0x5c9   : > { %v1457_v0 = vmul.f32 %v1449_v38, %v1413_v2 }
 0x5cb   : > { %v1501_v28 = vsel %vm610_vm2, %v1437_v58, %v1457_v0  ;;  %v2094_v58 = vld [vmem:[%s3303_s8] sm:$0xff] }
 0x5cc   : > { %v1445_v57 = vpop.permute.xlu1 %1444  ;;  %v1423_v39 = vpop.permute.xlu0 %1422 }
 0x5cd   : > { %v1456_v36 = vmul.f32 %v1445_v57, %v1412_v9  ;;  %v1436_v18 = vmul.f32 %v1423_v39, %v1412_v9 }
 0x5cf   : > { %v1500_v5 = vsel %vm610_vm2, %v1436_v18, %v1456_v36 }
 0x5d0   : > { %v1504_v56 = vsel %vm639_vm3, %v1500_v5, %v1476_v60 }
 0x5d1   : > { %v1473_v55 = vpop.permute.xlu2 %1472 }
 0x5d2   : > { %v1478_v48 = vmul.f32 %v1473_v55, %v1414_v63 }
 0x5d5   : > { %v1485_v20 = vpop.permute.xlu1 %1484  ;;  %v1481_v49 = vpop.permute.xlu0 %1480 }
 0x5d6   : > { %v1496_v46 = vmul.f32 %v1485_v20, %v1412_v9  ;;  %v1495_v1 = vmul.f32 %v1481_v49, %v1411_v34  ;;  %v2314_v9 = vpop.eup %2313 }
 0x5d7   : > { %v1579_v41 = vmul.f32 32.0, %v2314_v9  ;;  %vm1583_vm10 = vweird.f32 %v2314_v9 }
 0x5d8   : > { %v1507_v35 = vsel %vm1389_vm8, %v1503_v24, %v1495_v1  ;;  %v1508_v44 = vsel %vm1389_vm8, %v1504_v56, %v1496_v46 }
 0x5d9   : > { %v1511_v6 = vpack.c.bf16 %v1508_v44, %v1507_v35  ;;  %v1580_v25 = vsub.f32 1.0, %v1579_v41 }
 0x5da   : > { %v1493_v59 = vpop.permute.xlu2 %1492 }
 0x5db   : > { %2050 = vmatmul.msk.bf16.vlgmr.msra.gmra.mxu0 %vm1394_vm9, %v1511_v6  ;;  %v1498_v16 = vmul.f32 %v1493_v59, %v1414_v63  ;;  %v1581_v36 = vmul.f32 %v2314_v9, %v1580_v25 }
 0x5dd   : > { %v1582_v18 = vadd.f32 %v2314_v9, %v1581_v36 }
 0x5de   : > { %v1433_v10 = vpop.permute.xlu1 %1432  ;;  %v1453_v31 = vpop.permute.xlu0 %1452 }
 0x5df   : > { %v1438_v61 = vmul.f32 %v1433_v10, %v1414_v63  ;;  %v1458_v7 = vmul.f32 %v1453_v31, %v1414_v63  ;;  %v3177_v3 = vsel %vm1583_vm10, %v2314_v9, %v1582_v18 }
 0x5e1   : > { %v1502_v50 = vsel %vm610_vm2, %v1438_v61, %v1458_v7 }
 0x5e2   : > { %v1506_v47 = vsel %vm639_vm3, %v1502_v50, %v1478_v48 }
 0x5e3   : > { %v1510_v32 = vsel %vm1389_vm8, %v1506_v47, %v1498_v16 }
 0x5e7   : > { %v1469_v8 = vpop.permute.xlu1 %1468 }
 0x5e8   : > { %v1477_v33 = vmul.f32 %v1469_v8, %v1413_v2 }
 0x5ea   : > { %v1505_v40 = vsel %vm639_vm3, %v1501_v28, %v1477_v33 }
 0x5f0   : > { %v1489_v27 = vpop.permute.xlu1 %1488 }
 0x5f1   : > { %v1497_v19 = vmul.f32 %v1489_v27, %v1413_v2  ;;  %v2095_v2 = vld [vmem:[%s3303_s8 + $0x8] sm:$0xff] }
 0x5f2   : > { %1711 = vmatpush.bf16.msra.mxu1 %v2095_v2  ;;  %v2099_v2 = vld [vmem:[%s3342_s25 + $0x18] sm:$0xff] }
 0x5f3   : > { %v1509_v30 = vsel %vm1389_vm8, %v1505_v40, %v1497_v19  ;;  %1777 = vmatpush.bf16.msra.mxu2 %v2099_v2  ;;  %2101 = vmatpush.bf16.msra.mxu3 %v2099_v2 }
 0x5f4   : > { %v1512_v52 = vpack.c.bf16 %v1510_v32, %v1509_v30 }
 0x5f6   : > { %2051 = vmatmul.msk.bf16.gmra.mxu0 %vm1394_vm9, %v1512_v52  ;;  %1712 = vmatpush.bf16.msra.mxu1 %v2094_v58  ;;  %v2295_v58 = vld [vmem:[%s3344_s16] ss:$0 sm:$0xff] }
 0x658   : > { %v1548_v42 = vpop.f32.mrf.mxu0 }
 0x659   : > { %v1549_v14 = vadd.f32 %v2292_v21, %v1548_v42 }
 0x65b   : > { %v3158_v53 = vadd.f32 %v1558_v26, %v1549_v14 }
 0x65d   : > { %v1566_v43 = vsel %vm1394_vm9, %v3158_v53, 0.0 }
 0x65e   : > { %1567 = vadd.xlane.f32.xlu0 %v1566_v43 }
 0x660   : > { %v1550_v11 = vpop.f32.mrf.mxu0 }
 0x661   : > { %v1551_v13 = vadd.f32 %v2292_v21, %v1550_v11 }
 0x663   : > { %v3163_v4 = vadd.f32 %v1559_v62, %v1551_v13  ;;  %v2293_v62 = vld [vmem:[%s3301_s6] ss:$0 sm:$0xff] }
 0x665   : > { %v1569_v22 = vsel %vm1394_vm9, %v3163_v4, 0.0 }
 0x666   : > { %1570 = vadd.xlane.f32.xlu1 %v1569_v22 }
 0x673   : > { %v1553_v29 = vpop.f32.mrf.mxu0 }
 0x674   : > { %v1554_v17 = vadd.f32 %v2292_v21, %v1553_v29 }
 0x676   : > { %v3168_v12 = vadd.f32 %v1560_v23, %v1554_v17 }
 0x678   : > { %v1572_v54 = vsel %vm1394_vm9, %v3168_v12, 0.0 }
 0x679   : > { %1573 = vadd.xlane.f32.xlu2 %v1572_v54 }
 0x67b   : > { %v1555_v51 = vpop.f32.mrf.mxu0 }
 0x67c   : > { %v1556_v57 = vadd.f32 %v2292_v21, %v1555_v51  ;;  %v2294_v51 = vld [vmem:[%s3302_s7] ss:$0 sm:$0xff] }
 0x67e   : > { %v3173_v39 = vadd.f32 %v1561_v45, %v1556_v57 }
 0x680   : > { %v1575_v34 = vsel %vm1394_vm9, %v3173_v39, 0.0 }
 0x681   : > { %1576 = vadd.xlane.f32.xlu2 %v1575_v34 }
 0x6d1   : > { %v1568_v15 = vpop.xlane.xlu0 %1567 }
 0x6d2   : > { %v1585_v5 = vmul.f32 %v3177_v3, %v1568_v15 }
 0x6d4   : > { %v1589_v60 = vsub.f32 %v3158_v53, %v1585_v5 }
 0x6d6   : > { %v1593_v20 = vmul.f32 %v1589_v60, %v1589_v60 }
 0x6d8   : > { %v1597_v49 = vsel %vm1394_vm9, %v1593_v20, 0.0 }
 0x6d9   : > { %v1571_v46 = vpop.xlane.xlu1 %1570  ;;  %1598 = vadd.xlane.f32.xlu0 %v1597_v49 }
 0x6da   : > { %v1586_v1 = vmul.f32 %v3177_v3, %v1571_v46 }
 0x6dc   : > { %v1590_v24 = vsub.f32 %v3163_v4, %v1586_v1 }
 0x6de   : > { %v1594_v56 = vmul.f32 %v1590_v24, %v1590_v24 }
 0x6e0   : > { %v1600_v38 = vsel %vm1394_vm9, %v1594_v56, 0.0 }
 0x6e1   : > { %1601 = vadd.xlane.f32.xlu1 %v1600_v38 }
 0x6ec   : > { %v1574_v35 = vpop.xlane.xlu2 %1573 }
 0x6ed   : > { %v1587_v44 = vmul.f32 %v3177_v3, %v1574_v35 }
 0x6ef   : > { %v3187_v6 = vsub.f32 %v3168_v12, %v1587_v44 }
 0x6f1   : > { %v1595_v10 = vmul.f32 %v3187_v6, %v3187_v6 }
 0x6f3   : > { %v1603_v55 = vsel %vm1394_vm9, %v1595_v10, 0.0 }
 0x6f4   : > { %1604 = vadd.xlane.f32.xlu2 %v1603_v55  ;;  %v1577_v63 = vpop.xlane.xlu2 %1576 }
 0x6f5   : > { %v1588_v31 = vmul.f32 %v3177_v3, %v1577_v63 }
 0x6f7   : > { %v3194_v8 = vsub.f32 %v3173_v39, %v1588_v31 }
 0x6f9   : > { %v1596_v61 = vmul.f32 %v3194_v8, %v3194_v8 }
 0x6fb   : > { %v1606_v7 = vsel %vm1394_vm9, %v1596_v61, 0.0 }
 0x6fc   : > { %1607 = vadd.xlane.f32.xlu0 %v1606_v7 }
 0x74c   : > { %v1599_v48 = vpop.xlane.xlu0 %1598 }
 0x74d   : > { %v1609_v59 = vmul.f32 %v1599_v48, %v3177_v3  ;;  %v2096_v48 = vld [vmem:[%s3343_s19] sm:$0xff] }
 0x74f   : > { %v1613_v0 = vadd.f32 1e-05, %v1609_v59 }
 0x751   : > { %2315 = vrsqrt.f32 %v1613_v0  ;;  %vm1623_vm12 = vweird.f32 %v1613_v0 }
 0x754   : > { %v1602_v50 = vpop.xlane.xlu1 %1601 }
 0x755   : > { %v1610_v33 = vmul.f32 %v1602_v50, %v3177_v3 }
 0x757   : > { %v2316_v16 = vpop.eup %2315  ;;  %v1614_v27 = vadd.f32 1e-05, %v1610_v33 }
 0x758   : > { %v1618_v47 = vmul.f32 %v2316_v16, %v1613_v0  ;;  %vm1624_vm11 = vweird.f32 %v2316_v16 }
 0x759   : > { %2317 = vrsqrt.f32 %v1614_v27  ;;  %vm1625_vm13 = vmor %vm1623_vm12, %vm1624_vm11  ;;  %vm1633_vm15 = vweird.f32 %v1614_v27 }
 0x75a   : > { %v1619_v28 = vmul.f32 %v2316_v16, %v1618_v47 }
 0x75c   : > { %v1620_v19 = vmul.f32 0.5, %v1619_v28 }
 0x75e   : > { %v1621_v40 = vsub.f32 1.5, %v1620_v19 }
 0x75f   : > { %v2318_v30 = vpop.eup %2317 }
 0x760   : > { %v1622_v32 = vmul.f32 %v2316_v16, %v1621_v40  ;;  %v1628_v52 = vmul.f32 %v2318_v30, %v1614_v27  ;;  %vm1634_vm14 = vweird.f32 %v2318_v30 }
 0x761   : > { %vm1635_vm0 = vmor %vm1633_vm15, %vm1634_vm14 }
 0x762   : > { %v1629_v21 = vmul.f32 %v2318_v30, %v1628_v52  ;;  %v1626_v26 = vsel %vm1625_vm13, %v2316_v16, %v1622_v32 }
 0x763   : > { %v1657_v11 = vmul.f32 %v1626_v26, %v1589_v60 }
 0x764   : > { %v1630_v42 = vmul.f32 0.5, %v1629_v21 }
 0x765   : > { %v1665_v54 = vmul.f32 %v2293_v62, %v1657_v11 }
 0x766   : > { %v1631_v14 = vsub.f32 1.5, %v1630_v42  ;;  %v2296_v42 = vld [vmem:[%s3345_s23] ss:$0 sm:$0xff] }
 0x767   : > { %v1605_v43 = vpop.xlane.xlu2 %1604  ;;  %v1673_v34 = vadd.f32 %v2294_v51, %v1665_v54 }
 0x768   : > { %v1632_v13 = vmul.f32 %v2318_v30, %v1631_v14  ;;  %v1611_v22 = vmul.f32 %v1605_v43, %v3177_v3 }
 0x76a   : > { %v1615_v29 = vadd.f32 1e-05, %v1611_v22  ;;  %v1636_v23 = vsel %vm1635_vm0, %v2318_v30, %v1632_v13 }
 0x76b   : > { %v1658_v17 = vmul.f32 %v1636_v23, %v1590_v24 }
 0x76c   : > { %2319 = vrsqrt.f32 %v1615_v29  ;;  %vm1643_vm2 = vweird.f32 %v1615_v29 }
 0x76d   : > { %v1666_v45 = vmul.f32 %v2293_v62, %v1658_v17 }
 0x76f   : > { %v1608_v57 = vpop.xlane.xlu0 %1607  ;;  %v1674_v37 = vadd.f32 %v2294_v51, %v1666_v45 }
 0x770   : > { %v1612_v9 = vmul.f32 %v1608_v57, %v3177_v3 }
 0x771   : > { %v1677_v41 = vpack.c.bf16 %v1674_v37, %v1673_v34 }
 0x772   : > { %v2320_v25 = vpop.eup %2319  ;;  %v1616_v36 = vadd.f32 1e-05, %v1612_v9 }
 0x773   : > { %v1638_v18 = vmul.f32 %v2320_v25, %v1615_v29  ;;  %2060 = vmatmul.msk.bf16.vlgmr.msra.gmra.mxu1 %vm1394_vm9, %v1677_v41  ;;  %vm1644_vm1 = vweird.f32 %v2320_v25 }
 0x774   : > { %2321 = vrsqrt.f32 %v1616_v36  ;;  %vm1645_vm3 = vmor %vm1643_vm2, %vm1644_vm1  ;;  %vm1653_vm5 = vweird.f32 %v1616_v36 }
 0x775   : > { %v1639_v15 = vmul.f32 %v2320_v25, %v1638_v18 }
 0x777   : > { %v1640_v5 = vmul.f32 0.5, %v1639_v15 }
 0x779   : > { %v1641_v60 = vsub.f32 1.5, %v1640_v5 }
 0x77a   : > { %v2322_v20 = vpop.eup %2321 }
 0x77b   : > { %v1642_v49 = vmul.f32 %v2320_v25, %v1641_v60  ;;  %v1648_v46 = vmul.f32 %v2322_v20, %v1616_v36  ;;  %vm1654_vm4 = vweird.f32 %v2322_v20 }
 0x77c   : > { %vm1655_vm6 = vmor %vm1653_vm5, %vm1654_vm4 }
 0x77d   : > { %v1649_v1 = vmul.f32 %v2322_v20, %v1648_v46  ;;  %v1646_v56 = vsel %vm1645_vm3, %v2320_v25, %v1642_v49 }
 0x77e   : > { %v1659_v38 = vmul.f32 %v1646_v56, %v3187_v6  ;;  %v2098_v6 = vld [vmem:[%s3343_s19 + $0x10] sm:$0xff] }
 0x77f   : > { %v1650_v24 = vmul.f32 0.5, %v1649_v1  ;;  %1778 = vmatpush.bf16.msra.mxu2 %v2098_v6  ;;  %2102 = vmatpush.bf16.msra.mxu3 %v2098_v6 }
 0x780   : > { %v1667_v55 = vmul.f32 %v2293_v62, %v1659_v38 }
 0x781   : > { %v1651_v3 = vsub.f32 1.5, %v1650_v24 }
 0x782   : > { %v1675_v31 = vadd.f32 %v2294_v51, %v1667_v55 }
 0x783   : > { %v1652_v35 = vmul.f32 %v2322_v20, %v1651_v3 }
 0x785   : > { %v1656_v44 = vsel %vm1655_vm6, %v2322_v20, %v1652_v35 }
 0x786   : > { %v1660_v10 = vmul.f32 %v1656_v44, %v3194_v8  ;;  %v2097_v8 = vld [vmem:[%s3343_s19 + $0x8] sm:$0xff] }
 0x787   : > { %1779 = vmatpush.bf16.msra.mxu2 %v2097_v8  ;;  %2103 = vmatpush.bf16.msra.mxu3 %v2097_v8 }
 0x788   : > { %v1668_v63 = vmul.f32 %v2293_v62, %v1660_v10 }
 0x78a   : > { %v1676_v61 = vadd.f32 %v2294_v51, %v1668_v63 }
 0x78b   : > { %1780 = vmatpush.bf16.msra.mxu2 %v2096_v48  ;;  %2104 = vmatpush.bf16.msra.mxu3 %v2096_v48 }
 0x78c   : > { %v1678_v7 = vpack.c.bf16 %v1676_v61, %v1675_v31 }
 0x78e   : > { %2061 = vmatmul.msk.bf16.gmra.mxu1 %vm1394_vm9, %v1678_v7 }
 0x7f0   : > { %v1714_v59 = vpop.f32.mrf.mxu1 }
 0x7f1   : > { %v1715_v0 = vadd.f32 %v2295_v58, %v1714_v59 }
 0x7f3   : > { %v1724_v16 = vmax.f32 %v1715_v0, 0.0 }
 0x7f8   : > { %v1716_v50 = vpop.f32.mrf.mxu1 }
 0x7f9   : > { %v1717_v33 = vadd.f32 %v2295_v58, %v1716_v50 }
 0x7fb   : > { %v1725_v27 = vmax.f32 %v1717_v33, 0.0 }
 0x7fd   : > { %v1728_v47 = vpack.c.bf16 %v1725_v27, %v1724_v16 }
 0x7ff   : > { %2078 = vmatmul.msk.bf16.vlgmr.msra.gmra.mxu2 %vm1766_vm7, %v1728_v47 }
 0x80b   : > { %v1719_v28 = vpop.f32.mrf.mxu1 }
 0x80c   : > { %v1720_v19 = vadd.f32 %v2295_v58, %v1719_v28 }
 0x80e   : > { %v1726_v32 = vmax.f32 %v1720_v19, 0.0 }
 0x813   : > { %v1721_v40 = vpop.f32.mrf.mxu1 }
 0x814   : > { %v1722_v30 = vadd.f32 %v2295_v58, %v1721_v40 }
 0x816   : > { %v1727_v52 = vmax.f32 %v1722_v30, 0.0 }
 0x818   : > { %v1729_v21 = vpack.c.bf16 %v1727_v52, %v1726_v32 }
 0x81a   : > { %2079 = vmatmul.msk.bf16.vlgmr.msra.gmra.mxu3 %vm1766_vm7, %v1729_v21 }
 0x882   : > { %v1782_v26 = vpop.f32.mrf.mxu2 }
 0x883   : > { %v1783_v14 = vadd.f32 %v2296_v42, %v1782_v26 }
 0x885   : > { %v1792_v43 = vadd.f32 %v1783_v14, %v3158_v53 }
 0x887   : > { %1796 = vst.msk [vmem:[%s2605_s30] sm:$0xff] %vm1394_vm9, %v1792_v43 }
 0x88a   : > { %v1784_v11 = vpop.f32.mrf.mxu2 }
 0x88b   : > { %v1785_v62 = vadd.f32 %v2296_v42, %v1784_v11 }
 0x88d   : > { %v1793_v13 = vadd.f32 %v1785_v62, %v3163_v4 }
 0x88f   : > { %1797 = vst.msk [vmem:[%s2605_s30 + $0x8] sm:$0xff] %vm1394_vm9, %v1793_v13 }
 0x89d   : > { %v1787_v22 = vpop.f32.mrf.mxu3 }
 0x89e   : > { %v1788_v29 = vadd.f32 %v2296_v42, %v1787_v22 }
 0x8a0   : > { %v1794_v23 = vadd.f32 %v1788_v29, %v3168_v12 }
 0x8a2   : > { %1798 = vst.msk [vmem:[%s2605_s30 + $0x10] sm:$0xff] %vm1394_vm9, %v1794_v23 }
 0x8a5   : > { %v1789_v17 = vpop.f32.mrf.mxu3 }
 0x8a6   : > { %v1790_v54 = vadd.f32 %v2296_v42, %v1789_v17 }
 0x8a8   : > { %v1795_v51 = vadd.f32 %v1790_v54, %v3173_v39 }
 0x8aa   : > { %1799 = vst.msk [vmem:[%s2605_s30 + $0x18] sm:$0xff] %vm1394_vm9, %v1795_v51 }
 0x8ab PF: > { %s3346_s14 = sld [smem:[#allocation11_spill]]  ;;  %s1838_s28 = sshll.u32 %s2605_s30, 4  ;;  %s1839_s28 = int_to_ptr.vmem [resolvable:$true] %s1838_s28 }
 0x8ac   : > { %s3347_s21 = sld [smem:[#allocation9_spill]] }
 0x8ad   : > { %s3349_s26 = sld [smem:[#allocation23_spill]] }
 0x8b1   : > { %s2100_s9 = sshll.u32 %s3346_s14, 5 }
 0x8b2   : > { %s3351_s15 = sand.u32 1, %s3347_s21  }
 0x8b3   : > { %s3350_s20 = smov %s3349_s26  ;;  %s1837_s27 = scalar_lea.hbm %s3349_s26, %s2100_s9 }
 0x8b4   : > { %s1840_s29 = sshll.u32 %s1837_s27, 4  ;;  %s1821_s24 = scalar_lea.sflag [#allocation6], %s3351_s15  ;;  %s1841_s29 = int_to_ptr.hbm [resolvable:$true] %s1840_s29 }
 0x8b5   : > { %s2337_s10 = sshra.s32 %s1841_s29, 4  ;;  %s2343_s23 = scalar_lea.hbm %s3350_s20, 64  ;;  %s2338_s10 = int_to_ptr.hbm [resolvable:$true] %s2337_s10 }
 0x8b6   : > { %s2339_s16 = scalar_lea.hbm %s2338_s10, 32  ;;  %p2344_p6 = scmp.lt.s32.totalorder %s2338_s10, %s3350_s20 }
 0x8b7   : > { %p2340_p2 = scmp.ne.s32.totalorder %s2338_s10, %s2339_s16  ;;  %p2345_p7 = scmp.lt.s32.totalorder %s2343_s23, %s2339_s16 }
 0x8b9   : > { %p2341_p4 = pnand %p2340_p2, %p2556_p3  ;;  %p2346_p8 = por %p2345_p7, %p2344_p6 }
 0x8bb   : > { %p2342_p5 = pneg %p2341_p4 }
 0x8bd   : > { %p2347_p10 = pnand %p2346_p8, %p2342_p5 }
 0x8bf   : > { %2350 = shalt.err (!%p2347_p10)
}
 0x8c0   : > { %s2436_s30 = smov 128  }
 0x8c1   : > { %2105 = dma.vmem_to_hbm [thread:$0]  (%p2556_p3), %s1839_s28, 512, %s1841_s29, %s1821_s24, %s2436_s30, %s2436_s30, %s2427_s11  }
 0x8c2 PF: > { %s3352_s21 = sld [smem:[#allocation14_spill]] }
 0x8c3   : > { %s3353_s9 = sld [smem:[#allocation8_spill]] }
 0x8c8   : > { %p2111_p11 = scmp.ge.s32.totalorder %s3352_s21, 2 }
 0x8c9   : > { %s1858_s26 = sand.u32 1, %s3353_s9  }
 0x8ca   : > { %p2108_p12 = pnand %p2111_p11, %p2566_p9  ;;  %s1859_s27 = scalar_lea.sflag [#allocation6], %s1858_s26 }
 0x8cc   : > { %p2109_p13 = pneg %p2108_p12 }
 0x8ce   : > { %2384 = dma.done.wait (%p2109_p13), %s1859_s27, 512  }
 0x8cf   : > { %2386 = vsyncadd (%p2109_p13), %s1859_s27, 4294966784  ;;  %s27_s15 = sadd.s32 1, %s3352_s21   ;;  %s3355_s25 = sld [smem:[#allocation9_spill]] }
 0x8d0   : > { %p24_p0 = scmp.ge.s32.totalorder %s27_s15, 6   ;;  %s3356_s26 = sld [smem:[#allocation10_spill]] }
 0x8d1   : > { %s3357_s27 = sld [smem:[#allocation19_spill]] }
 0x8d2   : > { %s3358_s28 = sld [smem:[#allocation12_spill]]  ;;  %26 = sbr.rel (!%p24_p0) target bundleno = 10 (0xa), region = 132 }
 0x8d3   : > { %s3359_s29 = sld [smem:[#allocation13_spill]] }
 0x8d4   : > { %s3360_s30 = sld [smem:[#allocation15_spill]] }
 0x8d5   : > { %s3361_s14 = sld [smem:[#allocation17_spill]] }
 0x8d7   :  { %1873 = vsyncpa [#allocation6], 1 }
 0x8d8   :  { %1875 = vsyncpa [#allocation6 + $0x1], 1 }

</bundles_post_ra>
